<compile_context>
chip_gen: v7x
topology: tpu7x:2x2x1
jax: 0.10.0
libtpu: 0.0.40
codegen_flags: <defaults>
</compile_context>

<pallas_src>
import functools

import jax
import jax.numpy as jnp
from jax.experimental import pallas as pl
from jax.experimental.pallas import tpu as pltpu

EPS = 1e-5


def _dot(a, b):
    return jnp.dot(a, b, preferred_element_type=jnp.float32)


# -----------------------------------------------------------------------------
# Fully-fused kernel: stem -> blk1..blk5 -> head, one batch element per program
# -----------------------------------------------------------------------------
def _qcnn_kernel(*refs, has_extra):
    refs = list(refs)
    o_ref = refs.pop()                      # output ref, block (1, 1, num_class)
    it = iter(refs)
    nxt = lambda: next(it)                  # consume operands in packing order

    x = nxt()[0]                            # (L, Cin) -- this program's batch elem
    L = x.shape[0]

    row = jax.lax.broadcasted_iota(jnp.int32, (L, 1), 0)
    not_first = row > 0
    not_last = row < L - 1

    def shift_pm1(h):
        # h_prev[l] = h[l-1] (zero at l=0); h_next[l] = h[l+1] (zero at l=L-1)
        hp = jnp.where(not_first, pltpu.roll(h, 1, 0), 0.0)
        hn = jnp.where(not_last, pltpu.roll(h, L - 1, 0), 0.0)
        return hp, hn

    def conv_k3(h, w_ref, b):
        # 'same' conv, kernel=3, pad=1: tap0 <-> h[l-1], tap1 <-> h[l], tap2 <-> h[l+1]
        hp, hn = shift_pm1(h)
        return _dot(hp, w_ref[0]) + _dot(h, w_ref[1]) + _dot(hn, w_ref[2]) + b

    # ---------------- stem: bn1(conv1(x)) and bn2(conv2(x)) ----------------
    c1w_ref, c1b = nxt(), nxt()[...]
    c2w, c2b = nxt()[...], nxt()[...]
    res0 = _dot(x, c2w) + c2b               # conv2 (k=1) + bn2 (folded)
    h = conv_k3(x, c1w_ref, c1b)            # conv1 (k=3) + bn1 (folded), no ReLU

    # ---------------- Qblock ----------------
    def qblock(xin, extra):
        w, b = nxt()[...], nxt()[...]
        t = jnp.maximum(_dot(xin, w) + b, 0.0)            # relu(bn1(conv1))
        w_ref, b = nxt(), nxt()[...]
        t = jnp.maximum(conv_k3(t, w_ref, b), 0.0)        # relu(bn2(conv2))
        w, b = nxt()[...], nxt()[...]
        t = jnp.maximum(_dot(t, w) + b, 0.0)              # relu(bn3(conv3))

        # DWBlock (approx): depthwise conv1d(k=3,'same') + BN + ReLU
        dw, dws, dwt = nxt()[...], nxt()[...], nxt()[...]
        tp, tn = shift_pm1(t)
        t = tp * dw[0:1, :] + t * dw[1:2, :] + tn * dw[2:3, :]
        t = jnp.maximum(t * dws + dwt, 0.0)

        # CAM: avg/max pool over L, shared MLP on stacked rows, sigmoid gate
        cw1, cb1, cw2, cb2 = nxt()[...], nxt()[...], nxt()[...], nxt()[...]
        avg = jnp.mean(t, axis=0, keepdims=True)          # (1, C)
        mx = jnp.max(t, axis=0, keepdims=True)            # (1, C)
        v = jnp.concatenate([avg, mx], axis=0)            # (2, C) -> one MLP pass
        v = jnp.maximum(_dot(v, cw1) + cb1, 0.0)
        v = _dot(v, cw2) + cb2
        gate = jax.nn.sigmoid(jnp.sum(v, axis=0, keepdims=True))   # (1, C)
        t = t * gate                                       # broadcast multiply

        if extra:                                          # 1x1 conv + BN shortcut
            ew, eb = nxt()[...], nxt()[...]
            sc = _dot(xin, ew) + eb
        else:
            sc = xin
        return jnp.maximum(t + sc, 0.0)

    x1 = qblock(h, has_extra[0])
    x2 = qblock(x1, has_extra[1])
    x3 = qblock(x1 + x2, has_extra[2])
    x4 = qblock(x3, has_extra[3])
    x5 = qblock(x3 + x4, has_extra[4])

    # ---------------- head: bn3(conv3) + res -> avg pool -> lin1..lin4 ------
    c3w_ref, c3b = nxt(), nxt()[...]
    t = conv_k3(x5, c3w_ref, c3b) + res0
    p = jnp.mean(t, axis=0, keepdims=True)                # (1, 64)
    for relu in (True, True, True, False):                # Dropout = identity
        w, b = nxt()[...], nxt()[...]
        p = _dot(p, w) + b
        if relu:
            p = jnp.maximum(p, 0.0)
    o_ref[...] = p[None]                                  # (1, 1, num_class)


# -----------------------------------------------------------------------------
# Wrapper: pack params in a fixed order, one fused pallas_call, grid over batch
# -----------------------------------------------------------------------------
def qcnn_forward(params, x):
    B, Cin, L = x.shape
    x_cl = jnp.transpose(x, (0, 2, 1))                    # (B, L, Cin) channels-last

    has_extra = tuple("extra_w" in params[f"blk{i}"] for i in range(1, 6))

    weights = [params["conv1_w"], params["conv1_b"],
               params["conv2_w"], params["conv2_b"]]
    for i in range(1, 6):
        p = params[f"blk{i}"]
        weights += [p["c1w"], p["c1b"], p["c2w"], p["c2b"], p["c3w"], p["c3b"],
                    p["dw_w"], p["dw_s"], p["dw_t"],
                    p["cam_w1"], p["cam_b1"], p["cam_w2"], p["cam_b2"]]
        if "extra_w" in p:
            weights += [p["extra_w"], p["extra_b"]]
    weights += [params["conv3_w"], params["conv3_b"],
                params["lin1_w"], params["lin1_b"],
                params["lin2_w"], params["lin2_b"],
                params["lin3_w"], params["lin3_b"],
                params["lin4_w"], params["lin4_b"]]

    nc = params["lin4_w"].shape[-1]

    in_specs = [pl.BlockSpec((1, L, Cin), lambda b: (b, 0, 0))]
    for w in weights:
        in_specs.append(pl.BlockSpec(w.shape, lambda b, _nd=w.ndim: (0,) * _nd))

    out = pl.pallas_call(
        functools.partial(_qcnn_kernel, has_extra=has_extra),
        grid=(B,),
        in_specs=in_specs,
        out_specs=pl.BlockSpec((1, 1, nc), lambda b: (b, 0, 0)),
        out_shape=jax.ShapeDtypeStruct((B, 1, nc), jnp.float32),
        compiler_params=pltpu.CompilerParams(dimension_semantics=("parallel",)),
    )(x_cl, *weights)
    return out.reshape(B, nc)


# -----------------------------------------------------------------------------
# Deterministic parameter construction (quaternion layers, BN folded, eval mode)
# Weight layout is channels-last matmul form: (Cin, Cout) / (3 taps, Cin, Cout).
# -----------------------------------------------------------------------------
def make_params(num_class, key):
    keys = [key]

    def nk():
        keys[0], sub = jax.random.split(keys[0])
        return sub

    def rnd(shape, scale=0.1):
        return scale * jax.random.normal(nk(), shape, dtype=jnp.float32)

    def bn(c):
        gamma = 1.0 + rnd((c,), 0.05)
        beta = rnd((c,), 0.05)
        mean = jnp.zeros((c,), jnp.float32)     # fresh running stats (eval mode)
        var = jnp.ones((c,), jnp.float32)
        scale = gamma / jnp.sqrt(var + EPS)
        shift = beta - mean * scale
        return scale, shift

    def qconv(cin, cout, ks):
        # QuaternionConv: Hamilton-structured weight, torch layout (cout, cin, ks)
        qo, qi = cout // 4, cin // 4
        r, i, j, kq = (rnd((qo, qi, ks)) for _ in range(4))
        row_r = jnp.concatenate([r, -i, -j, -kq], axis=1)
        row_i = jnp.concatenate([i, r, -kq, j], axis=1)
        row_j = jnp.concatenate([j, kq, r, -i], axis=1)
        row_k = jnp.concatenate([kq, -j, i, r], axis=1)
        w = jnp.concatenate([row_r, row_i, row_j, row_k], axis=0)
        return w, rnd((cout,))

    def as_taps(w):      # (cout, cin, ks) -> (ks, cin, cout); tap 0 <-> x[l-1]
        return jnp.transpose(w, (2, 1, 0))

    def as_mat(w):       # (cout, cin, 1) -> (cin, cout)
        return w[:, :, 0].T

    def fold_mat(w_mat, b, scale, shift):
        return w_mat * scale[None, :], (b * scale + shift).reshape(1, -1)

    def fold_taps(w_taps, b, scale, shift):
        return w_taps * scale[None, None, :], (b * scale + shift).reshape(1, -1)

    def qlinear(fin, fout):
        # QuaternionLinear: Hamilton-structured (fin, fout); y = x @ W + b
        pi, po = fin // 4, fout // 4
        r, i, j, kq = (rnd((pi, po)) for _ in range(4))
        col_r = jnp.concatenate([r, -i, -j, -kq], axis=0)
        col_i = jnp.concatenate([i, r, -kq, j], axis=0)
        col_j = jnp.concatenate([j, kq, r, -i], axis=0)
        col_k = jnp.concatenate([kq, -j, i, r], axis=0)
        w = jnp.concatenate([col_r, col_i, col_j, col_k], axis=1)
        return w, rnd((1, fout))

    def qblock(ch_in, ch_out):
        C = ch_out * 4
        p = {}
        w, b = qconv(ch_in, ch_out, 1)
        p["c1w"], p["c1b"] = fold_mat(as_mat(w), b, *bn(ch_out))
        w, b = qconv(ch_out, ch_out, 3)
        p["c2w"], p["c2b"] = fold_taps(as_taps(w), b, *bn(ch_out))
        w, b = qconv(ch_out, C, 1)
        p["c3w"], p["c3b"] = fold_mat(as_mat(w), b, *bn(C))
        s, t = bn(C)
        p["dw_w"] = rnd((3, C))
        p["dw_s"] = s.reshape(1, C)
        p["dw_t"] = t.reshape(1, C)
        w1, b1 = qconv(C, C // 16, 1)
        w2, b2 = qconv(C // 16, C, 1)
        p["cam_w1"], p["cam_b1"] = as_mat(w1), b1.reshape(1, -1)
        p["cam_w2"], p["cam_b2"] = as_mat(w2), b2.reshape(1, -1)
        if ch_in != C:
            w, b = qconv(ch_in, C, 1)
            p["extra_w"], p["extra_b"] = fold_mat(as_mat(w), b, *bn(C))
        return p

    params = {}
    w1, b1 = rnd((64, 39, 3)), rnd((64,))                  # plain Conv1d(39,64,3)
    params["conv1_w"], params["conv1_b"] = fold_taps(as_taps(w1), b1, *bn(64))
    w2, b2 = rnd((64, 39, 1)), rnd((64,))                  # plain Conv1d(39,64,1)
    params["conv2_w"], params["conv2_b"] = fold_mat(as_mat(w2), b2, *bn(64))
    params["blk1"] = qblock(64, 16)
    params["blk2"] = qblock(64, 16)
    params["blk3"] = qblock(64, 32)
    params["blk4"] = qblock(128, 32)
    params["blk5"] = qblock(128, 32)
    w3, b3 = qconv(128, 64, 3)
    params["conv3_w"], params["conv3_b"] = fold_taps(as_taps(w3), b3, *bn(64))
    params["lin1_w"], params["lin1_b"] = qlinear(64, 32)
    params["lin2_w"], params["lin2_b"] = qlinear(32, 16)
    params["lin3_w"], params["lin3_b"] = qlinear(16, 8)
    params["lin4_w"] = rnd((8, num_class))
    params["lin4_b"] = rnd((1, num_class))
    return params


if __name__ == "__main__":
    num_class = 8
    key = jax.random.PRNGKey(0)
    pkey, xkey = jax.random.split(key)
    params = make_params(num_class, pkey)
    x = jax.random.normal(xkey, (2, 39, 16), dtype=jnp.float32)   # (B, 39 feats, L)

    fwd = jax.jit(qcnn_forward)
    out = jax.block_until_ready(fwd(params, x))
    assert out.shape == (2, num_class), out.shape
    print("KERNEL_OK")
</pallas_src>

<mosaic_0001>
module attributes {stable_mosaic.version = 11 : i64} {
  func.func @_qcnn_kernel(%arg0: i32, %arg1: memref<1x16x39xf32, #tpu.memory_space<vmem>>, %arg2: memref<3x39x64xf32, #tpu.memory_space<vmem>>, %arg3: memref<1x64xf32, #tpu.memory_space<vmem>>, %arg4: memref<39x64xf32, #tpu.memory_space<vmem>>, %arg5: memref<1x64xf32, #tpu.memory_space<vmem>>, %arg6: memref<64x16xf32, #tpu.memory_space<vmem>>, %arg7: memref<1x16xf32, #tpu.memory_space<vmem>>, %arg8: memref<3x16x16xf32, #tpu.memory_space<vmem>>, %arg9: memref<1x16xf32, #tpu.memory_space<vmem>>, %arg10: memref<16x64xf32, #tpu.memory_space<vmem>>, %arg11: memref<1x64xf32, #tpu.memory_space<vmem>>, %arg12: memref<3x64xf32, #tpu.memory_space<vmem>>, %arg13: memref<1x64xf32, #tpu.memory_space<vmem>>, %arg14: memref<1x64xf32, #tpu.memory_space<vmem>>, %arg15: memref<64x4xf32, #tpu.memory_space<vmem>>, %arg16: memref<1x4xf32, #tpu.memory_space<vmem>>, %arg17: memref<4x64xf32, #tpu.memory_space<vmem>>, %arg18: memref<1x64xf32, #tpu.memory_space<vmem>>, %arg19: memref<64x16xf32, #tpu.memory_space<vmem>>, %arg20: memref<1x16xf32, #tpu.memory_space<vmem>>, %arg21: memref<3x16x16xf32, #tpu.memory_space<vmem>>, %arg22: memref<1x16xf32, #tpu.memory_space<vmem>>, %arg23: memref<16x64xf32, #tpu.memory_space<vmem>>, %arg24: memref<1x64xf32, #tpu.memory_space<vmem>>, %arg25: memref<3x64xf32, #tpu.memory_space<vmem>>, %arg26: memref<1x64xf32, #tpu.memory_space<vmem>>, %arg27: memref<1x64xf32, #tpu.memory_space<vmem>>, %arg28: memref<64x4xf32, #tpu.memory_space<vmem>>, %arg29: memref<1x4xf32, #tpu.memory_space<vmem>>, %arg30: memref<4x64xf32, #tpu.memory_space<vmem>>, %arg31: memref<1x64xf32, #tpu.memory_space<vmem>>, %arg32: memref<64x32xf32, #tpu.memory_space<vmem>>, %arg33: memref<1x32xf32, #tpu.memory_space<vmem>>, %arg34: memref<3x32x32xf32, #tpu.memory_space<vmem>>, %arg35: memref<1x32xf32, #tpu.memory_space<vmem>>, %arg36: memref<32x128xf32, #tpu.memory_space<vmem>>, %arg37: memref<1x128xf32, #tpu.memory_space<vmem>>, %arg38: memref<3x128xf32, #tpu.memory_space<vmem>>, %arg39: memref<1x128xf32, #tpu.memory_space<vmem>>, %arg40: memref<1x128xf32, #tpu.memory_space<vmem>>, %arg41: memref<128x8xf32, #tpu.memory_space<vmem>>, %arg42: memref<1x8xf32, #tpu.memory_space<vmem>>, %arg43: memref<8x128xf32, #tpu.memory_space<vmem>>, %arg44: memref<1x128xf32, #tpu.memory_space<vmem>>, %arg45: memref<64x128xf32, #tpu.memory_space<vmem>>, %arg46: memref<1x128xf32, #tpu.memory_space<vmem>>, %arg47: memref<128x32xf32, #tpu.memory_space<vmem>>, %arg48: memref<1x32xf32, #tpu.memory_space<vmem>>, %arg49: memref<3x32x32xf32, #tpu.memory_space<vmem>>, %arg50: memref<1x32xf32, #tpu.memory_space<vmem>>, %arg51: memref<32x128xf32, #tpu.memory_space<vmem>>, %arg52: memref<1x128xf32, #tpu.memory_space<vmem>>, %arg53: memref<3x128xf32, #tpu.memory_space<vmem>>, %arg54: memref<1x128xf32, #tpu.memory_space<vmem>>, %arg55: memref<1x128xf32, #tpu.memory_space<vmem>>, %arg56: memref<128x8xf32, #tpu.memory_space<vmem>>, %arg57: memref<1x8xf32, #tpu.memory_space<vmem>>, %arg58: memref<8x128xf32, #tpu.memory_space<vmem>>, %arg59: memref<1x128xf32, #tpu.memory_space<vmem>>, %arg60: memref<128x32xf32, #tpu.memory_space<vmem>>, %arg61: memref<1x32xf32, #tpu.memory_space<vmem>>, %arg62: memref<3x32x32xf32, #tpu.memory_space<vmem>>, %arg63: memref<1x32xf32, #tpu.memory_space<vmem>>, %arg64: memref<32x128xf32, #tpu.memory_space<vmem>>, %arg65: memref<1x128xf32, #tpu.memory_space<vmem>>, %arg66: memref<3x128xf32, #tpu.memory_space<vmem>>, %arg67: memref<1x128xf32, #tpu.memory_space<vmem>>, %arg68: memref<1x128xf32, #tpu.memory_space<vmem>>, %arg69: memref<128x8xf32, #tpu.memory_space<vmem>>, %arg70: memref<1x8xf32, #tpu.memory_space<vmem>>, %arg71: memref<8x128xf32, #tpu.memory_space<vmem>>, %arg72: memref<1x128xf32, #tpu.memory_space<vmem>>, %arg73: memref<3x128x64xf32, #tpu.memory_space<vmem>>, %arg74: memref<1x64xf32, #tpu.memory_space<vmem>>, %arg75: memref<64x32xf32, #tpu.memory_space<vmem>>, %arg76: memref<1x32xf32, #tpu.memory_space<vmem>>, %arg77: memref<32x16xf32, #tpu.memory_space<vmem>>, %arg78: memref<1x16xf32, #tpu.memory_space<vmem>>, %arg79: memref<16x8xf32, #tpu.memory_space<vmem>>, %arg80: memref<1x8xf32, #tpu.memory_space<vmem>>, %arg81: memref<8x8xf32, #tpu.memory_space<vmem>>, %arg82: memref<1x8xf32, #tpu.memory_space<vmem>>, %arg83: memref<1x1x8xf32, #tpu.memory_space<vmem>>) attributes {dimension_semantics = [#tpu.dimension_semantics<parallel>], iteration_bounds = array<i64: 2>, scalar_prefetch = 0 : i64, scratch_operands = 0 : i64, tpu.core_type = #tpu.core_type<tc>, window_params = [{transform_indices = @transform_0, window_bounds = array<i64: 1, 16, 39>}, {pipeline_mode = #tpu.pipeline_mode<synchronous>, transform_indices = @transform_1, window_bounds = array<i64: 3, 39, 64>}, {pipeline_mode = #tpu.pipeline_mode<synchronous>, transform_indices = @transform_2, window_bounds = array<i64: 1, 64>}, {pipeline_mode = #tpu.pipeline_mode<synchronous>, transform_indices = @transform_3, window_bounds = array<i64: 39, 64>}, {pipeline_mode = #tpu.pipeline_mode<synchronous>, transform_indices = @transform_4, window_bounds = array<i64: 1, 64>}, {pipeline_mode = #tpu.pipeline_mode<synchronous>, transform_indices = @transform_5, window_bounds = array<i64: 64, 16>}, {pipeline_mode = #tpu.pipeline_mode<synchronous>, transform_indices = @transform_6, window_bounds = array<i64: 1, 16>}, {pipeline_mode = #tpu.pipeline_mode<synchronous>, transform_indices = @transform_7, window_bounds = array<i64: 3, 16, 16>}, {pipeline_mode = #tpu.pipeline_mode<synchronous>, transform_indices = @transform_8, window_bounds = array<i64: 1, 16>}, {pipeline_mode = #tpu.pipeline_mode<synchronous>, transform_indices = @transform_9, window_bounds = array<i64: 16, 64>}, {pipeline_mode = #tpu.pipeline_mode<synchronous>, transform_indices = @transform_10, window_bounds = array<i64: 1, 64>}, {pipeline_mode = #tpu.pipeline_mode<synchronous>, transform_indices = @transform_11, window_bounds = array<i64: 3, 64>}, {pipeline_mode = #tpu.pipeline_mode<synchronous>, transform_indices = @transform_12, window_bounds = array<i64: 1, 64>}, {pipeline_mode = #tpu.pipeline_mode<synchronous>, transform_indices = @transform_13, window_bounds = array<i64: 1, 64>}, {pipeline_mode = #tpu.pipeline_mode<synchronous>, transform_indices = @transform_14, window_bounds = array<i64: 64, 4>}, {pipeline_mode = #tpu.pipeline_mode<synchronous>, transform_indices = @transform_15, window_bounds = array<i64: 1, 4>}, {pipeline_mode = #tpu.pipeline_mode<synchronous>, transform_indices = @transform_16, window_bounds = array<i64: 4, 64>}, {pipeline_mode = #tpu.pipeline_mode<synchronous>, transform_indices = @transform_17, window_bounds = array<i64: 1, 64>}, {pipeline_mode = #tpu.pipeline_mode<synchronous>, transform_indices = @transform_18, window_bounds = array<i64: 64, 16>}, {pipeline_mode = #tpu.pipeline_mode<synchronous>, transform_indices = @transform_19, window_bounds = array<i64: 1, 16>}, {pipeline_mode = #tpu.pipeline_mode<synchronous>, transform_indices = @transform_20, window_bounds = array<i64: 3, 16, 16>}, {pipeline_mode = #tpu.pipeline_mode<synchronous>, transform_indices = @transform_21, window_bounds = array<i64: 1, 16>}, {pipeline_mode = #tpu.pipeline_mode<synchronous>, transform_indices = @transform_22, window_bounds = array<i64: 16, 64>}, {pipeline_mode = #tpu.pipeline_mode<synchronous>, transform_indices = @transform_23, window_bounds = array<i64: 1, 64>}, {pipeline_mode = #tpu.pipeline_mode<synchronous>, transform_indices = @transform_24, window_bounds = array<i64: 3, 64>}, {pipeline_mode = #tpu.pipeline_mode<synchronous>, transform_indices = @transform_25, window_bounds = array<i64: 1, 64>}, {pipeline_mode = #tpu.pipeline_mode<synchronous>, transform_indices = @transform_26, window_bounds = array<i64: 1, 64>}, {pipeline_mode = #tpu.pipeline_mode<synchronous>, transform_indices = @transform_27, window_bounds = array<i64: 64, 4>}, {pipeline_mode = #tpu.pipeline_mode<synchronous>, transform_indices = @transform_28, window_bounds = array<i64: 1, 4>}, {pipeline_mode = #tpu.pipeline_mode<synchronous>, transform_indices = @transform_29, window_bounds = array<i64: 4, 64>}, {pipeline_mode = #tpu.pipeline_mode<synchronous>, transform_indices = @transform_30, window_bounds = array<i64: 1, 64>}, {pipeline_mode = #tpu.pipeline_mode<synchronous>, transform_indices = @transform_31, window_bounds = array<i64: 64, 32>}, {pipeline_mode = #tpu.pipeline_mode<synchronous>, transform_indices = @transform_32, window_bounds = array<i64: 1, 32>}, {pipeline_mode = #tpu.pipeline_mode<synchronous>, transform_indices = @transform_33, window_bounds = array<i64: 3, 32, 32>}, {pipeline_mode = #tpu.pipeline_mode<synchronous>, transform_indices = @transform_34, window_bounds = array<i64: 1, 32>}, {pipeline_mode = #tpu.pipeline_mode<synchronous>, transform_indices = @transform_35, window_bounds = array<i64: 32, 128>}, {pipeline_mode = #tpu.pipeline_mode<synchronous>, transform_indices = @transform_36, window_bounds = array<i64: 1, 128>}, {pipeline_mode = #tpu.pipeline_mode<synchronous>, transform_indices = @transform_37, window_bounds = array<i64: 3, 128>}, {pipeline_mode = #tpu.pipeline_mode<synchronous>, transform_indices = @transform_38, window_bounds = array<i64: 1, 128>}, {pipeline_mode = #tpu.pipeline_mode<synchronous>, transform_indices = @transform_39, window_bounds = array<i64: 1, 128>}, {pipeline_mode = #tpu.pipeline_mode<synchronous>, transform_indices = @transform_40, window_bounds = array<i64: 128, 8>}, {pipeline_mode = #tpu.pipeline_mode<synchronous>, transform_indices = @transform_41, window_bounds = array<i64: 1, 8>}, {pipeline_mode = #tpu.pipeline_mode<synchronous>, transform_indices = @transform_42, window_bounds = array<i64: 8, 128>}, {pipeline_mode = #tpu.pipeline_mode<synchronous>, transform_indices = @transform_43, window_bounds = array<i64: 1, 128>}, {pipeline_mode = #tpu.pipeline_mode<synchronous>, transform_indices = @transform_44, window_bounds = array<i64: 64, 128>}, {pipeline_mode = #tpu.pipeline_mode<synchronous>, transform_indices = @transform_45, window_bounds = array<i64: 1, 128>}, {pipeline_mode = #tpu.pipeline_mode<synchronous>, transform_indices = @transform_46, window_bounds = array<i64: 128, 32>}, {pipeline_mode = #tpu.pipeline_mode<synchronous>, transform_indices = @transform_47, window_bounds = array<i64: 1, 32>}, {pipeline_mode = #tpu.pipeline_mode<synchronous>, transform_indices = @transform_48, window_bounds = array<i64: 3, 32, 32>}, {pipeline_mode = #tpu.pipeline_mode<synchronous>, transform_indices = @transform_49, window_bounds = array<i64: 1, 32>}, {pipeline_mode = #tpu.pipeline_mode<synchronous>, transform_indices = @transform_50, window_bounds = array<i64: 32, 128>}, {pipeline_mode = #tpu.pipeline_mode<synchronous>, transform_indices = @transform_51, window_bounds = array<i64: 1, 128>}, {pipeline_mode = #tpu.pipeline_mode<synchronous>, transform_indices = @transform_52, window_bounds = array<i64: 3, 128>}, {pipeline_mode = #tpu.pipeline_mode<synchronous>, transform_indices = @transform_53, window_bounds = array<i64: 1, 128>}, {pipeline_mode = #tpu.pipeline_mode<synchronous>, transform_indices = @transform_54, window_bounds = array<i64: 1, 128>}, {pipeline_mode = #tpu.pipeline_mode<synchronous>, transform_indices = @transform_55, window_bounds = array<i64: 128, 8>}, {pipeline_mode = #tpu.pipeline_mode<synchronous>, transform_indices = @transform_56, window_bounds = array<i64: 1, 8>}, {pipeline_mode = #tpu.pipeline_mode<synchronous>, transform_indices = @transform_57, window_bounds = array<i64: 8, 128>}, {pipeline_mode = #tpu.pipeline_mode<synchronous>, transform_indices = @transform_58, window_bounds = array<i64: 1, 128>}, {pipeline_mode = #tpu.pipeline_mode<synchronous>, transform_indices = @transform_59, window_bounds = array<i64: 128, 32>}, {pipeline_mode = #tpu.pipeline_mode<synchronous>, transform_indices = @transform_60, window_bounds = array<i64: 1, 32>}, {pipeline_mode = #tpu.pipeline_mode<synchronous>, transform_indices = @transform_61, window_bounds = array<i64: 3, 32, 32>}, {pipeline_mode = #tpu.pipeline_mode<synchronous>, transform_indices = @transform_62, window_bounds = array<i64: 1, 32>}, {pipeline_mode = #tpu.pipeline_mode<synchronous>, transform_indices = @transform_63, window_bounds = array<i64: 32, 128>}, {pipeline_mode = #tpu.pipeline_mode<synchronous>, transform_indices = @transform_64, window_bounds = array<i64: 1, 128>}, {pipeline_mode = #tpu.pipeline_mode<synchronous>, transform_indices = @transform_65, window_bounds = array<i64: 3, 128>}, {pipeline_mode = #tpu.pipeline_mode<synchronous>, transform_indices = @transform_66, window_bounds = array<i64: 1, 128>}, {pipeline_mode = #tpu.pipeline_mode<synchronous>, transform_indices = @transform_67, window_bounds = array<i64: 1, 128>}, {pipeline_mode = #tpu.pipeline_mode<synchronous>, transform_indices = @transform_68, window_bounds = array<i64: 128, 8>}, {pipeline_mode = #tpu.pipeline_mode<synchronous>, transform_indices = @transform_69, window_bounds = array<i64: 1, 8>}, {pipeline_mode = #tpu.pipeline_mode<synchronous>, transform_indices = @transform_70, window_bounds = array<i64: 8, 128>}, {pipeline_mode = #tpu.pipeline_mode<synchronous>, transform_indices = @transform_71, window_bounds = array<i64: 1, 128>}, {pipeline_mode = #tpu.pipeline_mode<synchronous>, transform_indices = @transform_72, window_bounds = array<i64: 3, 128, 64>}, {pipeline_mode = #tpu.pipeline_mode<synchronous>, transform_indices = @transform_73, window_bounds = array<i64: 1, 64>}, {pipeline_mode = #tpu.pipeline_mode<synchronous>, transform_indices = @transform_74, window_bounds = array<i64: 64, 32>}, {pipeline_mode = #tpu.pipeline_mode<synchronous>, transform_indices = @transform_75, window_bounds = array<i64: 1, 32>}, {pipeline_mode = #tpu.pipeline_mode<synchronous>, transform_indices = @transform_76, window_bounds = array<i64: 32, 16>}, {pipeline_mode = #tpu.pipeline_mode<synchronous>, transform_indices = @transform_77, window_bounds = array<i64: 1, 16>}, {pipeline_mode = #tpu.pipeline_mode<synchronous>, transform_indices = @transform_78, window_bounds = array<i64: 16, 8>}, {pipeline_mode = #tpu.pipeline_mode<synchronous>, transform_indices = @transform_79, window_bounds = array<i64: 1, 8>}, {pipeline_mode = #tpu.pipeline_mode<synchronous>, transform_indices = @transform_80, window_bounds = array<i64: 8, 8>}, {pipeline_mode = #tpu.pipeline_mode<synchronous>, transform_indices = @transform_81, window_bounds = array<i64: 1, 8>}, {transform_indices = @transform_82, window_bounds = array<i64: 1, 1, 8>}]} {
    %c0 = arith.constant 0 : index
    %c0_0 = arith.constant 0 : index
    %c0_1 = arith.constant 0 : index
    %0 = vector.load %arg1[%c0, %c0_0, %c0_1] : memref<1x16x39xf32, #tpu.memory_space<vmem>>, vector<1x16x39xf32>
    %1 = vector.shape_cast %0 : vector<1x16x39xf32> to vector<16x39xf32>
    %2 = tpu.iota {dimensions = array<i32: 0>} : vector<16x1xi32>
    %c0_i32 = arith.constant 0 : i32
    %3 = vector.broadcast %c0_i32 : i32 to vector<16x1xi32>
    %4 = arith.cmpi sgt, %2, %3 : vector<16x1xi32>
    %c15_i32 = arith.constant 15 : i32
    %5 = vector.broadcast %c15_i32 : i32 to vector<16x1xi32>
    %6 = arith.cmpi slt, %2, %5 : vector<16x1xi32>
    %c0_2 = arith.constant 0 : index
    %c0_3 = arith.constant 0 : index
    %7 = vector.load %arg3[%c0_2, %c0_3] : memref<1x64xf32, #tpu.memory_space<vmem>>, vector<1x64xf32>
    %c0_4 = arith.constant 0 : index
    %c0_5 = arith.constant 0 : index
    %8 = vector.load %arg4[%c0_4, %c0_5] : memref<39x64xf32, #tpu.memory_space<vmem>>, vector<39x64xf32>
    %c0_6 = arith.constant 0 : index
    %c0_7 = arith.constant 0 : index
    %9 = vector.load %arg5[%c0_6, %c0_7] : memref<1x64xf32, #tpu.memory_space<vmem>>, vector<1x64xf32>
    %cst = arith.constant dense<0.000000e+00> : vector<16x64xf32>
    %10 = tpu.matmul %1, %8, %cst {dimension_numbers = #tpu.dot_dimension_numbers<[1], [0], [0], [1], [0, 0, 1, 1], [], []>} : vector<16x39xf32>, vector<39x64xf32>, vector<16x64xf32> -> vector<16x64xf32>
    %11 = vector.broadcast %9 : vector<1x64xf32> to vector<16x64xf32>
    %12 = arith.addf %10, %11 : vector<16x64xf32>
    %c1_i32 = arith.constant 1 : i32
    %13 = tpu.dynamic_rotate %1 by %c1_i32 dim 0 : vector<16x39xf32>, i32 -> vector<16x39xf32>
    %cst_8 = arith.constant 0.000000e+00 : f32
    %14 = vector.shape_cast %4 : vector<16x1xi1> to vector<16x1xi1>
    %15 = vector.broadcast %14 : vector<16x1xi1> to vector<16x39xi1>
    %16 = vector.broadcast %cst_8 : f32 to vector<16x39xf32>
    %17 = arith.select %15, %13, %16 : vector<16x39xi1>, vector<16x39xf32>
    %c15_i32_9 = arith.constant 15 : i32
    %18 = tpu.dynamic_rotate %1 by %c15_i32_9 dim 0 : vector<16x39xf32>, i32 -> vector<16x39xf32>
    %cst_10 = arith.constant 0.000000e+00 : f32
    %19 = vector.shape_cast %6 : vector<16x1xi1> to vector<16x1xi1>
    %20 = vector.broadcast %19 : vector<16x1xi1> to vector<16x39xi1>
    %21 = vector.broadcast %cst_10 : f32 to vector<16x39xf32>
    %22 = arith.select %20, %18, %21 : vector<16x39xi1>, vector<16x39xf32>
    %c0_11 = arith.constant 0 : index
    %c0_12 = arith.constant 0 : index
    %c0_13 = arith.constant 0 : index
    %23 = vector.load %arg2[%c0_11, %c0_12, %c0_13] : memref<3x39x64xf32, #tpu.memory_space<vmem>>, vector<1x39x64xf32>
    %24 = vector.shape_cast %23 : vector<1x39x64xf32> to vector<39x64xf32>
    %cst_14 = arith.constant dense<0.000000e+00> : vector<16x64xf32>
    %25 = tpu.matmul %17, %24, %cst_14 {dimension_numbers = #tpu.dot_dimension_numbers<[1], [0], [0], [1], [0, 0, 1, 1], [], []>} : vector<16x39xf32>, vector<39x64xf32>, vector<16x64xf32> -> vector<16x64xf32>
    %c1 = arith.constant 1 : index
    %c0_15 = arith.constant 0 : index
    %c0_16 = arith.constant 0 : index
    %26 = vector.load %arg2[%c1, %c0_15, %c0_16] : memref<3x39x64xf32, #tpu.memory_space<vmem>>, vector<1x39x64xf32>
    %27 = vector.shape_cast %26 : vector<1x39x64xf32> to vector<39x64xf32>
    %cst_17 = arith.constant dense<0.000000e+00> : vector<16x64xf32>
    %28 = tpu.matmul %1, %27, %cst_17 {dimension_numbers = #tpu.dot_dimension_numbers<[1], [0], [0], [1], [0, 0, 1, 1], [], []>} : vector<16x39xf32>, vector<39x64xf32>, vector<16x64xf32> -> vector<16x64xf32>
    %29 = arith.addf %25, %28 : vector<16x64xf32>
    %c2 = arith.constant 2 : index
    %c0_18 = arith.constant 0 : index
    %c0_19 = arith.constant 0 : index
    %30 = vector.load %arg2[%c2, %c0_18, %c0_19] : memref<3x39x64xf32, #tpu.memory_space<vmem>>, vector<1x39x64xf32>
    %31 = vector.shape_cast %30 : vector<1x39x64xf32> to vector<39x64xf32>
    %cst_20 = arith.constant dense<0.000000e+00> : vector<16x64xf32>
    %32 = tpu.matmul %22, %31, %cst_20 {dimension_numbers = #tpu.dot_dimension_numbers<[1], [0], [0], [1], [0, 0, 1, 1], [], []>} : vector<16x39xf32>, vector<39x64xf32>, vector<16x64xf32> -> vector<16x64xf32>
    %33 = arith.addf %29, %32 : vector<16x64xf32>
    %34 = vector.broadcast %7 : vector<1x64xf32> to vector<16x64xf32>
    %35 = arith.addf %33, %34 : vector<16x64xf32>
    %c0_21 = arith.constant 0 : index
    %c0_22 = arith.constant 0 : index
    %36 = vector.load %arg6[%c0_21, %c0_22] : memref<64x16xf32, #tpu.memory_space<vmem>>, vector<64x16xf32>
    %c0_23 = arith.constant 0 : index
    %c0_24 = arith.constant 0 : index
    %37 = vector.load %arg7[%c0_23, %c0_24] : memref<1x16xf32, #tpu.memory_space<vmem>>, vector<1x16xf32>
    %cst_25 = arith.constant dense<0.000000e+00> : vector<16x16xf32>
    %38 = tpu.matmul %35, %36, %cst_25 {dimension_numbers = #tpu.dot_dimension_numbers<[1], [0], [0], [1], [0, 0, 1, 1], [], []>} : vector<16x64xf32>, vector<64x16xf32>, vector<16x16xf32> -> vector<16x16xf32>
    %39 = vector.broadcast %37 : vector<1x16xf32> to vector<16x16xf32>
    %40 = arith.addf %38, %39 : vector<16x16xf32>
    %cst_26 = arith.constant 0.000000e+00 : f32
    %41 = vector.broadcast %cst_26 : f32 to vector<16x16xf32>
    %42 = arith.maximumf %40, %41 : vector<16x16xf32>
    %c0_27 = arith.constant 0 : index
    %c0_28 = arith.constant 0 : index
    %43 = vector.load %arg9[%c0_27, %c0_28] : memref<1x16xf32, #tpu.memory_space<vmem>>, vector<1x16xf32>
    %c1_i32_29 = arith.constant 1 : i32
    %44 = tpu.dynamic_rotate %42 by %c1_i32_29 dim 0 : vector<16x16xf32>, i32 -> vector<16x16xf32>
    %cst_30 = arith.constant 0.000000e+00 : f32
    %45 = vector.shape_cast %4 : vector<16x1xi1> to vector<16x1xi1>
    %46 = vector.broadcast %45 : vector<16x1xi1> to vector<16x16xi1>
    %47 = vector.broadcast %cst_30 : f32 to vector<16x16xf32>
    %48 = arith.select %46, %44, %47 : vector<16x16xi1>, vector<16x16xf32>
    %c15_i32_31 = arith.constant 15 : i32
    %49 = tpu.dynamic_rotate %42 by %c15_i32_31 dim 0 : vector<16x16xf32>, i32 -> vector<16x16xf32>
    %cst_32 = arith.constant 0.000000e+00 : f32
    %50 = vector.shape_cast %6 : vector<16x1xi1> to vector<16x1xi1>
    %51 = vector.broadcast %50 : vector<16x1xi1> to vector<16x16xi1>
    %52 = vector.broadcast %cst_32 : f32 to vector<16x16xf32>
    %53 = arith.select %51, %49, %52 : vector<16x16xi1>, vector<16x16xf32>
    %c0_33 = arith.constant 0 : index
    %c0_34 = arith.constant 0 : index
    %c0_35 = arith.constant 0 : index
    %54 = vector.load %arg8[%c0_33, %c0_34, %c0_35] : memref<3x16x16xf32, #tpu.memory_space<vmem>>, vector<1x16x16xf32>
    %55 = vector.shape_cast %54 : vector<1x16x16xf32> to vector<16x16xf32>
    %cst_36 = arith.constant dense<0.000000e+00> : vector<16x16xf32>
    %56 = tpu.matmul %48, %55, %cst_36 {dimension_numbers = #tpu.dot_dimension_numbers<[1], [0], [0], [1], [0, 0, 1, 1], [], []>} : vector<16x16xf32>, vector<16x16xf32>, vector<16x16xf32> -> vector<16x16xf32>
    %c1_37 = arith.constant 1 : index
    %c0_38 = arith.constant 0 : index
    %c0_39 = arith.constant 0 : index
    %57 = vector.load %arg8[%c1_37, %c0_38, %c0_39] : memref<3x16x16xf32, #tpu.memory_space<vmem>>, vector<1x16x16xf32>
    %58 = vector.shape_cast %57 : vector<1x16x16xf32> to vector<16x16xf32>
    %cst_40 = arith.constant dense<0.000000e+00> : vector<16x16xf32>
    %59 = tpu.matmul %42, %58, %cst_40 {dimension_numbers = #tpu.dot_dimension_numbers<[1], [0], [0], [1], [0, 0, 1, 1], [], []>} : vector<16x16xf32>, vector<16x16xf32>, vector<16x16xf32> -> vector<16x16xf32>
    %60 = arith.addf %56, %59 : vector<16x16xf32>
    %c2_41 = arith.constant 2 : index
    %c0_42 = arith.constant 0 : index
    %c0_43 = arith.constant 0 : index
    %61 = vector.load %arg8[%c2_41, %c0_42, %c0_43] : memref<3x16x16xf32, #tpu.memory_space<vmem>>, vector<1x16x16xf32>
    %62 = vector.shape_cast %61 : vector<1x16x16xf32> to vector<16x16xf32>
    %cst_44 = arith.constant dense<0.000000e+00> : vector<16x16xf32>
    %63 = tpu.matmul %53, %62, %cst_44 {dimension_numbers = #tpu.dot_dimension_numbers<[1], [0], [0], [1], [0, 0, 1, 1], [], []>} : vector<16x16xf32>, vector<16x16xf32>, vector<16x16xf32> -> vector<16x16xf32>
    %64 = arith.addf %60, %63 : vector<16x16xf32>
    %65 = vector.broadcast %43 : vector<1x16xf32> to vector<16x16xf32>
    %66 = arith.addf %64, %65 : vector<16x16xf32>
    %cst_45 = arith.constant 0.000000e+00 : f32
    %67 = vector.broadcast %cst_45 : f32 to vector<16x16xf32>
    %68 = arith.maximumf %66, %67 : vector<16x16xf32>
    %c0_46 = arith.constant 0 : index
    %c0_47 = arith.constant 0 : index
    %69 = vector.load %arg10[%c0_46, %c0_47] : memref<16x64xf32, #tpu.memory_space<vmem>>, vector<16x64xf32>
    %c0_48 = arith.constant 0 : index
    %c0_49 = arith.constant 0 : index
    %70 = vector.load %arg11[%c0_48, %c0_49] : memref<1x64xf32, #tpu.memory_space<vmem>>, vector<1x64xf32>
    %cst_50 = arith.constant dense<0.000000e+00> : vector<16x64xf32>
    %71 = tpu.matmul %68, %69, %cst_50 {dimension_numbers = #tpu.dot_dimension_numbers<[1], [0], [0], [1], [0, 0, 1, 1], [], []>} : vector<16x16xf32>, vector<16x64xf32>, vector<16x64xf32> -> vector<16x64xf32>
    %72 = vector.broadcast %70 : vector<1x64xf32> to vector<16x64xf32>
    %73 = arith.addf %71, %72 : vector<16x64xf32>
    %cst_51 = arith.constant 0.000000e+00 : f32
    %74 = vector.broadcast %cst_51 : f32 to vector<16x64xf32>
    %75 = arith.maximumf %73, %74 : vector<16x64xf32>
    %c0_52 = arith.constant 0 : index
    %c0_53 = arith.constant 0 : index
    %76 = vector.load %arg12[%c0_52, %c0_53] : memref<3x64xf32, #tpu.memory_space<vmem>>, vector<3x64xf32>
    %c0_54 = arith.constant 0 : index
    %c0_55 = arith.constant 0 : index
    %77 = vector.load %arg13[%c0_54, %c0_55] : memref<1x64xf32, #tpu.memory_space<vmem>>, vector<1x64xf32>
    %c0_56 = arith.constant 0 : index
    %c0_57 = arith.constant 0 : index
    %78 = vector.load %arg14[%c0_56, %c0_57] : memref<1x64xf32, #tpu.memory_space<vmem>>, vector<1x64xf32>
    %c1_i32_58 = arith.constant 1 : i32
    %79 = tpu.dynamic_rotate %75 by %c1_i32_58 dim 0 : vector<16x64xf32>, i32 -> vector<16x64xf32>
    %cst_59 = arith.constant 0.000000e+00 : f32
    %80 = vector.shape_cast %4 : vector<16x1xi1> to vector<16x1xi1>
    %81 = vector.broadcast %80 : vector<16x1xi1> to vector<16x64xi1>
    %82 = vector.broadcast %cst_59 : f32 to vector<16x64xf32>
    %83 = arith.select %81, %79, %82 : vector<16x64xi1>, vector<16x64xf32>
    %c15_i32_60 = arith.constant 15 : i32
    %84 = tpu.dynamic_rotate %75 by %c15_i32_60 dim 0 : vector<16x64xf32>, i32 -> vector<16x64xf32>
    %cst_61 = arith.constant 0.000000e+00 : f32
    %85 = vector.shape_cast %6 : vector<16x1xi1> to vector<16x1xi1>
    %86 = vector.broadcast %85 : vector<16x1xi1> to vector<16x64xi1>
    %87 = vector.broadcast %cst_61 : f32 to vector<16x64xf32>
    %88 = arith.select %86, %84, %87 : vector<16x64xi1>, vector<16x64xf32>
    %89 = vector.extract_strided_slice %76 {offsets = [0, 0], sizes = [1, 64], strides = [1, 1]} : vector<3x64xf32> to vector<1x64xf32>
    %90 = vector.broadcast %89 : vector<1x64xf32> to vector<16x64xf32>
    %91 = arith.mulf %83, %90 : vector<16x64xf32>
    %92 = vector.extract_strided_slice %76 {offsets = [1, 0], sizes = [1, 64], strides = [1, 1]} : vector<3x64xf32> to vector<1x64xf32>
    %93 = vector.broadcast %92 : vector<1x64xf32> to vector<16x64xf32>
    %94 = arith.mulf %75, %93 : vector<16x64xf32>
    %95 = arith.addf %91, %94 : vector<16x64xf32>
    %96 = vector.extract_strided_slice %76 {offsets = [2, 0], sizes = [1, 64], strides = [1, 1]} : vector<3x64xf32> to vector<1x64xf32>
    %97 = vector.broadcast %96 : vector<1x64xf32> to vector<16x64xf32>
    %98 = arith.mulf %88, %97 : vector<16x64xf32>
    %99 = arith.addf %95, %98 : vector<16x64xf32>
    %100 = vector.broadcast %77 : vector<1x64xf32> to vector<16x64xf32>
    %101 = arith.mulf %99, %100 : vector<16x64xf32>
    %102 = vector.broadcast %78 : vector<1x64xf32> to vector<16x64xf32>
    %103 = arith.addf %101, %102 : vector<16x64xf32>
    %cst_62 = arith.constant 0.000000e+00 : f32
    %104 = vector.broadcast %cst_62 : f32 to vector<16x64xf32>
    %105 = arith.maximumf %103, %104 : vector<16x64xf32>
    %c0_63 = arith.constant 0 : index
    %c0_64 = arith.constant 0 : index
    %106 = vector.load %arg15[%c0_63, %c0_64] : memref<64x4xf32, #tpu.memory_space<vmem>>, vector<64x4xf32>
    %c0_65 = arith.constant 0 : index
    %c0_66 = arith.constant 0 : index
    %107 = vector.load %arg16[%c0_65, %c0_66] : memref<1x4xf32, #tpu.memory_space<vmem>>, vector<1x4xf32>
    %c0_67 = arith.constant 0 : index
    %c0_68 = arith.constant 0 : index
    %108 = vector.load %arg17[%c0_67, %c0_68] : memref<4x64xf32, #tpu.memory_space<vmem>>, vector<4x64xf32>
    %c0_69 = arith.constant 0 : index
    %c0_70 = arith.constant 0 : index
    %109 = vector.load %arg18[%c0_69, %c0_70] : memref<1x64xf32, #tpu.memory_space<vmem>>, vector<1x64xf32>
    %cst_71 = arith.constant dense<0.000000e+00> : vector<64xf32>
    %110 = vector.multi_reduction <add>, %105, %cst_71 [0] : vector<16x64xf32> to vector<64xf32>
    %111 = vector.shape_cast %110 : vector<64xf32> to vector<1x64xf32>
    %cst_72 = arith.constant 1.600000e+01 : f32
    %112 = vector.broadcast %cst_72 : f32 to vector<1x64xf32>
    %113 = arith.divf %111, %112 : vector<1x64xf32>
    %cst_73 = arith.constant dense<0xFF800000> : vector<64xf32>
    %114 = vector.multi_reduction <maximumf>, %105, %cst_73 [0] : vector<16x64xf32> to vector<64xf32>
    %115 = vector.shape_cast %114 : vector<64xf32> to vector<1x64xf32>
    %116 = tpu.concatenate %113, %115 in 0 : vector<1x64xf32>, vector<1x64xf32> -> vector<2x64xf32>
    %cst_74 = arith.constant dense<0.000000e+00> : vector<2x4xf32>
    %117 = tpu.matmul %116, %106, %cst_74 {dimension_numbers = #tpu.dot_dimension_numbers<[1], [0], [0], [1], [0, 0, 1, 1], [], []>} : vector<2x64xf32>, vector<64x4xf32>, vector<2x4xf32> -> vector<2x4xf32>
    %118 = vector.broadcast %107 : vector<1x4xf32> to vector<2x4xf32>
    %119 = arith.addf %117, %118 : vector<2x4xf32>
    %cst_75 = arith.constant 0.000000e+00 : f32
    %120 = vector.broadcast %cst_75 : f32 to vector<2x4xf32>
    %121 = arith.maximumf %119, %120 : vector<2x4xf32>
    %cst_76 = arith.constant dense<0.000000e+00> : vector<2x64xf32>
    %122 = tpu.matmul %121, %108, %cst_76 {dimension_numbers = #tpu.dot_dimension_numbers<[1], [0], [0], [1], [0, 0, 1, 1], [], []>} : vector<2x4xf32>, vector<4x64xf32>, vector<2x64xf32> -> vector<2x64xf32>
    %123 = vector.broadcast %109 : vector<1x64xf32> to vector<2x64xf32>
    %124 = arith.addf %122, %123 : vector<2x64xf32>
    %cst_77 = arith.constant dense<0.000000e+00> : vector<64xf32>
    %125 = vector.multi_reduction <add>, %124, %cst_77 [0] : vector<2x64xf32> to vector<64xf32>
    %126 = vector.shape_cast %125 : vector<64xf32> to vector<1x64xf32>
    %127 = arith.negf %126 : vector<1x64xf32>
    %128 = math.exp %127 : vector<1x64xf32>
    %cst_78 = arith.constant 1.000000e+00 : f32
    %129 = vector.broadcast %cst_78 : f32 to vector<1x64xf32>
    %130 = arith.addf %129, %128 : vector<1x64xf32>
    %131 = arith.divf %129, %130 : vector<1x64xf32>
    %132 = vector.broadcast %131 : vector<1x64xf32> to vector<16x64xf32>
    %133 = arith.mulf %105, %132 : vector<16x64xf32>
    %134 = arith.addf %133, %35 : vector<16x64xf32>
    %cst_79 = arith.constant 0.000000e+00 : f32
    %135 = vector.broadcast %cst_79 : f32 to vector<16x64xf32>
    %136 = arith.maximumf %134, %135 : vector<16x64xf32>
    %c0_80 = arith.constant 0 : index
    %c0_81 = arith.constant 0 : index
    %137 = vector.load %arg19[%c0_80, %c0_81] : memref<64x16xf32, #tpu.memory_space<vmem>>, vector<64x16xf32>
    %c0_82 = arith.constant 0 : index
    %c0_83 = arith.constant 0 : index
    %138 = vector.load %arg20[%c0_82, %c0_83] : memref<1x16xf32, #tpu.memory_space<vmem>>, vector<1x16xf32>
    %cst_84 = arith.constant dense<0.000000e+00> : vector<16x16xf32>
    %139 = tpu.matmul %136, %137, %cst_84 {dimension_numbers = #tpu.dot_dimension_numbers<[1], [0], [0], [1], [0, 0, 1, 1], [], []>} : vector<16x64xf32>, vector<64x16xf32>, vector<16x16xf32> -> vector<16x16xf32>
    %140 = vector.broadcast %138 : vector<1x16xf32> to vector<16x16xf32>
    %141 = arith.addf %139, %140 : vector<16x16xf32>
    %cst_85 = arith.constant 0.000000e+00 : f32
    %142 = vector.broadcast %cst_85 : f32 to vector<16x16xf32>
    %143 = arith.maximumf %141, %142 : vector<16x16xf32>
    %c0_86 = arith.constant 0 : index
    %c0_87 = arith.constant 0 : index
    %144 = vector.load %arg22[%c0_86, %c0_87] : memref<1x16xf32, #tpu.memory_space<vmem>>, vector<1x16xf32>
    %c1_i32_88 = arith.constant 1 : i32
    %145 = tpu.dynamic_rotate %143 by %c1_i32_88 dim 0 : vector<16x16xf32>, i32 -> vector<16x16xf32>
    %cst_89 = arith.constant 0.000000e+00 : f32
    %146 = vector.shape_cast %4 : vector<16x1xi1> to vector<16x1xi1>
    %147 = vector.broadcast %146 : vector<16x1xi1> to vector<16x16xi1>
    %148 = vector.broadcast %cst_89 : f32 to vector<16x16xf32>
    %149 = arith.select %147, %145, %148 : vector<16x16xi1>, vector<16x16xf32>
    %c15_i32_90 = arith.constant 15 : i32
    %150 = tpu.dynamic_rotate %143 by %c15_i32_90 dim 0 : vector<16x16xf32>, i32 -> vector<16x16xf32>
    %cst_91 = arith.constant 0.000000e+00 : f32
    %151 = vector.shape_cast %6 : vector<16x1xi1> to vector<16x1xi1>
    %152 = vector.broadcast %151 : vector<16x1xi1> to vector<16x16xi1>
    %153 = vector.broadcast %cst_91 : f32 to vector<16x16xf32>
    %154 = arith.select %152, %150, %153 : vector<16x16xi1>, vector<16x16xf32>
    %c0_92 = arith.constant 0 : index
    %c0_93 = arith.constant 0 : index
    %c0_94 = arith.constant 0 : index
    %155 = vector.load %arg21[%c0_92, %c0_93, %c0_94] : memref<3x16x16xf32, #tpu.memory_space<vmem>>, vector<1x16x16xf32>
    %156 = vector.shape_cast %155 : vector<1x16x16xf32> to vector<16x16xf32>
    %cst_95 = arith.constant dense<0.000000e+00> : vector<16x16xf32>
    %157 = tpu.matmul %149, %156, %cst_95 {dimension_numbers = #tpu.dot_dimension_numbers<[1], [0], [0], [1], [0, 0, 1, 1], [], []>} : vector<16x16xf32>, vector<16x16xf32>, vector<16x16xf32> -> vector<16x16xf32>
    %c1_96 = arith.constant 1 : index
    %c0_97 = arith.constant 0 : index
    %c0_98 = arith.constant 0 : index
    %158 = vector.load %arg21[%c1_96, %c0_97, %c0_98] : memref<3x16x16xf32, #tpu.memory_space<vmem>>, vector<1x16x16xf32>
    %159 = vector.shape_cast %158 : vector<1x16x16xf32> to vector<16x16xf32>
    %cst_99 = arith.constant dense<0.000000e+00> : vector<16x16xf32>
    %160 = tpu.matmul %143, %159, %cst_99 {dimension_numbers = #tpu.dot_dimension_numbers<[1], [0], [0], [1], [0, 0, 1, 1], [], []>} : vector<16x16xf32>, vector<16x16xf32>, vector<16x16xf32> -> vector<16x16xf32>
    %161 = arith.addf %157, %160 : vector<16x16xf32>
    %c2_100 = arith.constant 2 : index
    %c0_101 = arith.constant 0 : index
    %c0_102 = arith.constant 0 : index
    %162 = vector.load %arg21[%c2_100, %c0_101, %c0_102] : memref<3x16x16xf32, #tpu.memory_space<vmem>>, vector<1x16x16xf32>
    %163 = vector.shape_cast %162 : vector<1x16x16xf32> to vector<16x16xf32>
    %cst_103 = arith.constant dense<0.000000e+00> : vector<16x16xf32>
    %164 = tpu.matmul %154, %163, %cst_103 {dimension_numbers = #tpu.dot_dimension_numbers<[1], [0], [0], [1], [0, 0, 1, 1], [], []>} : vector<16x16xf32>, vector<16x16xf32>, vector<16x16xf32> -> vector<16x16xf32>
    %165 = arith.addf %161, %164 : vector<16x16xf32>
    %166 = vector.broadcast %144 : vector<1x16xf32> to vector<16x16xf32>
    %167 = arith.addf %165, %166 : vector<16x16xf32>
    %cst_104 = arith.constant 0.000000e+00 : f32
    %168 = vector.broadcast %cst_104 : f32 to vector<16x16xf32>
    %169 = arith.maximumf %167, %168 : vector<16x16xf32>
    %c0_105 = arith.constant 0 : index
    %c0_106 = arith.constant 0 : index
    %170 = vector.load %arg23[%c0_105, %c0_106] : memref<16x64xf32, #tpu.memory_space<vmem>>, vector<16x64xf32>
    %c0_107 = arith.constant 0 : index
    %c0_108 = arith.constant 0 : index
    %171 = vector.load %arg24[%c0_107, %c0_108] : memref<1x64xf32, #tpu.memory_space<vmem>>, vector<1x64xf32>
    %cst_109 = arith.constant dense<0.000000e+00> : vector<16x64xf32>
    %172 = tpu.matmul %169, %170, %cst_109 {dimension_numbers = #tpu.dot_dimension_numbers<[1], [0], [0], [1], [0, 0, 1, 1], [], []>} : vector<16x16xf32>, vector<16x64xf32>, vector<16x64xf32> -> vector<16x64xf32>
    %173 = vector.broadcast %171 : vector<1x64xf32> to vector<16x64xf32>
    %174 = arith.addf %172, %173 : vector<16x64xf32>
    %cst_110 = arith.constant 0.000000e+00 : f32
    %175 = vector.broadcast %cst_110 : f32 to vector<16x64xf32>
    %176 = arith.maximumf %174, %175 : vector<16x64xf32>
    %c0_111 = arith.constant 0 : index
    %c0_112 = arith.constant 0 : index
    %177 = vector.load %arg25[%c0_111, %c0_112] : memref<3x64xf32, #tpu.memory_space<vmem>>, vector<3x64xf32>
    %c0_113 = arith.constant 0 : index
    %c0_114 = arith.constant 0 : index
    %178 = vector.load %arg26[%c0_113, %c0_114] : memref<1x64xf32, #tpu.memory_space<vmem>>, vector<1x64xf32>
    %c0_115 = arith.constant 0 : index
    %c0_116 = arith.constant 0 : index
    %179 = vector.load %arg27[%c0_115, %c0_116] : memref<1x64xf32, #tpu.memory_space<vmem>>, vector<1x64xf32>
    %c1_i32_117 = arith.constant 1 : i32
    %180 = tpu.dynamic_rotate %176 by %c1_i32_117 dim 0 : vector<16x64xf32>, i32 -> vector<16x64xf32>
    %cst_118 = arith.constant 0.000000e+00 : f32
    %181 = vector.shape_cast %4 : vector<16x1xi1> to vector<16x1xi1>
    %182 = vector.broadcast %181 : vector<16x1xi1> to vector<16x64xi1>
    %183 = vector.broadcast %cst_118 : f32 to vector<16x64xf32>
    %184 = arith.select %182, %180, %183 : vector<16x64xi1>, vector<16x64xf32>
    %c15_i32_119 = arith.constant 15 : i32
    %185 = tpu.dynamic_rotate %176 by %c15_i32_119 dim 0 : vector<16x64xf32>, i32 -> vector<16x64xf32>
    %cst_120 = arith.constant 0.000000e+00 : f32
    %186 = vector.shape_cast %6 : vector<16x1xi1> to vector<16x1xi1>
    %187 = vector.broadcast %186 : vector<16x1xi1> to vector<16x64xi1>
    %188 = vector.broadcast %cst_120 : f32 to vector<16x64xf32>
    %189 = arith.select %187, %185, %188 : vector<16x64xi1>, vector<16x64xf32>
    %190 = vector.extract_strided_slice %177 {offsets = [0, 0], sizes = [1, 64], strides = [1, 1]} : vector<3x64xf32> to vector<1x64xf32>
    %191 = vector.broadcast %190 : vector<1x64xf32> to vector<16x64xf32>
    %192 = arith.mulf %184, %191 : vector<16x64xf32>
    %193 = vector.extract_strided_slice %177 {offsets = [1, 0], sizes = [1, 64], strides = [1, 1]} : vector<3x64xf32> to vector<1x64xf32>
    %194 = vector.broadcast %193 : vector<1x64xf32> to vector<16x64xf32>
    %195 = arith.mulf %176, %194 : vector<16x64xf32>
    %196 = arith.addf %192, %195 : vector<16x64xf32>
    %197 = vector.extract_strided_slice %177 {offsets = [2, 0], sizes = [1, 64], strides = [1, 1]} : vector<3x64xf32> to vector<1x64xf32>
    %198 = vector.broadcast %197 : vector<1x64xf32> to vector<16x64xf32>
    %199 = arith.mulf %189, %198 : vector<16x64xf32>
    %200 = arith.addf %196, %199 : vector<16x64xf32>
    %201 = vector.broadcast %178 : vector<1x64xf32> to vector<16x64xf32>
    %202 = arith.mulf %200, %201 : vector<16x64xf32>
    %203 = vector.broadcast %179 : vector<1x64xf32> to vector<16x64xf32>
    %204 = arith.addf %202, %203 : vector<16x64xf32>
    %cst_121 = arith.constant 0.000000e+00 : f32
    %205 = vector.broadcast %cst_121 : f32 to vector<16x64xf32>
    %206 = arith.maximumf %204, %205 : vector<16x64xf32>
    %c0_122 = arith.constant 0 : index
    %c0_123 = arith.constant 0 : index
    %207 = vector.load %arg28[%c0_122, %c0_123] : memref<64x4xf32, #tpu.memory_space<vmem>>, vector<64x4xf32>
    %c0_124 = arith.constant 0 : index
    %c0_125 = arith.constant 0 : index
    %208 = vector.load %arg29[%c0_124, %c0_125] : memref<1x4xf32, #tpu.memory_space<vmem>>, vector<1x4xf32>
    %c0_126 = arith.constant 0 : index
    %c0_127 = arith.constant 0 : index
    %209 = vector.load %arg30[%c0_126, %c0_127] : memref<4x64xf32, #tpu.memory_space<vmem>>, vector<4x64xf32>
    %c0_128 = arith.constant 0 : index
    %c0_129 = arith.constant 0 : index
    %210 = vector.load %arg31[%c0_128, %c0_129] : memref<1x64xf32, #tpu.memory_space<vmem>>, vector<1x64xf32>
    %cst_130 = arith.constant dense<0.000000e+00> : vector<64xf32>
    %211 = vector.multi_reduction <add>, %206, %cst_130 [0] : vector<16x64xf32> to vector<64xf32>
    %212 = vector.shape_cast %211 : vector<64xf32> to vector<1x64xf32>
    %cst_131 = arith.constant 1.600000e+01 : f32
    %213 = vector.broadcast %cst_131 : f32 to vector<1x64xf32>
    %214 = arith.divf %212, %213 : vector<1x64xf32>
    %cst_132 = arith.constant dense<0xFF800000> : vector<64xf32>
    %215 = vector.multi_reduction <maximumf>, %206, %cst_132 [0] : vector<16x64xf32> to vector<64xf32>
    %216 = vector.shape_cast %215 : vector<64xf32> to vector<1x64xf32>
    %217 = tpu.concatenate %214, %216 in 0 : vector<1x64xf32>, vector<1x64xf32> -> vector<2x64xf32>
    %cst_133 = arith.constant dense<0.000000e+00> : vector<2x4xf32>
    %218 = tpu.matmul %217, %207, %cst_133 {dimension_numbers = #tpu.dot_dimension_numbers<[1], [0], [0], [1], [0, 0, 1, 1], [], []>} : vector<2x64xf32>, vector<64x4xf32>, vector<2x4xf32> -> vector<2x4xf32>
    %219 = vector.broadcast %208 : vector<1x4xf32> to vector<2x4xf32>
    %220 = arith.addf %218, %219 : vector<2x4xf32>
    %cst_134 = arith.constant 0.000000e+00 : f32
    %221 = vector.broadcast %cst_134 : f32 to vector<2x4xf32>
    %222 = arith.maximumf %220, %221 : vector<2x4xf32>
    %cst_135 = arith.constant dense<0.000000e+00> : vector<2x64xf32>
    %223 = tpu.matmul %222, %209, %cst_135 {dimension_numbers = #tpu.dot_dimension_numbers<[1], [0], [0], [1], [0, 0, 1, 1], [], []>} : vector<2x4xf32>, vector<4x64xf32>, vector<2x64xf32> -> vector<2x64xf32>
    %224 = vector.broadcast %210 : vector<1x64xf32> to vector<2x64xf32>
    %225 = arith.addf %223, %224 : vector<2x64xf32>
    %cst_136 = arith.constant dense<0.000000e+00> : vector<64xf32>
    %226 = vector.multi_reduction <add>, %225, %cst_136 [0] : vector<2x64xf32> to vector<64xf32>
    %227 = vector.shape_cast %226 : vector<64xf32> to vector<1x64xf32>
    %228 = arith.negf %227 : vector<1x64xf32>
    %229 = math.exp %228 : vector<1x64xf32>
    %cst_137 = arith.constant 1.000000e+00 : f32
    %230 = vector.broadcast %cst_137 : f32 to vector<1x64xf32>
    %231 = arith.addf %230, %229 : vector<1x64xf32>
    %232 = arith.divf %230, %231 : vector<1x64xf32>
    %233 = vector.broadcast %232 : vector<1x64xf32> to vector<16x64xf32>
    %234 = arith.mulf %206, %233 : vector<16x64xf32>
    %235 = arith.addf %234, %136 : vector<16x64xf32>
    %cst_138 = arith.constant 0.000000e+00 : f32
    %236 = vector.broadcast %cst_138 : f32 to vector<16x64xf32>
    %237 = arith.maximumf %235, %236 : vector<16x64xf32>
    %238 = arith.addf %136, %237 : vector<16x64xf32>
    %c0_139 = arith.constant 0 : index
    %c0_140 = arith.constant 0 : index
    %239 = vector.load %arg32[%c0_139, %c0_140] : memref<64x32xf32, #tpu.memory_space<vmem>>, vector<64x32xf32>
    %c0_141 = arith.constant 0 : index
    %c0_142 = arith.constant 0 : index
    %240 = vector.load %arg33[%c0_141, %c0_142] : memref<1x32xf32, #tpu.memory_space<vmem>>, vector<1x32xf32>
    %cst_143 = arith.constant dense<0.000000e+00> : vector<16x32xf32>
    %241 = tpu.matmul %238, %239, %cst_143 {dimension_numbers = #tpu.dot_dimension_numbers<[1], [0], [0], [1], [0, 0, 1, 1], [], []>} : vector<16x64xf32>, vector<64x32xf32>, vector<16x32xf32> -> vector<16x32xf32>
    %242 = vector.broadcast %240 : vector<1x32xf32> to vector<16x32xf32>
    %243 = arith.addf %241, %242 : vector<16x32xf32>
    %cst_144 = arith.constant 0.000000e+00 : f32
    %244 = vector.broadcast %cst_144 : f32 to vector<16x32xf32>
    %245 = arith.maximumf %243, %244 : vector<16x32xf32>
    %c0_145 = arith.constant 0 : index
    %c0_146 = arith.constant 0 : index
    %246 = vector.load %arg35[%c0_145, %c0_146] : memref<1x32xf32, #tpu.memory_space<vmem>>, vector<1x32xf32>
    %c1_i32_147 = arith.constant 1 : i32
    %247 = tpu.dynamic_rotate %245 by %c1_i32_147 dim 0 : vector<16x32xf32>, i32 -> vector<16x32xf32>
    %cst_148 = arith.constant 0.000000e+00 : f32
    %248 = vector.shape_cast %4 : vector<16x1xi1> to vector<16x1xi1>
    %249 = vector.broadcast %248 : vector<16x1xi1> to vector<16x32xi1>
    %250 = vector.broadcast %cst_148 : f32 to vector<16x32xf32>
    %251 = arith.select %249, %247, %250 : vector<16x32xi1>, vector<16x32xf32>
    %c15_i32_149 = arith.constant 15 : i32
    %252 = tpu.dynamic_rotate %245 by %c15_i32_149 dim 0 : vector<16x32xf32>, i32 -> vector<16x32xf32>
    %cst_150 = arith.constant 0.000000e+00 : f32
    %253 = vector.shape_cast %6 : vector<16x1xi1> to vector<16x1xi1>
    %254 = vector.broadcast %253 : vector<16x1xi1> to vector<16x32xi1>
    %255 = vector.broadcast %cst_150 : f32 to vector<16x32xf32>
    %256 = arith.select %254, %252, %255 : vector<16x32xi1>, vector<16x32xf32>
    %c0_151 = arith.constant 0 : index
    %c0_152 = arith.constant 0 : index
    %c0_153 = arith.constant 0 : index
    %257 = vector.load %arg34[%c0_151, %c0_152, %c0_153] : memref<3x32x32xf32, #tpu.memory_space<vmem>>, vector<1x32x32xf32>
    %258 = vector.shape_cast %257 : vector<1x32x32xf32> to vector<32x32xf32>
    %cst_154 = arith.constant dense<0.000000e+00> : vector<16x32xf32>
    %259 = tpu.matmul %251, %258, %cst_154 {dimension_numbers = #tpu.dot_dimension_numbers<[1], [0], [0], [1], [0, 0, 1, 1], [], []>} : vector<16x32xf32>, vector<32x32xf32>, vector<16x32xf32> -> vector<16x32xf32>
    %c1_155 = arith.constant 1 : index
    %c0_156 = arith.constant 0 : index
    %c0_157 = arith.constant 0 : index
    %260 = vector.load %arg34[%c1_155, %c0_156, %c0_157] : memref<3x32x32xf32, #tpu.memory_space<vmem>>, vector<1x32x32xf32>
    %261 = vector.shape_cast %260 : vector<1x32x32xf32> to vector<32x32xf32>
    %cst_158 = arith.constant dense<0.000000e+00> : vector<16x32xf32>
    %262 = tpu.matmul %245, %261, %cst_158 {dimension_numbers = #tpu.dot_dimension_numbers<[1], [0], [0], [1], [0, 0, 1, 1], [], []>} : vector<16x32xf32>, vector<32x32xf32>, vector<16x32xf32> -> vector<16x32xf32>
    %263 = arith.addf %259, %262 : vector<16x32xf32>
    %c2_159 = arith.constant 2 : index
    %c0_160 = arith.constant 0 : index
    %c0_161 = arith.constant 0 : index
    %264 = vector.load %arg34[%c2_159, %c0_160, %c0_161] : memref<3x32x32xf32, #tpu.memory_space<vmem>>, vector<1x32x32xf32>
    %265 = vector.shape_cast %264 : vector<1x32x32xf32> to vector<32x32xf32>
    %cst_162 = arith.constant dense<0.000000e+00> : vector<16x32xf32>
    %266 = tpu.matmul %256, %265, %cst_162 {dimension_numbers = #tpu.dot_dimension_numbers<[1], [0], [0], [1], [0, 0, 1, 1], [], []>} : vector<16x32xf32>, vector<32x32xf32>, vector<16x32xf32> -> vector<16x32xf32>
    %267 = arith.addf %263, %266 : vector<16x32xf32>
    %268 = vector.broadcast %246 : vector<1x32xf32> to vector<16x32xf32>
    %269 = arith.addf %267, %268 : vector<16x32xf32>
    %cst_163 = arith.constant 0.000000e+00 : f32
    %270 = vector.broadcast %cst_163 : f32 to vector<16x32xf32>
    %271 = arith.maximumf %269, %270 : vector<16x32xf32>
    %c0_164 = arith.constant 0 : index
    %c0_165 = arith.constant 0 : index
    %272 = vector.load %arg36[%c0_164, %c0_165] : memref<32x128xf32, #tpu.memory_space<vmem>>, vector<32x128xf32>
    %c0_166 = arith.constant 0 : index
    %c0_167 = arith.constant 0 : index
    %273 = vector.load %arg37[%c0_166, %c0_167] : memref<1x128xf32, #tpu.memory_space<vmem>>, vector<1x128xf32>
    %cst_168 = arith.constant dense<0.000000e+00> : vector<16x128xf32>
    %274 = tpu.matmul %271, %272, %cst_168 {dimension_numbers = #tpu.dot_dimension_numbers<[1], [0], [0], [1], [0, 0, 1, 1], [], []>} : vector<16x32xf32>, vector<32x128xf32>, vector<16x128xf32> -> vector<16x128xf32>
    %275 = vector.broadcast %273 : vector<1x128xf32> to vector<16x128xf32>
    %276 = arith.addf %274, %275 : vector<16x128xf32>
    %cst_169 = arith.constant 0.000000e+00 : f32
    %277 = vector.broadcast %cst_169 : f32 to vector<16x128xf32>
    %278 = arith.maximumf %276, %277 : vector<16x128xf32>
    %c0_170 = arith.constant 0 : index
    %c0_171 = arith.constant 0 : index
    %279 = vector.load %arg38[%c0_170, %c0_171] : memref<3x128xf32, #tpu.memory_space<vmem>>, vector<3x128xf32>
    %c0_172 = arith.constant 0 : index
    %c0_173 = arith.constant 0 : index
    %280 = vector.load %arg39[%c0_172, %c0_173] : memref<1x128xf32, #tpu.memory_space<vmem>>, vector<1x128xf32>
    %c0_174 = arith.constant 0 : index
    %c0_175 = arith.constant 0 : index
    %281 = vector.load %arg40[%c0_174, %c0_175] : memref<1x128xf32, #tpu.memory_space<vmem>>, vector<1x128xf32>
    %c1_i32_176 = arith.constant 1 : i32
    %282 = tpu.dynamic_rotate %278 by %c1_i32_176 dim 0 : vector<16x128xf32>, i32 -> vector<16x128xf32>
    %cst_177 = arith.constant 0.000000e+00 : f32
    %283 = vector.shape_cast %4 : vector<16x1xi1> to vector<16x1xi1>
    %284 = vector.broadcast %283 : vector<16x1xi1> to vector<16x128xi1>
    %285 = vector.broadcast %cst_177 : f32 to vector<16x128xf32>
    %286 = arith.select %284, %282, %285 : vector<16x128xi1>, vector<16x128xf32>
    %c15_i32_178 = arith.constant 15 : i32
    %287 = tpu.dynamic_rotate %278 by %c15_i32_178 dim 0 : vector<16x128xf32>, i32 -> vector<16x128xf32>
    %cst_179 = arith.constant 0.000000e+00 : f32
    %288 = vector.shape_cast %6 : vector<16x1xi1> to vector<16x1xi1>
    %289 = vector.broadcast %288 : vector<16x1xi1> to vector<16x128xi1>
    %290 = vector.broadcast %cst_179 : f32 to vector<16x128xf32>
    %291 = arith.select %289, %287, %290 : vector<16x128xi1>, vector<16x128xf32>
    %292 = vector.extract_strided_slice %279 {offsets = [0, 0], sizes = [1, 128], strides = [1, 1]} : vector<3x128xf32> to vector<1x128xf32>
    %293 = vector.broadcast %292 : vector<1x128xf32> to vector<16x128xf32>
    %294 = arith.mulf %286, %293 : vector<16x128xf32>
    %295 = vector.extract_strided_slice %279 {offsets = [1, 0], sizes = [1, 128], strides = [1, 1]} : vector<3x128xf32> to vector<1x128xf32>
    %296 = vector.broadcast %295 : vector<1x128xf32> to vector<16x128xf32>
    %297 = arith.mulf %278, %296 : vector<16x128xf32>
    %298 = arith.addf %294, %297 : vector<16x128xf32>
    %299 = vector.extract_strided_slice %279 {offsets = [2, 0], sizes = [1, 128], strides = [1, 1]} : vector<3x128xf32> to vector<1x128xf32>
    %300 = vector.broadcast %299 : vector<1x128xf32> to vector<16x128xf32>
    %301 = arith.mulf %291, %300 : vector<16x128xf32>
    %302 = arith.addf %298, %301 : vector<16x128xf32>
    %303 = vector.broadcast %280 : vector<1x128xf32> to vector<16x128xf32>
    %304 = arith.mulf %302, %303 : vector<16x128xf32>
    %305 = vector.broadcast %281 : vector<1x128xf32> to vector<16x128xf32>
    %306 = arith.addf %304, %305 : vector<16x128xf32>
    %cst_180 = arith.constant 0.000000e+00 : f32
    %307 = vector.broadcast %cst_180 : f32 to vector<16x128xf32>
    %308 = arith.maximumf %306, %307 : vector<16x128xf32>
    %c0_181 = arith.constant 0 : index
    %c0_182 = arith.constant 0 : index
    %309 = vector.load %arg41[%c0_181, %c0_182] : memref<128x8xf32, #tpu.memory_space<vmem>>, vector<128x8xf32>
    %c0_183 = arith.constant 0 : index
    %c0_184 = arith.constant 0 : index
    %310 = vector.load %arg42[%c0_183, %c0_184] : memref<1x8xf32, #tpu.memory_space<vmem>>, vector<1x8xf32>
    %c0_185 = arith.constant 0 : index
    %c0_186 = arith.constant 0 : index
    %311 = vector.load %arg43[%c0_185, %c0_186] : memref<8x128xf32, #tpu.memory_space<vmem>>, vector<8x128xf32>
    %c0_187 = arith.constant 0 : index
    %c0_188 = arith.constant 0 : index
    %312 = vector.load %arg44[%c0_187, %c0_188] : memref<1x128xf32, #tpu.memory_space<vmem>>, vector<1x128xf32>
    %cst_189 = arith.constant dense<0.000000e+00> : vector<128xf32>
    %313 = vector.multi_reduction <add>, %308, %cst_189 [0] : vector<16x128xf32> to vector<128xf32>
    %314 = vector.shape_cast %313 : vector<128xf32> to vector<1x128xf32>
    %cst_190 = arith.constant 1.600000e+01 : f32
    %315 = vector.broadcast %cst_190 : f32 to vector<1x128xf32>
    %316 = arith.divf %314, %315 : vector<1x128xf32>
    %cst_191 = arith.constant dense<0xFF800000> : vector<128xf32>
    %317 = vector.multi_reduction <maximumf>, %308, %cst_191 [0] : vector<16x128xf32> to vector<128xf32>
    %318 = vector.shape_cast %317 : vector<128xf32> to vector<1x128xf32>
    %319 = tpu.concatenate %316, %318 in 0 : vector<1x128xf32>, vector<1x128xf32> -> vector<2x128xf32>
    %cst_192 = arith.constant dense<0.000000e+00> : vector<2x8xf32>
    %320 = tpu.matmul %319, %309, %cst_192 {dimension_numbers = #tpu.dot_dimension_numbers<[1], [0], [0], [1], [0, 0, 1, 1], [], []>} : vector<2x128xf32>, vector<128x8xf32>, vector<2x8xf32> -> vector<2x8xf32>
    %321 = vector.broadcast %310 : vector<1x8xf32> to vector<2x8xf32>
    %322 = arith.addf %320, %321 : vector<2x8xf32>
    %cst_193 = arith.constant 0.000000e+00 : f32
    %323 = vector.broadcast %cst_193 : f32 to vector<2x8xf32>
    %324 = arith.maximumf %322, %323 : vector<2x8xf32>
    %cst_194 = arith.constant dense<0.000000e+00> : vector<2x128xf32>
    %325 = tpu.matmul %324, %311, %cst_194 {dimension_numbers = #tpu.dot_dimension_numbers<[1], [0], [0], [1], [0, 0, 1, 1], [], []>} : vector<2x8xf32>, vector<8x128xf32>, vector<2x128xf32> -> vector<2x128xf32>
    %326 = vector.broadcast %312 : vector<1x128xf32> to vector<2x128xf32>
    %327 = arith.addf %325, %326 : vector<2x128xf32>
    %cst_195 = arith.constant dense<0.000000e+00> : vector<128xf32>
    %328 = vector.multi_reduction <add>, %327, %cst_195 [0] : vector<2x128xf32> to vector<128xf32>
    %329 = vector.shape_cast %328 : vector<128xf32> to vector<1x128xf32>
    %330 = arith.negf %329 : vector<1x128xf32>
    %331 = math.exp %330 : vector<1x128xf32>
    %cst_196 = arith.constant 1.000000e+00 : f32
    %332 = vector.broadcast %cst_196 : f32 to vector<1x128xf32>
    %333 = arith.addf %332, %331 : vector<1x128xf32>
    %334 = arith.divf %332, %333 : vector<1x128xf32>
    %335 = vector.broadcast %334 : vector<1x128xf32> to vector<16x128xf32>
    %336 = arith.mulf %308, %335 : vector<16x128xf32>
    %c0_197 = arith.constant 0 : index
    %c0_198 = arith.constant 0 : index
    %337 = vector.load %arg45[%c0_197, %c0_198] : memref<64x128xf32, #tpu.memory_space<vmem>>, vector<64x128xf32>
    %c0_199 = arith.constant 0 : index
    %c0_200 = arith.constant 0 : index
    %338 = vector.load %arg46[%c0_199, %c0_200] : memref<1x128xf32, #tpu.memory_space<vmem>>, vector<1x128xf32>
    %cst_201 = arith.constant dense<0.000000e+00> : vector<16x128xf32>
    %339 = tpu.matmul %238, %337, %cst_201 {dimension_numbers = #tpu.dot_dimension_numbers<[1], [0], [0], [1], [0, 0, 1, 1], [], []>} : vector<16x64xf32>, vector<64x128xf32>, vector<16x128xf32> -> vector<16x128xf32>
    %340 = vector.broadcast %338 : vector<1x128xf32> to vector<16x128xf32>
    %341 = arith.addf %339, %340 : vector<16x128xf32>
    %342 = arith.addf %336, %341 : vector<16x128xf32>
    %cst_202 = arith.constant 0.000000e+00 : f32
    %343 = vector.broadcast %cst_202 : f32 to vector<16x128xf32>
    %344 = arith.maximumf %342, %343 : vector<16x128xf32>
    %c0_203 = arith.constant 0 : index
    %c0_204 = arith.constant 0 : index
    %345 = vector.load %arg47[%c0_203, %c0_204] : memref<128x32xf32, #tpu.memory_space<vmem>>, vector<128x32xf32>
    %c0_205 = arith.constant 0 : index
    %c0_206 = arith.constant 0 : index
    %346 = vector.load %arg48[%c0_205, %c0_206] : memref<1x32xf32, #tpu.memory_space<vmem>>, vector<1x32xf32>
    %cst_207 = arith.constant dense<0.000000e+00> : vector<16x32xf32>
    %347 = tpu.matmul %344, %345, %cst_207 {dimension_numbers = #tpu.dot_dimension_numbers<[1], [0], [0], [1], [0, 0, 1, 1], [], []>} : vector<16x128xf32>, vector<128x32xf32>, vector<16x32xf32> -> vector<16x32xf32>
    %348 = vector.broadcast %346 : vector<1x32xf32> to vector<16x32xf32>
    %349 = arith.addf %347, %348 : vector<16x32xf32>
    %cst_208 = arith.constant 0.000000e+00 : f32
    %350 = vector.broadcast %cst_208 : f32 to vector<16x32xf32>
    %351 = arith.maximumf %349, %350 : vector<16x32xf32>
    %c0_209 = arith.constant 0 : index
    %c0_210 = arith.constant 0 : index
    %352 = vector.load %arg50[%c0_209, %c0_210] : memref<1x32xf32, #tpu.memory_space<vmem>>, vector<1x32xf32>
    %c1_i32_211 = arith.constant 1 : i32
    %353 = tpu.dynamic_rotate %351 by %c1_i32_211 dim 0 : vector<16x32xf32>, i32 -> vector<16x32xf32>
    %cst_212 = arith.constant 0.000000e+00 : f32
    %354 = vector.shape_cast %4 : vector<16x1xi1> to vector<16x1xi1>
    %355 = vector.broadcast %354 : vector<16x1xi1> to vector<16x32xi1>
    %356 = vector.broadcast %cst_212 : f32 to vector<16x32xf32>
    %357 = arith.select %355, %353, %356 : vector<16x32xi1>, vector<16x32xf32>
    %c15_i32_213 = arith.constant 15 : i32
    %358 = tpu.dynamic_rotate %351 by %c15_i32_213 dim 0 : vector<16x32xf32>, i32 -> vector<16x32xf32>
    %cst_214 = arith.constant 0.000000e+00 : f32
    %359 = vector.shape_cast %6 : vector<16x1xi1> to vector<16x1xi1>
    %360 = vector.broadcast %359 : vector<16x1xi1> to vector<16x32xi1>
    %361 = vector.broadcast %cst_214 : f32 to vector<16x32xf32>
    %362 = arith.select %360, %358, %361 : vector<16x32xi1>, vector<16x32xf32>
    %c0_215 = arith.constant 0 : index
    %c0_216 = arith.constant 0 : index
    %c0_217 = arith.constant 0 : index
    %363 = vector.load %arg49[%c0_215, %c0_216, %c0_217] : memref<3x32x32xf32, #tpu.memory_space<vmem>>, vector<1x32x32xf32>
    %364 = vector.shape_cast %363 : vector<1x32x32xf32> to vector<32x32xf32>
    %cst_218 = arith.constant dense<0.000000e+00> : vector<16x32xf32>
    %365 = tpu.matmul %357, %364, %cst_218 {dimension_numbers = #tpu.dot_dimension_numbers<[1], [0], [0], [1], [0, 0, 1, 1], [], []>} : vector<16x32xf32>, vector<32x32xf32>, vector<16x32xf32> -> vector<16x32xf32>
    %c1_219 = arith.constant 1 : index
    %c0_220 = arith.constant 0 : index
    %c0_221 = arith.constant 0 : index
    %366 = vector.load %arg49[%c1_219, %c0_220, %c0_221] : memref<3x32x32xf32, #tpu.memory_space<vmem>>, vector<1x32x32xf32>
    %367 = vector.shape_cast %366 : vector<1x32x32xf32> to vector<32x32xf32>
    %cst_222 = arith.constant dense<0.000000e+00> : vector<16x32xf32>
    %368 = tpu.matmul %351, %367, %cst_222 {dimension_numbers = #tpu.dot_dimension_numbers<[1], [0], [0], [1], [0, 0, 1, 1], [], []>} : vector<16x32xf32>, vector<32x32xf32>, vector<16x32xf32> -> vector<16x32xf32>
    %369 = arith.addf %365, %368 : vector<16x32xf32>
    %c2_223 = arith.constant 2 : index
    %c0_224 = arith.constant 0 : index
    %c0_225 = arith.constant 0 : index
    %370 = vector.load %arg49[%c2_223, %c0_224, %c0_225] : memref<3x32x32xf32, #tpu.memory_space<vmem>>, vector<1x32x32xf32>
    %371 = vector.shape_cast %370 : vector<1x32x32xf32> to vector<32x32xf32>
    %cst_226 = arith.constant dense<0.000000e+00> : vector<16x32xf32>
    %372 = tpu.matmul %362, %371, %cst_226 {dimension_numbers = #tpu.dot_dimension_numbers<[1], [0], [0], [1], [0, 0, 1, 1], [], []>} : vector<16x32xf32>, vector<32x32xf32>, vector<16x32xf32> -> vector<16x32xf32>
    %373 = arith.addf %369, %372 : vector<16x32xf32>
    %374 = vector.broadcast %352 : vector<1x32xf32> to vector<16x32xf32>
    %375 = arith.addf %373, %374 : vector<16x32xf32>
    %cst_227 = arith.constant 0.000000e+00 : f32
    %376 = vector.broadcast %cst_227 : f32 to vector<16x32xf32>
    %377 = arith.maximumf %375, %376 : vector<16x32xf32>
    %c0_228 = arith.constant 0 : index
    %c0_229 = arith.constant 0 : index
    %378 = vector.load %arg51[%c0_228, %c0_229] : memref<32x128xf32, #tpu.memory_space<vmem>>, vector<32x128xf32>
    %c0_230 = arith.constant 0 : index
    %c0_231 = arith.constant 0 : index
    %379 = vector.load %arg52[%c0_230, %c0_231] : memref<1x128xf32, #tpu.memory_space<vmem>>, vector<1x128xf32>
    %cst_232 = arith.constant dense<0.000000e+00> : vector<16x128xf32>
    %380 = tpu.matmul %377, %378, %cst_232 {dimension_numbers = #tpu.dot_dimension_numbers<[1], [0], [0], [1], [0, 0, 1, 1], [], []>} : vector<16x32xf32>, vector<32x128xf32>, vector<16x128xf32> -> vector<16x128xf32>
    %381 = vector.broadcast %379 : vector<1x128xf32> to vector<16x128xf32>
    %382 = arith.addf %380, %381 : vector<16x128xf32>
    %cst_233 = arith.constant 0.000000e+00 : f32
    %383 = vector.broadcast %cst_233 : f32 to vector<16x128xf32>
    %384 = arith.maximumf %382, %383 : vector<16x128xf32>
    %c0_234 = arith.constant 0 : index
    %c0_235 = arith.constant 0 : index
    %385 = vector.load %arg53[%c0_234, %c0_235] : memref<3x128xf32, #tpu.memory_space<vmem>>, vector<3x128xf32>
    %c0_236 = arith.constant 0 : index
    %c0_237 = arith.constant 0 : index
    %386 = vector.load %arg54[%c0_236, %c0_237] : memref<1x128xf32, #tpu.memory_space<vmem>>, vector<1x128xf32>
    %c0_238 = arith.constant 0 : index
    %c0_239 = arith.constant 0 : index
    %387 = vector.load %arg55[%c0_238, %c0_239] : memref<1x128xf32, #tpu.memory_space<vmem>>, vector<1x128xf32>
    %c1_i32_240 = arith.constant 1 : i32
    %388 = tpu.dynamic_rotate %384 by %c1_i32_240 dim 0 : vector<16x128xf32>, i32 -> vector<16x128xf32>
    %cst_241 = arith.constant 0.000000e+00 : f32
    %389 = vector.shape_cast %4 : vector<16x1xi1> to vector<16x1xi1>
    %390 = vector.broadcast %389 : vector<16x1xi1> to vector<16x128xi1>
    %391 = vector.broadcast %cst_241 : f32 to vector<16x128xf32>
    %392 = arith.select %390, %388, %391 : vector<16x128xi1>, vector<16x128xf32>
    %c15_i32_242 = arith.constant 15 : i32
    %393 = tpu.dynamic_rotate %384 by %c15_i32_242 dim 0 : vector<16x128xf32>, i32 -> vector<16x128xf32>
    %cst_243 = arith.constant 0.000000e+00 : f32
    %394 = vector.shape_cast %6 : vector<16x1xi1> to vector<16x1xi1>
    %395 = vector.broadcast %394 : vector<16x1xi1> to vector<16x128xi1>
    %396 = vector.broadcast %cst_243 : f32 to vector<16x128xf32>
    %397 = arith.select %395, %393, %396 : vector<16x128xi1>, vector<16x128xf32>
    %398 = vector.extract_strided_slice %385 {offsets = [0, 0], sizes = [1, 128], strides = [1, 1]} : vector<3x128xf32> to vector<1x128xf32>
    %399 = vector.broadcast %398 : vector<1x128xf32> to vector<16x128xf32>
    %400 = arith.mulf %392, %399 : vector<16x128xf32>
    %401 = vector.extract_strided_slice %385 {offsets = [1, 0], sizes = [1, 128], strides = [1, 1]} : vector<3x128xf32> to vector<1x128xf32>
    %402 = vector.broadcast %401 : vector<1x128xf32> to vector<16x128xf32>
    %403 = arith.mulf %384, %402 : vector<16x128xf32>
    %404 = arith.addf %400, %403 : vector<16x128xf32>
    %405 = vector.extract_strided_slice %385 {offsets = [2, 0], sizes = [1, 128], strides = [1, 1]} : vector<3x128xf32> to vector<1x128xf32>
    %406 = vector.broadcast %405 : vector<1x128xf32> to vector<16x128xf32>
    %407 = arith.mulf %397, %406 : vector<16x128xf32>
    %408 = arith.addf %404, %407 : vector<16x128xf32>
    %409 = vector.broadcast %386 : vector<1x128xf32> to vector<16x128xf32>
    %410 = arith.mulf %408, %409 : vector<16x128xf32>
    %411 = vector.broadcast %387 : vector<1x128xf32> to vector<16x128xf32>
    %412 = arith.addf %410, %411 : vector<16x128xf32>
    %cst_244 = arith.constant 0.000000e+00 : f32
    %413 = vector.broadcast %cst_244 : f32 to vector<16x128xf32>
    %414 = arith.maximumf %412, %413 : vector<16x128xf32>
    %c0_245 = arith.constant 0 : index
    %c0_246 = arith.constant 0 : index
    %415 = vector.load %arg56[%c0_245, %c0_246] : memref<128x8xf32, #tpu.memory_space<vmem>>, vector<128x8xf32>
    %c0_247 = arith.constant 0 : index
    %c0_248 = arith.constant 0 : index
    %416 = vector.load %arg57[%c0_247, %c0_248] : memref<1x8xf32, #tpu.memory_space<vmem>>, vector<1x8xf32>
    %c0_249 = arith.constant 0 : index
    %c0_250 = arith.constant 0 : index
    %417 = vector.load %arg58[%c0_249, %c0_250] : memref<8x128xf32, #tpu.memory_space<vmem>>, vector<8x128xf32>
    %c0_251 = arith.constant 0 : index
    %c0_252 = arith.constant 0 : index
    %418 = vector.load %arg59[%c0_251, %c0_252] : memref<1x128xf32, #tpu.memory_space<vmem>>, vector<1x128xf32>
    %cst_253 = arith.constant dense<0.000000e+00> : vector<128xf32>
    %419 = vector.multi_reduction <add>, %414, %cst_253 [0] : vector<16x128xf32> to vector<128xf32>
    %420 = vector.shape_cast %419 : vector<128xf32> to vector<1x128xf32>
    %cst_254 = arith.constant 1.600000e+01 : f32
    %421 = vector.broadcast %cst_254 : f32 to vector<1x128xf32>
    %422 = arith.divf %420, %421 : vector<1x128xf32>
    %cst_255 = arith.constant dense<0xFF800000> : vector<128xf32>
    %423 = vector.multi_reduction <maximumf>, %414, %cst_255 [0] : vector<16x128xf32> to vector<128xf32>
    %424 = vector.shape_cast %423 : vector<128xf32> to vector<1x128xf32>
    %425 = tpu.concatenate %422, %424 in 0 : vector<1x128xf32>, vector<1x128xf32> -> vector<2x128xf32>
    %cst_256 = arith.constant dense<0.000000e+00> : vector<2x8xf32>
    %426 = tpu.matmul %425, %415, %cst_256 {dimension_numbers = #tpu.dot_dimension_numbers<[1], [0], [0], [1], [0, 0, 1, 1], [], []>} : vector<2x128xf32>, vector<128x8xf32>, vector<2x8xf32> -> vector<2x8xf32>
    %427 = vector.broadcast %416 : vector<1x8xf32> to vector<2x8xf32>
    %428 = arith.addf %426, %427 : vector<2x8xf32>
    %cst_257 = arith.constant 0.000000e+00 : f32
    %429 = vector.broadcast %cst_257 : f32 to vector<2x8xf32>
    %430 = arith.maximumf %428, %429 : vector<2x8xf32>
    %cst_258 = arith.constant dense<0.000000e+00> : vector<2x128xf32>
    %431 = tpu.matmul %430, %417, %cst_258 {dimension_numbers = #tpu.dot_dimension_numbers<[1], [0], [0], [1], [0, 0, 1, 1], [], []>} : vector<2x8xf32>, vector<8x128xf32>, vector<2x128xf32> -> vector<2x128xf32>
    %432 = vector.broadcast %418 : vector<1x128xf32> to vector<2x128xf32>
    %433 = arith.addf %431, %432 : vector<2x128xf32>
    %cst_259 = arith.constant dense<0.000000e+00> : vector<128xf32>
    %434 = vector.multi_reduction <add>, %433, %cst_259 [0] : vector<2x128xf32> to vector<128xf32>
    %435 = vector.shape_cast %434 : vector<128xf32> to vector<1x128xf32>
    %436 = arith.negf %435 : vector<1x128xf32>
    %437 = math.exp %436 : vector<1x128xf32>
    %cst_260 = arith.constant 1.000000e+00 : f32
    %438 = vector.broadcast %cst_260 : f32 to vector<1x128xf32>
    %439 = arith.addf %438, %437 : vector<1x128xf32>
    %440 = arith.divf %438, %439 : vector<1x128xf32>
    %441 = vector.broadcast %440 : vector<1x128xf32> to vector<16x128xf32>
    %442 = arith.mulf %414, %441 : vector<16x128xf32>
    %443 = arith.addf %442, %344 : vector<16x128xf32>
    %cst_261 = arith.constant 0.000000e+00 : f32
    %444 = vector.broadcast %cst_261 : f32 to vector<16x128xf32>
    %445 = arith.maximumf %443, %444 : vector<16x128xf32>
    %446 = arith.addf %344, %445 : vector<16x128xf32>
    %c0_262 = arith.constant 0 : index
    %c0_263 = arith.constant 0 : index
    %447 = vector.load %arg60[%c0_262, %c0_263] : memref<128x32xf32, #tpu.memory_space<vmem>>, vector<128x32xf32>
    %c0_264 = arith.constant 0 : index
    %c0_265 = arith.constant 0 : index
    %448 = vector.load %arg61[%c0_264, %c0_265] : memref<1x32xf32, #tpu.memory_space<vmem>>, vector<1x32xf32>
    %cst_266 = arith.constant dense<0.000000e+00> : vector<16x32xf32>
    %449 = tpu.matmul %446, %447, %cst_266 {dimension_numbers = #tpu.dot_dimension_numbers<[1], [0], [0], [1], [0, 0, 1, 1], [], []>} : vector<16x128xf32>, vector<128x32xf32>, vector<16x32xf32> -> vector<16x32xf32>
    %450 = vector.broadcast %448 : vector<1x32xf32> to vector<16x32xf32>
    %451 = arith.addf %449, %450 : vector<16x32xf32>
    %cst_267 = arith.constant 0.000000e+00 : f32
    %452 = vector.broadcast %cst_267 : f32 to vector<16x32xf32>
    %453 = arith.maximumf %451, %452 : vector<16x32xf32>
    %c0_268 = arith.constant 0 : index
    %c0_269 = arith.constant 0 : index
    %454 = vector.load %arg63[%c0_268, %c0_269] : memref<1x32xf32, #tpu.memory_space<vmem>>, vector<1x32xf32>
    %c1_i32_270 = arith.constant 1 : i32
    %455 = tpu.dynamic_rotate %453 by %c1_i32_270 dim 0 : vector<16x32xf32>, i32 -> vector<16x32xf32>
    %cst_271 = arith.constant 0.000000e+00 : f32
    %456 = vector.shape_cast %4 : vector<16x1xi1> to vector<16x1xi1>
    %457 = vector.broadcast %456 : vector<16x1xi1> to vector<16x32xi1>
    %458 = vector.broadcast %cst_271 : f32 to vector<16x32xf32>
    %459 = arith.select %457, %455, %458 : vector<16x32xi1>, vector<16x32xf32>
    %c15_i32_272 = arith.constant 15 : i32
    %460 = tpu.dynamic_rotate %453 by %c15_i32_272 dim 0 : vector<16x32xf32>, i32 -> vector<16x32xf32>
    %cst_273 = arith.constant 0.000000e+00 : f32
    %461 = vector.shape_cast %6 : vector<16x1xi1> to vector<16x1xi1>
    %462 = vector.broadcast %461 : vector<16x1xi1> to vector<16x32xi1>
    %463 = vector.broadcast %cst_273 : f32 to vector<16x32xf32>
    %464 = arith.select %462, %460, %463 : vector<16x32xi1>, vector<16x32xf32>
    %c0_274 = arith.constant 0 : index
    %c0_275 = arith.constant 0 : index
    %c0_276 = arith.constant 0 : index
    %465 = vector.load %arg62[%c0_274, %c0_275, %c0_276] : memref<3x32x32xf32, #tpu.memory_space<vmem>>, vector<1x32x32xf32>
    %466 = vector.shape_cast %465 : vector<1x32x32xf32> to vector<32x32xf32>
    %cst_277 = arith.constant dense<0.000000e+00> : vector<16x32xf32>
    %467 = tpu.matmul %459, %466, %cst_277 {dimension_numbers = #tpu.dot_dimension_numbers<[1], [0], [0], [1], [0, 0, 1, 1], [], []>} : vector<16x32xf32>, vector<32x32xf32>, vector<16x32xf32> -> vector<16x32xf32>
    %c1_278 = arith.constant 1 : index
    %c0_279 = arith.constant 0 : index
    %c0_280 = arith.constant 0 : index
    %468 = vector.load %arg62[%c1_278, %c0_279, %c0_280] : memref<3x32x32xf32, #tpu.memory_space<vmem>>, vector<1x32x32xf32>
    %469 = vector.shape_cast %468 : vector<1x32x32xf32> to vector<32x32xf32>
    %cst_281 = arith.constant dense<0.000000e+00> : vector<16x32xf32>
    %470 = tpu.matmul %453, %469, %cst_281 {dimension_numbers = #tpu.dot_dimension_numbers<[1], [0], [0], [1], [0, 0, 1, 1], [], []>} : vector<16x32xf32>, vector<32x32xf32>, vector<16x32xf32> -> vector<16x32xf32>
    %471 = arith.addf %467, %470 : vector<16x32xf32>
    %c2_282 = arith.constant 2 : index
    %c0_283 = arith.constant 0 : index
    %c0_284 = arith.constant 0 : index
    %472 = vector.load %arg62[%c2_282, %c0_283, %c0_284] : memref<3x32x32xf32, #tpu.memory_space<vmem>>, vector<1x32x32xf32>
    %473 = vector.shape_cast %472 : vector<1x32x32xf32> to vector<32x32xf32>
    %cst_285 = arith.constant dense<0.000000e+00> : vector<16x32xf32>
    %474 = tpu.matmul %464, %473, %cst_285 {dimension_numbers = #tpu.dot_dimension_numbers<[1], [0], [0], [1], [0, 0, 1, 1], [], []>} : vector<16x32xf32>, vector<32x32xf32>, vector<16x32xf32> -> vector<16x32xf32>
    %475 = arith.addf %471, %474 : vector<16x32xf32>
    %476 = vector.broadcast %454 : vector<1x32xf32> to vector<16x32xf32>
    %477 = arith.addf %475, %476 : vector<16x32xf32>
    %cst_286 = arith.constant 0.000000e+00 : f32
    %478 = vector.broadcast %cst_286 : f32 to vector<16x32xf32>
    %479 = arith.maximumf %477, %478 : vector<16x32xf32>
    %c0_287 = arith.constant 0 : index
    %c0_288 = arith.constant 0 : index
    %480 = vector.load %arg64[%c0_287, %c0_288] : memref<32x128xf32, #tpu.memory_space<vmem>>, vector<32x128xf32>
    %c0_289 = arith.constant 0 : index
    %c0_290 = arith.constant 0 : index
    %481 = vector.load %arg65[%c0_289, %c0_290] : memref<1x128xf32, #tpu.memory_space<vmem>>, vector<1x128xf32>
    %cst_291 = arith.constant dense<0.000000e+00> : vector<16x128xf32>
    %482 = tpu.matmul %479, %480, %cst_291 {dimension_numbers = #tpu.dot_dimension_numbers<[1], [0], [0], [1], [0, 0, 1, 1], [], []>} : vector<16x32xf32>, vector<32x128xf32>, vector<16x128xf32> -> vector<16x128xf32>
    %483 = vector.broadcast %481 : vector<1x128xf32> to vector<16x128xf32>
    %484 = arith.addf %482, %483 : vector<16x128xf32>
    %cst_292 = arith.constant 0.000000e+00 : f32
    %485 = vector.broadcast %cst_292 : f32 to vector<16x128xf32>
    %486 = arith.maximumf %484, %485 : vector<16x128xf32>
    %c0_293 = arith.constant 0 : index
    %c0_294 = arith.constant 0 : index
    %487 = vector.load %arg66[%c0_293, %c0_294] : memref<3x128xf32, #tpu.memory_space<vmem>>, vector<3x128xf32>
    %c0_295 = arith.constant 0 : index
    %c0_296 = arith.constant 0 : index
    %488 = vector.load %arg67[%c0_295, %c0_296] : memref<1x128xf32, #tpu.memory_space<vmem>>, vector<1x128xf32>
    %c0_297 = arith.constant 0 : index
    %c0_298 = arith.constant 0 : index
    %489 = vector.load %arg68[%c0_297, %c0_298] : memref<1x128xf32, #tpu.memory_space<vmem>>, vector<1x128xf32>
    %c1_i32_299 = arith.constant 1 : i32
    %490 = tpu.dynamic_rotate %486 by %c1_i32_299 dim 0 : vector<16x128xf32>, i32 -> vector<16x128xf32>
    %cst_300 = arith.constant 0.000000e+00 : f32
    %491 = vector.shape_cast %4 : vector<16x1xi1> to vector<16x1xi1>
    %492 = vector.broadcast %491 : vector<16x1xi1> to vector<16x128xi1>
    %493 = vector.broadcast %cst_300 : f32 to vector<16x128xf32>
    %494 = arith.select %492, %490, %493 : vector<16x128xi1>, vector<16x128xf32>
    %c15_i32_301 = arith.constant 15 : i32
    %495 = tpu.dynamic_rotate %486 by %c15_i32_301 dim 0 : vector<16x128xf32>, i32 -> vector<16x128xf32>
    %cst_302 = arith.constant 0.000000e+00 : f32
    %496 = vector.shape_cast %6 : vector<16x1xi1> to vector<16x1xi1>
    %497 = vector.broadcast %496 : vector<16x1xi1> to vector<16x128xi1>
    %498 = vector.broadcast %cst_302 : f32 to vector<16x128xf32>
    %499 = arith.select %497, %495, %498 : vector<16x128xi1>, vector<16x128xf32>
    %500 = vector.extract_strided_slice %487 {offsets = [0, 0], sizes = [1, 128], strides = [1, 1]} : vector<3x128xf32> to vector<1x128xf32>
    %501 = vector.broadcast %500 : vector<1x128xf32> to vector<16x128xf32>
    %502 = arith.mulf %494, %501 : vector<16x128xf32>
    %503 = vector.extract_strided_slice %487 {offsets = [1, 0], sizes = [1, 128], strides = [1, 1]} : vector<3x128xf32> to vector<1x128xf32>
    %504 = vector.broadcast %503 : vector<1x128xf32> to vector<16x128xf32>
    %505 = arith.mulf %486, %504 : vector<16x128xf32>
    %506 = arith.addf %502, %505 : vector<16x128xf32>
    %507 = vector.extract_strided_slice %487 {offsets = [2, 0], sizes = [1, 128], strides = [1, 1]} : vector<3x128xf32> to vector<1x128xf32>
    %508 = vector.broadcast %507 : vector<1x128xf32> to vector<16x128xf32>
    %509 = arith.mulf %499, %508 : vector<16x128xf32>
    %510 = arith.addf %506, %509 : vector<16x128xf32>
    %511 = vector.broadcast %488 : vector<1x128xf32> to vector<16x128xf32>
    %512 = arith.mulf %510, %511 : vector<16x128xf32>
    %513 = vector.broadcast %489 : vector<1x128xf32> to vector<16x128xf32>
    %514 = arith.addf %512, %513 : vector<16x128xf32>
    %cst_303 = arith.constant 0.000000e+00 : f32
    %515 = vector.broadcast %cst_303 : f32 to vector<16x128xf32>
    %516 = arith.maximumf %514, %515 : vector<16x128xf32>
    %c0_304 = arith.constant 0 : index
    %c0_305 = arith.constant 0 : index
    %517 = vector.load %arg69[%c0_304, %c0_305] : memref<128x8xf32, #tpu.memory_space<vmem>>, vector<128x8xf32>
    %c0_306 = arith.constant 0 : index
    %c0_307 = arith.constant 0 : index
    %518 = vector.load %arg70[%c0_306, %c0_307] : memref<1x8xf32, #tpu.memory_space<vmem>>, vector<1x8xf32>
    %c0_308 = arith.constant 0 : index
    %c0_309 = arith.constant 0 : index
    %519 = vector.load %arg71[%c0_308, %c0_309] : memref<8x128xf32, #tpu.memory_space<vmem>>, vector<8x128xf32>
    %c0_310 = arith.constant 0 : index
    %c0_311 = arith.constant 0 : index
    %520 = vector.load %arg72[%c0_310, %c0_311] : memref<1x128xf32, #tpu.memory_space<vmem>>, vector<1x128xf32>
    %cst_312 = arith.constant dense<0.000000e+00> : vector<128xf32>
    %521 = vector.multi_reduction <add>, %516, %cst_312 [0] : vector<16x128xf32> to vector<128xf32>
    %522 = vector.shape_cast %521 : vector<128xf32> to vector<1x128xf32>
    %cst_313 = arith.constant 1.600000e+01 : f32
    %523 = vector.broadcast %cst_313 : f32 to vector<1x128xf32>
    %524 = arith.divf %522, %523 : vector<1x128xf32>
    %cst_314 = arith.constant dense<0xFF800000> : vector<128xf32>
    %525 = vector.multi_reduction <maximumf>, %516, %cst_314 [0] : vector<16x128xf32> to vector<128xf32>
    %526 = vector.shape_cast %525 : vector<128xf32> to vector<1x128xf32>
    %527 = tpu.concatenate %524, %526 in 0 : vector<1x128xf32>, vector<1x128xf32> -> vector<2x128xf32>
    %cst_315 = arith.constant dense<0.000000e+00> : vector<2x8xf32>
    %528 = tpu.matmul %527, %517, %cst_315 {dimension_numbers = #tpu.dot_dimension_numbers<[1], [0], [0], [1], [0, 0, 1, 1], [], []>} : vector<2x128xf32>, vector<128x8xf32>, vector<2x8xf32> -> vector<2x8xf32>
    %529 = vector.broadcast %518 : vector<1x8xf32> to vector<2x8xf32>
    %530 = arith.addf %528, %529 : vector<2x8xf32>
    %cst_316 = arith.constant 0.000000e+00 : f32
    %531 = vector.broadcast %cst_316 : f32 to vector<2x8xf32>
    %532 = arith.maximumf %530, %531 : vector<2x8xf32>
    %cst_317 = arith.constant dense<0.000000e+00> : vector<2x128xf32>
    %533 = tpu.matmul %532, %519, %cst_317 {dimension_numbers = #tpu.dot_dimension_numbers<[1], [0], [0], [1], [0, 0, 1, 1], [], []>} : vector<2x8xf32>, vector<8x128xf32>, vector<2x128xf32> -> vector<2x128xf32>
    %534 = vector.broadcast %520 : vector<1x128xf32> to vector<2x128xf32>
    %535 = arith.addf %533, %534 : vector<2x128xf32>
    %cst_318 = arith.constant dense<0.000000e+00> : vector<128xf32>
    %536 = vector.multi_reduction <add>, %535, %cst_318 [0] : vector<2x128xf32> to vector<128xf32>
    %537 = vector.shape_cast %536 : vector<128xf32> to vector<1x128xf32>
    %538 = arith.negf %537 : vector<1x128xf32>
    %539 = math.exp %538 : vector<1x128xf32>
    %cst_319 = arith.constant 1.000000e+00 : f32
    %540 = vector.broadcast %cst_319 : f32 to vector<1x128xf32>
    %541 = arith.addf %540, %539 : vector<1x128xf32>
    %542 = arith.divf %540, %541 : vector<1x128xf32>
    %543 = vector.broadcast %542 : vector<1x128xf32> to vector<16x128xf32>
    %544 = arith.mulf %516, %543 : vector<16x128xf32>
    %545 = arith.addf %544, %446 : vector<16x128xf32>
    %cst_320 = arith.constant 0.000000e+00 : f32
    %546 = vector.broadcast %cst_320 : f32 to vector<16x128xf32>
    %547 = arith.maximumf %545, %546 : vector<16x128xf32>
    %c0_321 = arith.constant 0 : index
    %c0_322 = arith.constant 0 : index
    %548 = vector.load %arg74[%c0_321, %c0_322] : memref<1x64xf32, #tpu.memory_space<vmem>>, vector<1x64xf32>
    %c1_i32_323 = arith.constant 1 : i32
    %549 = tpu.dynamic_rotate %547 by %c1_i32_323 dim 0 : vector<16x128xf32>, i32 -> vector<16x128xf32>
    %cst_324 = arith.constant 0.000000e+00 : f32
    %550 = vector.shape_cast %4 : vector<16x1xi1> to vector<16x1xi1>
    %551 = vector.broadcast %550 : vector<16x1xi1> to vector<16x128xi1>
    %552 = vector.broadcast %cst_324 : f32 to vector<16x128xf32>
    %553 = arith.select %551, %549, %552 : vector<16x128xi1>, vector<16x128xf32>
    %c15_i32_325 = arith.constant 15 : i32
    %554 = tpu.dynamic_rotate %547 by %c15_i32_325 dim 0 : vector<16x128xf32>, i32 -> vector<16x128xf32>
    %cst_326 = arith.constant 0.000000e+00 : f32
    %555 = vector.shape_cast %6 : vector<16x1xi1> to vector<16x1xi1>
    %556 = vector.broadcast %555 : vector<16x1xi1> to vector<16x128xi1>
    %557 = vector.broadcast %cst_326 : f32 to vector<16x128xf32>
    %558 = arith.select %556, %554, %557 : vector<16x128xi1>, vector<16x128xf32>
    %c0_327 = arith.constant 0 : index
    %c0_328 = arith.constant 0 : index
    %c0_329 = arith.constant 0 : index
    %559 = vector.load %arg73[%c0_327, %c0_328, %c0_329] : memref<3x128x64xf32, #tpu.memory_space<vmem>>, vector<1x128x64xf32>
    %560 = vector.shape_cast %559 : vector<1x128x64xf32> to vector<128x64xf32>
    %cst_330 = arith.constant dense<0.000000e+00> : vector<16x64xf32>
    %561 = tpu.matmul %553, %560, %cst_330 {dimension_numbers = #tpu.dot_dimension_numbers<[1], [0], [0], [1], [0, 0, 1, 1], [], []>} : vector<16x128xf32>, vector<128x64xf32>, vector<16x64xf32> -> vector<16x64xf32>
    %c1_331 = arith.constant 1 : index
    %c0_332 = arith.constant 0 : index
    %c0_333 = arith.constant 0 : index
    %562 = vector.load %arg73[%c1_331, %c0_332, %c0_333] : memref<3x128x64xf32, #tpu.memory_space<vmem>>, vector<1x128x64xf32>
    %563 = vector.shape_cast %562 : vector<1x128x64xf32> to vector<128x64xf32>
    %cst_334 = arith.constant dense<0.000000e+00> : vector<16x64xf32>
    %564 = tpu.matmul %547, %563, %cst_334 {dimension_numbers = #tpu.dot_dimension_numbers<[1], [0], [0], [1], [0, 0, 1, 1], [], []>} : vector<16x128xf32>, vector<128x64xf32>, vector<16x64xf32> -> vector<16x64xf32>
    %565 = arith.addf %561, %564 : vector<16x64xf32>
    %c2_335 = arith.constant 2 : index
    %c0_336 = arith.constant 0 : index
    %c0_337 = arith.constant 0 : index
    %566 = vector.load %arg73[%c2_335, %c0_336, %c0_337] : memref<3x128x64xf32, #tpu.memory_space<vmem>>, vector<1x128x64xf32>
    %567 = vector.shape_cast %566 : vector<1x128x64xf32> to vector<128x64xf32>
    %cst_338 = arith.constant dense<0.000000e+00> : vector<16x64xf32>
    %568 = tpu.matmul %558, %567, %cst_338 {dimension_numbers = #tpu.dot_dimension_numbers<[1], [0], [0], [1], [0, 0, 1, 1], [], []>} : vector<16x128xf32>, vector<128x64xf32>, vector<16x64xf32> -> vector<16x64xf32>
    %569 = arith.addf %565, %568 : vector<16x64xf32>
    %570 = vector.broadcast %548 : vector<1x64xf32> to vector<16x64xf32>
    %571 = arith.addf %569, %570 : vector<16x64xf32>
    %572 = arith.addf %571, %12 : vector<16x64xf32>
    %cst_339 = arith.constant dense<0.000000e+00> : vector<64xf32>
    %573 = vector.multi_reduction <add>, %572, %cst_339 [0] : vector<16x64xf32> to vector<64xf32>
    %574 = vector.shape_cast %573 : vector<64xf32> to vector<1x64xf32>
    %cst_340 = arith.constant 1.600000e+01 : f32
    %575 = vector.broadcast %cst_340 : f32 to vector<1x64xf32>
    %576 = arith.divf %574, %575 : vector<1x64xf32>
    %c0_341 = arith.constant 0 : index
    %c0_342 = arith.constant 0 : index
    %577 = vector.load %arg75[%c0_341, %c0_342] : memref<64x32xf32, #tpu.memory_space<vmem>>, vector<64x32xf32>
    %c0_343 = arith.constant 0 : index
    %c0_344 = arith.constant 0 : index
    %578 = vector.load %arg76[%c0_343, %c0_344] : memref<1x32xf32, #tpu.memory_space<vmem>>, vector<1x32xf32>
    %cst_345 = arith.constant dense<0.000000e+00> : vector<1x32xf32>
    %579 = tpu.matmul %576, %577, %cst_345 {dimension_numbers = #tpu.dot_dimension_numbers<[1], [0], [0], [1], [0, 0, 1, 1], [], []>} : vector<1x64xf32>, vector<64x32xf32>, vector<1x32xf32> -> vector<1x32xf32>
    %580 = arith.addf %579, %578 : vector<1x32xf32>
    %cst_346 = arith.constant 0.000000e+00 : f32
    %581 = vector.broadcast %cst_346 : f32 to vector<1x32xf32>
    %582 = arith.maximumf %580, %581 : vector<1x32xf32>
    %c0_347 = arith.constant 0 : index
    %c0_348 = arith.constant 0 : index
    %583 = vector.load %arg77[%c0_347, %c0_348] : memref<32x16xf32, #tpu.memory_space<vmem>>, vector<32x16xf32>
    %c0_349 = arith.constant 0 : index
    %c0_350 = arith.constant 0 : index
    %584 = vector.load %arg78[%c0_349, %c0_350] : memref<1x16xf32, #tpu.memory_space<vmem>>, vector<1x16xf32>
    %cst_351 = arith.constant dense<0.000000e+00> : vector<1x16xf32>
    %585 = tpu.matmul %582, %583, %cst_351 {dimension_numbers = #tpu.dot_dimension_numbers<[1], [0], [0], [1], [0, 0, 1, 1], [], []>} : vector<1x32xf32>, vector<32x16xf32>, vector<1x16xf32> -> vector<1x16xf32>
    %586 = arith.addf %585, %584 : vector<1x16xf32>
    %cst_352 = arith.constant 0.000000e+00 : f32
    %587 = vector.broadcast %cst_352 : f32 to vector<1x16xf32>
    %588 = arith.maximumf %586, %587 : vector<1x16xf32>
    %c0_353 = arith.constant 0 : index
    %c0_354 = arith.constant 0 : index
    %589 = vector.load %arg79[%c0_353, %c0_354] : memref<16x8xf32, #tpu.memory_space<vmem>>, vector<16x8xf32>
    %c0_355 = arith.constant 0 : index
    %c0_356 = arith.constant 0 : index
    %590 = vector.load %arg80[%c0_355, %c0_356] : memref<1x8xf32, #tpu.memory_space<vmem>>, vector<1x8xf32>
    %cst_357 = arith.constant dense<0.000000e+00> : vector<1x8xf32>
    %591 = tpu.matmul %588, %589, %cst_357 {dimension_numbers = #tpu.dot_dimension_numbers<[1], [0], [0], [1], [0, 0, 1, 1], [], []>} : vector<1x16xf32>, vector<16x8xf32>, vector<1x8xf32> -> vector<1x8xf32>
    %592 = arith.addf %591, %590 : vector<1x8xf32>
    %cst_358 = arith.constant 0.000000e+00 : f32
    %593 = vector.broadcast %cst_358 : f32 to vector<1x8xf32>
    %594 = arith.maximumf %592, %593 : vector<1x8xf32>
    %c0_359 = arith.constant 0 : index
    %c0_360 = arith.constant 0 : index
    %595 = vector.load %arg81[%c0_359, %c0_360] : memref<8x8xf32, #tpu.memory_space<vmem>>, vector<8x8xf32>
    %c0_361 = arith.constant 0 : index
    %c0_362 = arith.constant 0 : index
    %596 = vector.load %arg82[%c0_361, %c0_362] : memref<1x8xf32, #tpu.memory_space<vmem>>, vector<1x8xf32>
    %cst_363 = arith.constant dense<0.000000e+00> : vector<1x8xf32>
    %597 = tpu.matmul %594, %595, %cst_363 {dimension_numbers = #tpu.dot_dimension_numbers<[1], [0], [0], [1], [0, 0, 1, 1], [], []>} : vector<1x8xf32>, vector<8x8xf32>, vector<1x8xf32> -> vector<1x8xf32>
    %598 = arith.addf %597, %596 : vector<1x8xf32>
    %599 = vector.shape_cast %598 : vector<1x8xf32> to vector<1x1x8xf32>
    %c0_364 = arith.constant 0 : index
    %c0_365 = arith.constant 0 : index
    %c0_366 = arith.constant 0 : index
    %600 = vector.load %arg83[%c0_364, %c0_365, %c0_366] : memref<1x1x8xf32, #tpu.memory_space<vmem>>, vector<1x1x8xf32>
    tpu.vector_store %arg83[%c0_364, %c0_365, %c0_366], %599 {strides = array<i32>} : memref<1x1x8xf32, #tpu.memory_space<vmem>>, vector<1x1x8xf32>,
    return
  }
  func.func @transform_0(%arg0: i32) -> (i32, i32, i32) {
    %c0_i32 = arith.constant 0 : i32
    %c0_i32_0 = arith.constant 0 : i32
    %c0_i32_1 = arith.constant 0 : i32
    return %arg0, %c0_i32, %c0_i32_0 : i32, i32, i32
  }
  func.func @transform_1(%arg0: i32) -> (i32, i32, i32) {
    %c0_i32 = arith.constant 0 : i32
    %c0_i32_0 = arith.constant 0 : i32
    %c0_i32_1 = arith.constant 0 : i32
    %c0_i32_2 = arith.constant 0 : i32
    return %c0_i32, %c0_i32_0, %c0_i32_1 : i32, i32, i32
  }
  func.func @transform_2(%arg0: i32) -> (i32, i32) {
    %c0_i32 = arith.constant 0 : i32
    %c0_i32_0 = arith.constant 0 : i32
    %c0_i32_1 = arith.constant 0 : i32
    return %c0_i32, %c0_i32_0 : i32, i32
  }
  func.func @transform_3(%arg0: i32) -> (i32, i32) {
    %c0_i32 = arith.constant 0 : i32
    %c0_i32_0 = arith.constant 0 : i32
    %c0_i32_1 = arith.constant 0 : i32
    return %c0_i32, %c0_i32_0 : i32, i32
  }
  func.func @transform_4(%arg0: i32) -> (i32, i32) {
    %c0_i32 = arith.constant 0 : i32
    %c0_i32_0 = arith.constant 0 : i32
    %c0_i32_1 = arith.constant 0 : i32
    return %c0_i32, %c0_i32_0 : i32, i32
  }
  func.func @transform_5(%arg0: i32) -> (i32, i32) {
    %c0_i32 = arith.constant 0 : i32
    %c0_i32_0 = arith.constant 0 : i32
    %c0_i32_1 = arith.constant 0 : i32
    return %c0_i32, %c0_i32_0 : i32, i32
  }
  func.func @transform_6(%arg0: i32) -> (i32, i32) {
    %c0_i32 = arith.constant 0 : i32
    %c0_i32_0 = arith.constant 0 : i32
    %c0_i32_1 = arith.constant 0 : i32
    return %c0_i32, %c0_i32_0 : i32, i32
  }
  func.func @transform_7(%arg0: i32) -> (i32, i32, i32) {
    %c0_i32 = arith.constant 0 : i32
    %c0_i32_0 = arith.constant 0 : i32
    %c0_i32_1 = arith.constant 0 : i32
    %c0_i32_2 = arith.constant 0 : i32
    return %c0_i32, %c0_i32_0, %c0_i32_1 : i32, i32, i32
  }
  func.func @transform_8(%arg0: i32) -> (i32, i32) {
    %c0_i32 = arith.constant 0 : i32
    %c0_i32_0 = arith.constant 0 : i32
    %c0_i32_1 = arith.constant 0 : i32
    return %c0_i32, %c0_i32_0 : i32, i32
  }
  func.func @transform_9(%arg0: i32) -> (i32, i32) {
    %c0_i32 = arith.constant 0 : i32
    %c0_i32_0 = arith.constant 0 : i32
    %c0_i32_1 = arith.constant 0 : i32
    return %c0_i32, %c0_i32_0 : i32, i32
  }
  func.func @transform_10(%arg0: i32) -> (i32, i32) {
    %c0_i32 = arith.constant 0 : i32
    %c0_i32_0 = arith.constant 0 : i32
    %c0_i32_1 = arith.constant 0 : i32
    return %c0_i32, %c0_i32_0 : i32, i32
  }
  func.func @transform_11(%arg0: i32) -> (i32, i32) {
    %c0_i32 = arith.constant 0 : i32
    %c0_i32_0 = arith.constant 0 : i32
    %c0_i32_1 = arith.constant 0 : i32
    return %c0_i32, %c0_i32_0 : i32, i32
  }
  func.func @transform_12(%arg0: i32) -> (i32, i32) {
    %c0_i32 = arith.constant 0 : i32
    %c0_i32_0 = arith.constant 0 : i32
    %c0_i32_1 = arith.constant 0 : i32
    return %c0_i32, %c0_i32_0 : i32, i32
  }
  func.func @transform_13(%arg0: i32) -> (i32, i32) {
    %c0_i32 = arith.constant 0 : i32
    %c0_i32_0 = arith.constant 0 : i32
    %c0_i32_1 = arith.constant 0 : i32
    return %c0_i32, %c0_i32_0 : i32, i32
  }
  func.func @transform_14(%arg0: i32) -> (i32, i32) {
    %c0_i32 = arith.constant 0 : i32
    %c0_i32_0 = arith.constant 0 : i32
    %c0_i32_1 = arith.constant 0 : i32
    return %c0_i32, %c0_i32_0 : i32, i32
  }
  func.func @transform_15(%arg0: i32) -> (i32, i32) {
    %c0_i32 = arith.constant 0 : i32
    %c0_i32_0 = arith.constant 0 : i32
    %c0_i32_1 = arith.constant 0 : i32
    return %c0_i32, %c0_i32_0 : i32, i32
  }
  func.func @transform_16(%arg0: i32) -> (i32, i32) {
    %c0_i32 = arith.constant 0 : i32
    %c0_i32_0 = arith.constant 0 : i32
    %c0_i32_1 = arith.constant 0 : i32
    return %c0_i32, %c0_i32_0 : i32, i32
  }
  func.func @transform_17(%arg0: i32) -> (i32, i32) {
    %c0_i32 = arith.constant 0 : i32
    %c0_i32_0 = arith.constant 0 : i32
    %c0_i32_1 = arith.constant 0 : i32
    return %c0_i32, %c0_i32_0 : i32, i32
  }
  func.func @transform_18(%arg0: i32) -> (i32, i32) {
    %c0_i32 = arith.constant 0 : i32
    %c0_i32_0 = arith.constant 0 : i32
    %c0_i32_1 = arith.constant 0 : i32
    return %c0_i32, %c0_i32_0 : i32, i32
  }
  func.func @transform_19(%arg0: i32) -> (i32, i32) {
    %c0_i32 = arith.constant 0 : i32
    %c0_i32_0 = arith.constant 0 : i32
    %c0_i32_1 = arith.constant 0 : i32
    return %c0_i32, %c0_i32_0 : i32, i32
  }
  func.func @transform_20(%arg0: i32) -> (i32, i32, i32) {
    %c0_i32 = arith.constant 0 : i32
    %c0_i32_0 = arith.constant 0 : i32
    %c0_i32_1 = arith.constant 0 : i32
    %c0_i32_2 = arith.constant 0 : i32
    return %c0_i32, %c0_i32_0, %c0_i32_1 : i32, i32, i32
  }
  func.func @transform_21(%arg0: i32) -> (i32, i32) {
    %c0_i32 = arith.constant 0 : i32
    %c0_i32_0 = arith.constant 0 : i32
    %c0_i32_1 = arith.constant 0 : i32
    return %c0_i32, %c0_i32_0 : i32, i32
  }
  func.func @transform_22(%arg0: i32) -> (i32, i32) {
    %c0_i32 = arith.constant 0 : i32
    %c0_i32_0 = arith.constant 0 : i32
    %c0_i32_1 = arith.constant 0 : i32
    return %c0_i32, %c0_i32_0 : i32, i32
  }
  func.func @transform_23(%arg0: i32) -> (i32, i32) {
    %c0_i32 = arith.constant 0 : i32
    %c0_i32_0 = arith.constant 0 : i32
    %c0_i32_1 = arith.constant 0 : i32
    return %c0_i32, %c0_i32_0 : i32, i32
  }
  func.func @transform_24(%arg0: i32) -> (i32, i32) {
    %c0_i32 = arith.constant 0 : i32
    %c0_i32_0 = arith.constant 0 : i32
    %c0_i32_1 = arith.constant 0 : i32
    return %c0_i32, %c0_i32_0 : i32, i32
  }
  func.func @transform_25(%arg0: i32) -> (i32, i32) {
    %c0_i32 = arith.constant 0 : i32
    %c0_i32_0 = arith.constant 0 : i32
    %c0_i32_1 = arith.constant 0 : i32
    return %c0_i32, %c0_i32_0 : i32, i32
  }
  func.func @transform_26(%arg0: i32) -> (i32, i32) {
    %c0_i32 = arith.constant 0 : i32
    %c0_i32_0 = arith.constant 0 : i32
    %c0_i32_1 = arith.constant 0 : i32
    return %c0_i32, %c0_i32_0 : i32, i32
  }
  func.func @transform_27(%arg0: i32) -> (i32, i32) {
    %c0_i32 = arith.constant 0 : i32
    %c0_i32_0 = arith.constant 0 : i32
    %c0_i32_1 = arith.constant 0 : i32
    return %c0_i32, %c0_i32_0 : i32, i32
  }
  func.func @transform_28(%arg0: i32) -> (i32, i32) {
    %c0_i32 = arith.constant 0 : i32
    %c0_i32_0 = arith.constant 0 : i32
    %c0_i32_1 = arith.constant 0 : i32
    return %c0_i32, %c0_i32_0 : i32, i32
  }
  func.func @transform_29(%arg0: i32) -> (i32, i32) {
    %c0_i32 = arith.constant 0 : i32
    %c0_i32_0 = arith.constant 0 : i32
    %c0_i32_1 = arith.constant 0 : i32
    return %c0_i32, %c0_i32_0 : i32, i32
  }
  func.func @transform_30(%arg0: i32) -> (i32, i32) {
    %c0_i32 = arith.constant 0 : i32
    %c0_i32_0 = arith.constant 0 : i32
    %c0_i32_1 = arith.constant 0 : i32
    return %c0_i32, %c0_i32_0 : i32, i32
  }
  func.func @transform_31(%arg0: i32) -> (i32, i32) {
    %c0_i32 = arith.constant 0 : i32
    %c0_i32_0 = arith.constant 0 : i32
    %c0_i32_1 = arith.constant 0 : i32
    return %c0_i32, %c0_i32_0 : i32, i32
  }
  func.func @transform_32(%arg0: i32) -> (i32, i32) {
    %c0_i32 = arith.constant 0 : i32
    %c0_i32_0 = arith.constant 0 : i32
    %c0_i32_1 = arith.constant 0 : i32
    return %c0_i32, %c0_i32_0 : i32, i32
  }
  func.func @transform_33(%arg0: i32) -> (i32, i32, i32) {
    %c0_i32 = arith.constant 0 : i32
    %c0_i32_0 = arith.constant 0 : i32
    %c0_i32_1 = arith.constant 0 : i32
    %c0_i32_2 = arith.constant 0 : i32
    return %c0_i32, %c0_i32_0, %c0_i32_1 : i32, i32, i32
  }
  func.func @transform_34(%arg0: i32) -> (i32, i32) {
    %c0_i32 = arith.constant 0 : i32
    %c0_i32_0 = arith.constant 0 : i32
    %c0_i32_1 = arith.constant 0 : i32
    return %c0_i32, %c0_i32_0 : i32, i32
  }
  func.func @transform_35(%arg0: i32) -> (i32, i32) {
    %c0_i32 = arith.constant 0 : i32
    %c0_i32_0 = arith.constant 0 : i32
    %c0_i32_1 = arith.constant 0 : i32
    return %c0_i32, %c0_i32_0 : i32, i32
  }
  func.func @transform_36(%arg0: i32) -> (i32, i32) {
    %c0_i32 = arith.constant 0 : i32
    %c0_i32_0 = arith.constant 0 : i32
    %c0_i32_1 = arith.constant 0 : i32
    return %c0_i32, %c0_i32_0 : i32, i32
  }
  func.func @transform_37(%arg0: i32) -> (i32, i32) {
    %c0_i32 = arith.constant 0 : i32
    %c0_i32_0 = arith.constant 0 : i32
    %c0_i32_1 = arith.constant 0 : i32
    return %c0_i32, %c0_i32_0 : i32, i32
  }
  func.func @transform_38(%arg0: i32) -> (i32, i32) {
    %c0_i32 = arith.constant 0 : i32
    %c0_i32_0 = arith.constant 0 : i32
    %c0_i32_1 = arith.constant 0 : i32
    return %c0_i32, %c0_i32_0 : i32, i32
  }
  func.func @transform_39(%arg0: i32) -> (i32, i32) {
    %c0_i32 = arith.constant 0 : i32
    %c0_i32_0 = arith.constant 0 : i32
    %c0_i32_1 = arith.constant 0 : i32
    return %c0_i32, %c0_i32_0 : i32, i32
  }
  func.func @transform_40(%arg0: i32) -> (i32, i32) {
    %c0_i32 = arith.constant 0 : i32
    %c0_i32_0 = arith.constant 0 : i32
    %c0_i32_1 = arith.constant 0 : i32
    return %c0_i32, %c0_i32_0 : i32, i32
  }
  func.func @transform_41(%arg0: i32) -> (i32, i32) {
    %c0_i32 = arith.constant 0 : i32
    %c0_i32_0 = arith.constant 0 : i32
    %c0_i32_1 = arith.constant 0 : i32
    return %c0_i32, %c0_i32_0 : i32, i32
  }
  func.func @transform_42(%arg0: i32) -> (i32, i32) {
    %c0_i32 = arith.constant 0 : i32
    %c0_i32_0 = arith.constant 0 : i32
    %c0_i32_1 = arith.constant 0 : i32
    return %c0_i32, %c0_i32_0 : i32, i32
  }
  func.func @transform_43(%arg0: i32) -> (i32, i32) {
    %c0_i32 = arith.constant 0 : i32
    %c0_i32_0 = arith.constant 0 : i32
    %c0_i32_1 = arith.constant 0 : i32
    return %c0_i32, %c0_i32_0 : i32, i32
  }
  func.func @transform_44(%arg0: i32) -> (i32, i32) {
    %c0_i32 = arith.constant 0 : i32
    %c0_i32_0 = arith.constant 0 : i32
    %c0_i32_1 = arith.constant 0 : i32
    return %c0_i32, %c0_i32_0 : i32, i32
  }
  func.func @transform_45(%arg0: i32) -> (i32, i32) {
    %c0_i32 = arith.constant 0 : i32
    %c0_i32_0 = arith.constant 0 : i32
    %c0_i32_1 = arith.constant 0 : i32
    return %c0_i32, %c0_i32_0 : i32, i32
  }
  func.func @transform_46(%arg0: i32) -> (i32, i32) {
    %c0_i32 = arith.constant 0 : i32
    %c0_i32_0 = arith.constant 0 : i32
    %c0_i32_1 = arith.constant 0 : i32
    return %c0_i32, %c0_i32_0 : i32, i32
  }
  func.func @transform_47(%arg0: i32) -> (i32, i32) {
    %c0_i32 = arith.constant 0 : i32
    %c0_i32_0 = arith.constant 0 : i32
    %c0_i32_1 = arith.constant 0 : i32
    return %c0_i32, %c0_i32_0 : i32, i32
  }
  func.func @transform_48(%arg0: i32) -> (i32, i32, i32) {
    %c0_i32 = arith.constant 0 : i32
    %c0_i32_0 = arith.constant 0 : i32
    %c0_i32_1 = arith.constant 0 : i32
    %c0_i32_2 = arith.constant 0 : i32
    return %c0_i32, %c0_i32_0, %c0_i32_1 : i32, i32, i32
  }
  func.func @transform_49(%arg0: i32) -> (i32, i32) {
    %c0_i32 = arith.constant 0 : i32
    %c0_i32_0 = arith.constant 0 : i32
    %c0_i32_1 = arith.constant 0 : i32
    return %c0_i32, %c0_i32_0 : i32, i32
  }
  func.func @transform_50(%arg0: i32) -> (i32, i32) {
    %c0_i32 = arith.constant 0 : i32
    %c0_i32_0 = arith.constant 0 : i32
    %c0_i32_1 = arith.constant 0 : i32
    return %c0_i32, %c0_i32_0 : i32, i32
  }
  func.func @transform_51(%arg0: i32) -> (i32, i32) {
    %c0_i32 = arith.constant 0 : i32
    %c0_i32_0 = arith.constant 0 : i32
    %c0_i32_1 = arith.constant 0 : i32
    return %c0_i32, %c0_i32_0 : i32, i32
  }
  func.func @transform_52(%arg0: i32) -> (i32, i32) {
    %c0_i32 = arith.constant 0 : i32
    %c0_i32_0 = arith.constant 0 : i32
    %c0_i32_1 = arith.constant 0 : i32
    return %c0_i32, %c0_i32_0 : i32, i32
  }
  func.func @transform_53(%arg0: i32) -> (i32, i32) {
    %c0_i32 = arith.constant 0 : i32
    %c0_i32_0 = arith.constant 0 : i32
    %c0_i32_1 = arith.constant 0 : i32
    return %c0_i32, %c0_i32_0 : i32, i32
  }
  func.func @transform_54(%arg0: i32) -> (i32, i32) {
    %c0_i32 = arith.constant 0 : i32
    %c0_i32_0 = arith.constant 0 : i32
    %c0_i32_1 = arith.constant 0 : i32
    return %c0_i32, %c0_i32_0 : i32, i32
  }
  func.func @transform_55(%arg0: i32) -> (i32, i32) {
    %c0_i32 = arith.constant 0 : i32
    %c0_i32_0 = arith.constant 0 : i32
    %c0_i32_1 = arith.constant 0 : i32
    return %c0_i32, %c0_i32_0 : i32, i32
  }
  func.func @transform_56(%arg0: i32) -> (i32, i32) {
    %c0_i32 = arith.constant 0 : i32
    %c0_i32_0 = arith.constant 0 : i32
    %c0_i32_1 = arith.constant 0 : i32
    return %c0_i32, %c0_i32_0 : i32, i32
  }
  func.func @transform_57(%arg0: i32) -> (i32, i32) {
    %c0_i32 = arith.constant 0 : i32
    %c0_i32_0 = arith.constant 0 : i32
    %c0_i32_1 = arith.constant 0 : i32
    return %c0_i32, %c0_i32_0 : i32, i32
  }
  func.func @transform_58(%arg0: i32) -> (i32, i32) {
    %c0_i32 = arith.constant 0 : i32
    %c0_i32_0 = arith.constant 0 : i32
    %c0_i32_1 = arith.constant 0 : i32
    return %c0_i32, %c0_i32_0 : i32, i32
  }
  func.func @transform_59(%arg0: i32) -> (i32, i32) {
    %c0_i32 = arith.constant 0 : i32
    %c0_i32_0 = arith.constant 0 : i32
    %c0_i32_1 = arith.constant 0 : i32
    return %c0_i32, %c0_i32_0 : i32, i32
  }
  func.func @transform_60(%arg0: i32) -> (i32, i32) {
    %c0_i32 = arith.constant 0 : i32
    %c0_i32_0 = arith.constant 0 : i32
    %c0_i32_1 = arith.constant 0 : i32
    return %c0_i32, %c0_i32_0 : i32, i32
  }
  func.func @transform_61(%arg0: i32) -> (i32, i32, i32) {
    %c0_i32 = arith.constant 0 : i32
    %c0_i32_0 = arith.constant 0 : i32
    %c0_i32_1 = arith.constant 0 : i32
    %c0_i32_2 = arith.constant 0 : i32
    return %c0_i32, %c0_i32_0, %c0_i32_1 : i32, i32, i32
  }
  func.func @transform_62(%arg0: i32) -> (i32, i32) {
    %c0_i32 = arith.constant 0 : i32
    %c0_i32_0 = arith.constant 0 : i32
    %c0_i32_1 = arith.constant 0 : i32
    return %c0_i32, %c0_i32_0 : i32, i32
  }
  func.func @transform_63(%arg0: i32) -> (i32, i32) {
    %c0_i32 = arith.constant 0 : i32
    %c0_i32_0 = arith.constant 0 : i32
    %c0_i32_1 = arith.constant 0 : i32
    return %c0_i32, %c0_i32_0 : i32, i32
  }
  func.func @transform_64(%arg0: i32) -> (i32, i32) {
    %c0_i32 = arith.constant 0 : i32
    %c0_i32_0 = arith.constant 0 : i32
    %c0_i32_1 = arith.constant 0 : i32
    return %c0_i32, %c0_i32_0 : i32, i32
  }
  func.func @transform_65(%arg0: i32) -> (i32, i32) {
    %c0_i32 = arith.constant 0 : i32
    %c0_i32_0 = arith.constant 0 : i32
    %c0_i32_1 = arith.constant 0 : i32
    return %c0_i32, %c0_i32_0 : i32, i32
  }
  func.func @transform_66(%arg0: i32) -> (i32, i32) {
    %c0_i32 = arith.constant 0 : i32
    %c0_i32_0 = arith.constant 0 : i32
    %c0_i32_1 = arith.constant 0 : i32
    return %c0_i32, %c0_i32_0 : i32, i32
  }
  func.func @transform_67(%arg0: i32) -> (i32, i32) {
    %c0_i32 = arith.constant 0 : i32
    %c0_i32_0 = arith.constant 0 : i32
    %c0_i32_1 = arith.constant 0 : i32
    return %c0_i32, %c0_i32_0 : i32, i32
  }
  func.func @transform_68(%arg0: i32) -> (i32, i32) {
    %c0_i32 = arith.constant 0 : i32
    %c0_i32_0 = arith.constant 0 : i32
    %c0_i32_1 = arith.constant 0 : i32
    return %c0_i32, %c0_i32_0 : i32, i32
  }
  func.func @transform_69(%arg0: i32) -> (i32, i32) {
    %c0_i32 = arith.constant 0 : i32
    %c0_i32_0 = arith.constant 0 : i32
    %c0_i32_1 = arith.constant 0 : i32
    return %c0_i32, %c0_i32_0 : i32, i32
  }
  func.func @transform_70(%arg0: i32) -> (i32, i32) {
    %c0_i32 = arith.constant 0 : i32
    %c0_i32_0 = arith.constant 0 : i32
    %c0_i32_1 = arith.constant 0 : i32
    return %c0_i32, %c0_i32_0 : i32, i32
  }
  func.func @transform_71(%arg0: i32) -> (i32, i32) {
    %c0_i32 = arith.constant 0 : i32
    %c0_i32_0 = arith.constant 0 : i32
    %c0_i32_1 = arith.constant 0 : i32
    return %c0_i32, %c0_i32_0 : i32, i32
  }
  func.func @transform_72(%arg0: i32) -> (i32, i32, i32) {
    %c0_i32 = arith.constant 0 : i32
    %c0_i32_0 = arith.constant 0 : i32
    %c0_i32_1 = arith.constant 0 : i32
    %c0_i32_2 = arith.constant 0 : i32
    return %c0_i32, %c0_i32_0, %c0_i32_1 : i32, i32, i32
  }
  func.func @transform_73(%arg0: i32) -> (i32, i32) {
    %c0_i32 = arith.constant 0 : i32
    %c0_i32_0 = arith.constant 0 : i32
    %c0_i32_1 = arith.constant 0 : i32
    return %c0_i32, %c0_i32_0 : i32, i32
  }
  func.func @transform_74(%arg0: i32) -> (i32, i32) {
    %c0_i32 = arith.constant 0 : i32
    %c0_i32_0 = arith.constant 0 : i32
    %c0_i32_1 = arith.constant 0 : i32
    return %c0_i32, %c0_i32_0 : i32, i32
  }
  func.func @transform_75(%arg0: i32) -> (i32, i32) {
    %c0_i32 = arith.constant 0 : i32
    %c0_i32_0 = arith.constant 0 : i32
    %c0_i32_1 = arith.constant 0 : i32
    return %c0_i32, %c0_i32_0 : i32, i32
  }
  func.func @transform_76(%arg0: i32) -> (i32, i32) {
    %c0_i32 = arith.constant 0 : i32
    %c0_i32_0 = arith.constant 0 : i32
    %c0_i32_1 = arith.constant 0 : i32
    return %c0_i32, %c0_i32_0 : i32, i32
  }
  func.func @transform_77(%arg0: i32) -> (i32, i32) {
    %c0_i32 = arith.constant 0 : i32
    %c0_i32_0 = arith.constant 0 : i32
    %c0_i32_1 = arith.constant 0 : i32
    return %c0_i32, %c0_i32_0 : i32, i32
  }
  func.func @transform_78(%arg0: i32) -> (i32, i32) {
    %c0_i32 = arith.constant 0 : i32
    %c0_i32_0 = arith.constant 0 : i32
    %c0_i32_1 = arith.constant 0 : i32
    return %c0_i32, %c0_i32_0 : i32, i32
  }
  func.func @transform_79(%arg0: i32) -> (i32, i32) {
    %c0_i32 = arith.constant 0 : i32
    %c0_i32_0 = arith.constant 0 : i32
    %c0_i32_1 = arith.constant 0 : i32
    return %c0_i32, %c0_i32_0 : i32, i32
  }
  func.func @transform_80(%arg0: i32) -> (i32, i32) {
    %c0_i32 = arith.constant 0 : i32
    %c0_i32_0 = arith.constant 0 : i32
    %c0_i32_1 = arith.constant 0 : i32
    return %c0_i32, %c0_i32_0 : i32, i32
  }
  func.func @transform_81(%arg0: i32) -> (i32, i32) {
    %c0_i32 = arith.constant 0 : i32
    %c0_i32_0 = arith.constant 0 : i32
    %c0_i32_1 = arith.constant 0 : i32
    return %c0_i32, %c0_i32_0 : i32, i32
  }
  func.func @transform_82(%arg0: i32) -> (i32, i32, i32) {
    %c0_i32 = arith.constant 0 : i32
    %c0_i32_0 = arith.constant 0 : i32
    %c0_i32_1 = arith.constant 0 : i32
    return %arg0, %c0_i32, %c0_i32_0 : i32, i32, i32
  }
}

</mosaic_0001>

<bundles_post_ra>
// kernel: qcnn_forward.1
= control target key start
LH: loop header
LB: loop body
LE: loop exit
PB: predicated region body
PF: predicated region fallthrough
CT: control target
= control target key end

     0   :  { %s11375_s6 = smov 1   ;;  %s11376_s10 = smov 2   ;;  %s13252_s0 = inlined_call_operand.smem [shape: u32[83], index: -1, kind: input, shape index: {}] }
   0x1   :  { %s11503_s5 = sld [smem:[%s13252_s0]]   ;;  %s11377_s14 = smov 3  }
   0x2   :  { %s11508_s9 = sld [smem:[%s13252_s0 + %s11375_s6]]   ;;  %s11378_s18 = smov 4  }
   0x3   :  { %s11513_s13 = sld [smem:[%s13252_s0 + %s11376_s10]]   ;;  %s11379_s22 = smov 5  }
   0x4   :  { %s11518_s17 = sld [smem:[%s13252_s0 + %s11377_s14]]   ;;  %s11380_s26 = smov 6  }
   0x5   :  { %s11523_s21 = sld [smem:[%s13252_s0 + %s11378_s18]]   ;;  %s11381_s30 = smov 7  }
   0x6   :  { %s11528_s25 = sld [smem:[%s13252_s0 + %s11379_s22]]   ;;  %s11382_s4 = smov 8  }
   0x7   :  { %13349 = sst [smem:[#allocation75_spill]] %s11503_s5  ;;  %s11383_s10 = smov 9  }
   0x8   :  { %13350 = sst [smem:[#allocation76_spill]] %s11508_s9  ;;  %s11384_s15 = smov 10  }
   0x9   :  { %13351 = sst [smem:[#allocation77_spill]] %s11513_s13  ;;  %s11385_s20 = smov 11  }
   0xa   :  { %13352 = sst [smem:[#allocation78_spill]] %s11518_s17  ;;  %s11387_s1 = smov 13  }
   0xb   :  { %13353 = sst [smem:[#allocation79_spill]] %s11523_s21  ;;  %s11388_s7 = smov 14  }
   0xc   :  { %13354 = sst [smem:[#allocation80_spill]] %s11528_s25  ;;  %s11390_s22 = smov 16  }
   0xd   :  { %s11533_s29 = sld [smem:[%s13252_s0 + %s11380_s26]]   ;;  %s11386_s26 = smov 12  }
   0xe   :  { %s11538_s3 = sld [smem:[%s13252_s0 + %s11381_s30]]   ;;  %s11391_s28 = smov 17  }
   0xf   :  { %s11543_s8 = sld [smem:[%s13252_s0 + %s11382_s4]]  }
  0x10   :  { %s11548_s14 = sld [smem:[%s13252_s0 + %s11383_s10]]  }
  0x11   :  { %s11553_s19 = sld [smem:[%s13252_s0 + %s11384_s15]]   ;;  %s11389_s15 = smov 15  }
  0x12   :  { %s11558_s24 = sld [smem:[%s13252_s0 + %s11385_s20]]  }
  0x13   :  { %13355 = sst [smem:[#allocation81_spill]] %s11533_s29 }
  0x14   :  { %13356 = sst [smem:[#allocation82_spill]] %s11538_s3 }
  0x15   :  { %13357 = sst [smem:[#allocation83_spill]] %s11543_s8 }
  0x16   :  { %13358 = sst [smem:[#allocation84_spill]] %s11548_s14 }
  0x17   :  { %13359 = sst [smem:[#allocation85_spill]] %s11553_s19 }
  0x18   :  { %13360 = sst [smem:[#allocation86_spill]] %s11558_s24 }
  0x19   :  { %s11563_s30 = sld [smem:[%s13252_s0 + %s11386_s26]]  }
  0x1a   :  { %s11568_s6 = sld [smem:[%s13252_s0 + %s11387_s1]]  }
  0x1b   :  { %s11573_s12 = sld [smem:[%s13252_s0 + %s11388_s7]]   ;;  %s11392_s7 = smov 18  }
  0x1c   :  { %s11578_s20 = sld [smem:[%s13252_s0 + %s11389_s15]]   ;;  %s11393_s15 = smov 19  }
  0x1d   :  { %s11583_s27 = sld [smem:[%s13252_s0 + %s11390_s22]]   ;;  %s11394_s22 = smov 20  }
  0x1e   :  { %s11588_s4 = sld [smem:[%s13252_s0 + %s11391_s28]]   ;;  %s11395_s28 = smov 21  }
  0x1f   :  { %13361 = sst [smem:[#allocation87_spill]] %s11563_s30 }
  0x20   :  { %13362 = sst [smem:[#allocation88_spill]] %s11568_s6 }
  0x21   :  { %13363 = sst [smem:[#allocation89_spill]] %s11573_s12 }
  0x22   :  { %13364 = sst [smem:[#allocation90_spill]] %s11578_s20 }
  0x23   :  { %13365 = sst [smem:[#allocation91_spill]] %s11583_s27 }
  0x24   :  { %13366 = sst [smem:[#allocation92_spill]] %s11588_s4 }
  0x25   :  { %s11593_s21 = sld [smem:[%s13252_s0 + %s11392_s7]]   ;;  %s11396_s7 = smov 22  }
  0x26   :  { %s11598_s20 = sld [smem:[%s13252_s0 + %s11393_s15]]   ;;  %s11397_s15 = smov 23  }
  0x27   :  { %s11603_s27 = sld [smem:[%s13252_s0 + %s11394_s22]]   ;;  %s11398_s22 = smov 24  }
  0x28   :  { %s11608_s4 = sld [smem:[%s13252_s0 + %s11395_s28]]   ;;  %s11399_s28 = smov 25  }
  0x29   :  { %s11618_s6 = sld [smem:[%s13252_s0 + %s11397_s15]]   ;;  %s11401_s15 = smov 27  }
  0x2a   :  { %s11628_s30 = sld [smem:[%s13252_s0 + %s11399_s28]]   ;;  %s11403_s28 = smov 29  }
  0x2b   :  { %13367 = sst [smem:[#allocation93_spill]] %s11593_s21 }
  0x2c   :  { %13368 = sst [smem:[#allocation94_spill]] %s11598_s20 }
  0x2d   :  { %13369 = sst [smem:[#allocation95_spill]] %s11603_s27 }
  0x2e   :  { %13370 = sst [smem:[#allocation96_spill]] %s11608_s4 }
  0x2f   :  { %s11613_s21 = sld [smem:[%s13252_s0 + %s11396_s7]]   ;;  %s11400_s7 = smov 26  }
  0x30   :  { %13372 = sst [smem:[#allocation98_spill]] %s11618_s6 }
  0x31   :  { %s11623_s27 = sld [smem:[%s13252_s0 + %s11398_s22]]   ;;  %s11402_s22 = smov 28  }
  0x32   :  { %s11638_s24 = sld [smem:[%s13252_s0 + %s11401_s15]]   ;;  %s11405_s15 = smov 31  }
  0x33   :  { %s11648_s19 = sld [smem:[%s13252_s0 + %s11403_s28]]   ;;  %s11407_s28 = smov 33  }
  0x35   :  { %13371 = sst [smem:[#allocation97_spill]] %s11613_s21 }
  0x36   :  { %s11633_s21 = sld [smem:[%s13252_s0 + %s11400_s7]]   ;;  %s11404_s7 = smov 30  }
  0x37   :  { %13373 = sst [smem:[#allocation99_spill]] %s11623_s27 }
  0x38   :  { %13375 = sst [smem:[#allocation101_spill]] %s11638_s24 }
  0x39   :  { %s11643_s27 = sld [smem:[%s13252_s0 + %s11402_s22]]   ;;  %s11406_s22 = smov 32  }
  0x3a   :  { %13376 = sst [smem:[#allocation102_spill]] %s11648_s19 }
  0x3b   :  { %s11653_s12 = sld [smem:[%s13252_s0 + %s11404_s7]]   ;;  %s11408_s7 = smov 34  }
  0x3c   :  { %13374 = sst [smem:[#allocation100_spill]] %s11633_s21 }
  0x3d   :  { %s11658_s24 = sld [smem:[%s13252_s0 + %s11405_s15]]   ;;  %s11409_s15 = smov 35  }
  0x3e   :  { %s11663_s8 = sld [smem:[%s13252_s0 + %s11406_s22]]   ;;  %s11410_s22 = smov 36  }
  0x3f   :  { %s11668_s19 = sld [smem:[%s13252_s0 + %s11407_s28]]   ;;  %s11411_s28 = smov 37  }
  0x40   :  { %s11673_s14 = sld [smem:[%s13252_s0 + %s11408_s7]]   ;;  %s11412_s7 = smov 38  }
  0x41   :  { %13377 = sst [smem:[#allocation103_spill]] %s11653_s12 }
  0x42   :  { %s11683_s29 = sld [smem:[%s13252_s0 + %s11410_s22]]   ;;  %s11414_s22 = smov 40  }
  0x43   :  { %13378 = sst [smem:[#allocation104_spill]] %s11658_s24 }
  0x44   :  { %13379 = sst [smem:[#allocation105_spill]] %s11663_s8 }
  0x45   :  { %13380 = sst [smem:[#allocation106_spill]] %s11668_s19 }
  0x46   :  { %13381 = sst [smem:[#allocation107_spill]] %s11673_s14 }
  0x47   :  { %s11678_s24 = sld [smem:[%s13252_s0 + %s11409_s15]]   ;;  %s11413_s15 = smov 39  }
  0x48   :  { %s11688_s19 = sld [smem:[%s13252_s0 + %s11411_s28]]   ;;  %s11415_s28 = smov 41  }
  0x49   :  { %s11693_s3 = sld [smem:[%s13252_s0 + %s11412_s7]]   ;;  %s11416_s7 = smov 42  }
  0x4a   :  { %s11703_s13 = sld [smem:[%s13252_s0 + %s11414_s22]]   ;;  %s11418_s22 = smov 44  }
  0x4b   :  { %s11713_s17 = sld [smem:[%s13252_s0 + %s11416_s7]]   ;;  %s11420_s7 = smov 46  }
  0x4d   :  { %13382 = sst [smem:[#allocation108_spill]] %s11678_s24 }
  0x4e   :  { %13383 = sst [smem:[#allocation109_spill]] %s11688_s19 }
  0x4f   :  { %13384 = sst [smem:[#allocation110_spill]] %s11693_s3 }
  0x50   :  { %s11698_s24 = sld [smem:[%s13252_s0 + %s11413_s15]]   ;;  %s11417_s15 = smov 43  }
  0x51   :  { %13385 = sst [smem:[#allocation111_spill]] %s11703_s13 }
  0x52   :  { %s11708_s19 = sld [smem:[%s13252_s0 + %s11415_s28]]   ;;  %s11419_s28 = smov 45  }
  0x53   :  { %13387 = sst [smem:[#allocation113_spill]] %s11713_s17 }
  0x54   :  { %s11718_s25 = sld [smem:[%s13252_s0 + %s11417_s15]]   ;;  %s11421_s15 = smov 47  }
  0x55   :  { %s11723_s13 = sld [smem:[%s13252_s0 + %s11418_s22]]   ;;  %s11422_s22 = smov 48  }
  0x56   :  { %s11728_s9 = sld [smem:[%s13252_s0 + %s11419_s28]]   ;;  %s11423_s28 = smov 49  }
  0x57   :  { %s11733_s17 = sld [smem:[%s13252_s0 + %s11420_s7]]   ;;  %s11424_s7 = smov 50  }
  0x58   :  { %13386 = sst [smem:[#allocation112_spill]] %s11708_s19 }
  0x59   :  { %s11738_s5 = sld [smem:[%s13252_s0 + %s11421_s15]]   ;;  %s11425_s15 = smov 51  }
  0x5a   :  { %s11758_s19 = sld [smem:[%s13252_s0 + %s11425_s15]]   ;;  %s11429_s15 = smov 55  }
  0x5b   :  { %13388 = sst [smem:[#allocation114_spill]] %s11723_s13 }
  0x5c   :  { %13389 = sst [smem:[#allocation115_spill]] %s11728_s9 }
  0x5d   :  { %13390 = sst [smem:[#allocation116_spill]] %s11733_s17 }
  0x5e   :  { %s11743_s13 = sld [smem:[%s13252_s0 + %s11422_s22]]   ;;  %s11426_s22 = smov 52  }
  0x5f   :  { %13391 = sst [smem:[#allocation117_spill]] %s11738_s5 }
  0x60   :  { %s11748_s9 = sld [smem:[%s13252_s0 + %s11423_s28]]   ;;  %s11427_s28 = smov 53  }
  0x61   :  { %s11753_s17 = sld [smem:[%s13252_s0 + %s11424_s7]]   ;;  %s11428_s7 = smov 54  }
  0x62   :  { %s11778_s3 = sld [smem:[%s13252_s0 + %s11429_s15]]   ;;  %s11433_s15 = smov 59  }
  0x64   :  { %13392 = sst [smem:[#allocation118_spill]] %s11743_s13 }
  0x65   :  { %s11763_s13 = sld [smem:[%s13252_s0 + %s11426_s22]]   ;;  %s11430_s22 = smov 56  }
  0x66   :  { %13393 = sst [smem:[#allocation119_spill]] %s11748_s9 }
  0x67   :  { %13394 = sst [smem:[#allocation120_spill]] %s11753_s17 }
  0x68   :  { %s11768_s9 = sld [smem:[%s13252_s0 + %s11427_s28]]   ;;  %s11431_s28 = smov 57  }
  0x69   :  { %s11773_s17 = sld [smem:[%s13252_s0 + %s11428_s7]]   ;;  %s11432_s7 = smov 58  }
  0x6a   :  { %13397 = sst [smem:[#allocation123_spill]] %s11778_s3 }
  0x6b   :  { %13395 = sst [smem:[#allocation121_spill]] %s11763_s13 }
  0x6c   :  { %s11783_s13 = sld [smem:[%s13252_s0 + %s11430_s22]]   ;;  %s11434_s22 = smov 60  }
  0x6d   :  { %s11793_s14 = sld [smem:[%s13252_s0 + %s11432_s7]]   ;;  %s11436_s7 = smov 62  }
  0x6e   :  { %13396 = sst [smem:[#allocation122_spill]] %s11768_s9 }
  0x6f   :  { %s11788_s9 = sld [smem:[%s13252_s0 + %s11431_s28]]   ;;  %s11435_s28 = smov 61  }
  0x70   :  { %s11798_s3 = sld [smem:[%s13252_s0 + %s11433_s15]]   ;;  %s11437_s15 = smov 63  }
  0x71   :  { %s11813_s12 = sld [smem:[%s13252_s0 + %s11436_s7]]   ;;  %s11440_s7 = smov 66  }
  0x72   :  { %13398 = sst [smem:[#allocation124_spill]] %s11783_s13 }
  0x73   :  { %13400 = sst [smem:[#allocation126_spill]] %s11793_s14 }
  0x74   :  { %s11803_s13 = sld [smem:[%s13252_s0 + %s11434_s22]]   ;;  %s11438_s22 = smov 64  }
  0x75   :  { %13399 = sst [smem:[#allocation125_spill]] %s11788_s9 }
  0x76   :  { %13401 = sst [smem:[#allocation127_spill]] %s11798_s3 }
  0x77   :  { %s11808_s9 = sld [smem:[%s13252_s0 + %s11435_s28]]   ;;  %s11439_s28 = smov 65  }
  0x78   :  { %13404 = sst [smem:[#allocation130_spill]] %s11813_s12 }
  0x79   :  { %s11818_s3 = sld [smem:[%s13252_s0 + %s11437_s15]]   ;;  %s11441_s15 = smov 67  }
  0x7a   :  { %13402 = sst [smem:[#allocation128_spill]] %s11803_s13 }
  0x7b   :  { %s11823_s13 = sld [smem:[%s13252_s0 + %s11438_s22]]   ;;  %s11442_s22 = smov 68  }
  0x7c   :  { %s11833_s21 = sld [smem:[%s13252_s0 + %s11440_s7]]   ;;  %s11444_s7 = smov 70  }
  0x7d   :  { %13403 = sst [smem:[#allocation129_spill]] %s11808_s9 }
  0x7e   :  { %s11828_s9 = sld [smem:[%s13252_s0 + %s11439_s28]]   ;;  %s11443_s28 = smov 69  }
  0x7f   :  { %13405 = sst [smem:[#allocation131_spill]] %s11818_s3 }
  0x80   :  { %s11838_s3 = sld [smem:[%s13252_s0 + %s11441_s15]]   ;;  %s11445_s15 = smov 71  }
  0x81   :  { %13406 = sst [smem:[#allocation132_spill]] %s11823_s13 }
  0x82   :  { %s11843_s13 = sld [smem:[%s13252_s0 + %s11442_s22]]   ;;  %s11446_s22 = smov 72  }
  0x83   :  { %s11853_s6 = sld [smem:[%s13252_s0 + %s11444_s7]]   ;;  %s11448_s7 = smov 74  }
  0x84   :  { %13407 = sst [smem:[#allocation133_spill]] %s11828_s9 }
  0x85   :  { %s11848_s9 = sld [smem:[%s13252_s0 + %s11443_s28]]   ;;  %s11447_s28 = smov 73  }
  0x86   :  { %13408 = sst [smem:[#allocation134_spill]] %s11838_s3 }
  0x87   :  { %s11858_s3 = sld [smem:[%s13252_s0 + %s11445_s15]]   ;;  %s11449_s15 = smov 75  }
  0x88   :  { %13409 = sst [smem:[#allocation135_spill]] %s11843_s13 }
  0x89   :  { %13411 = sst [smem:[#allocation137_spill]] %s11853_s6 }
  0x8a   :  { %s11863_s13 = sld [smem:[%s13252_s0 + %s11446_s22]]   ;;  %s11450_s22 = smov 76  }
  0x8b   :  { %13410 = sst [smem:[#allocation136_spill]] %s11848_s9 }
  0x8c   :  { %s11868_s20 = sld [smem:[%s13252_s0 + %s11447_s28]]   ;;  %s11451_s28 = smov 77  }
  0x8d   :  { %13412 = sst [smem:[#allocation138_spill]] %s11858_s3 }
  0x8e   :  { %s11873_s6 = sld [smem:[%s13252_s0 + %s11448_s7]]   ;;  %s11452_s7 = smov 78  }
  0x8f   :  { %s11878_s3 = sld [smem:[%s13252_s0 + %s11449_s15]]   ;;  %s11453_s15 = smov 79  }
  0x90   :  { %13413 = sst [smem:[#allocation139_spill]] %s11863_s13 }
  0x91   :  { %s11883_s13 = sld [smem:[%s13252_s0 + %s11450_s22]]   ;;  %s11454_s22 = smov 80  }
  0x92   :  { %13414 = sst [smem:[#allocation140_spill]] %s11868_s20 }
  0x93   :  { %s11888_s20 = sld [smem:[%s13252_s0 + %s11451_s28]]   ;;  %s11455_s28 = smov 81  }
  0x94   :  { %13415 = sst [smem:[#allocation141_spill]] %s11873_s6 }
  0x95   :  { %13416 = sst [smem:[#allocation142_spill]] %s11878_s3 }
  0x96   :  { %s11893_s6 = sld [smem:[%s13252_s0 + %s11452_s7]]   ;;  %s11456_s7 = smov 82  }
  0x97   :  { %13417 = sst [smem:[#allocation143_spill]] %s11883_s13 }
  0x98   :  { %s11898_s3 = sld [smem:[%s13252_s0 + %s11453_s15]]  }
  0x99   :  { %13418 = sst [smem:[#allocation144_spill]] %s11888_s20 }
  0x9a   :  { %s11903_s13 = sld [smem:[%s13252_s0 + %s11454_s22]]  }
  0x9b   :  { %s11908_s20 = sld [smem:[%s13252_s0 + %s11455_s28]]  }
  0x9c   :  { %13419 = sst [smem:[#allocation145_spill]] %s11893_s6 }
  0x9d   :  { %s11913_s6 = sld [smem:[%s13252_s0 + %s11456_s7]]  }
  0x9e   :  { %13420 = sst [smem:[#allocation146_spill]] %s11898_s3 }
  0x9f   :  { %170 = vsyncpa [#allocation3], 0 }
  0xa0   :  { %171 = vsyncpa [#allocation6], 0 }
  0xa1   :  { %172 = vsyncpa [#allocation9], 0 }
  0xa2   :  { %173 = vsyncpa [#allocation12], 0 }
  0xa3   :  { %174 = vsyncpa [#allocation15], 0 }
  0xa4   :  { %175 = vsyncpa [#allocation18], 0 }
  0xa5   :  { %176 = vsyncpa [#allocation21], 0 }
  0xa6   :  { %177 = vsyncpa [#allocation24], 0 }
  0xa7   :  { %178 = vsyncpa [#allocation27], 0 }
  0xa8   :  { %179 = vsyncpa [#allocation30], 0 }
  0xa9   :  { %180 = vsyncpa [#allocation33], 0 }
  0xaa   :  { %181 = vsyncpa [#allocation36], 0 }
  0xab   :  { %182 = vsyncpa [#allocation39], 0 }
  0xac   :  { %183 = vsyncpa [#allocation42], 0 }
  0xad   :  { %184 = vsyncpa [#allocation45], 0 }
  0xae   :  { %185 = vsyncpa [#allocation48], 0 }
  0xaf   :  { %186 = vsyncpa [#allocation51], 0 }
  0xb0   :  { %187 = vsyncpa [#allocation54], 0 }
  0xb1   :  { %188 = vsyncpa [#allocation4], 0 }
  0xb2   :  { %190 = vsyncpa [#allocation4 + $0x1], 0  ;;  %s11915_s0 = smov 0   ;;  %s11917_s15 = smov 0  }
  0xb3   :  { %s11919_s16 = smov 0   ;;  %s11921_s18 = smov 0  }
  0xb4 LB: > { %s13421_s3 = sld [smem:[#allocation146_spill]]  ;;  %s13422_s14 = sld [smem:[#allocation126_spill]]  ;;  %s11369_s16 = sphi %s11919_s16, %s13523_s16   ;;  %s11365_s15 = sphi %s11917_s15, %s13522_s15   ;;  %s11361_s0 = sphi %s11915_s0, %s13521_s0   ;;  %s11373_s18 = sphi %s11921_s18, %s13518_s18  }
  0xb5   : > { %s13423_s12 = sld [smem:[#allocation130_spill]]  ;;  %s13424_s9 = sld [smem:[#allocation136_spill]] }
  0xb6   : > { %s13425_s8 = sld [smem:[#allocation105_spill]]  ;;  %s13426_s5 = sld [smem:[#allocation117_spill]] }
  0xb7   : > { %s13427_s4 = sld [smem:[#allocation96_spill]]  ;;  %13428 = sst [smem:[#allocation147_spill]] %s11369_s16 }
  0xb8   : > { %s11936_s22 = sadd.s32 4294967295, %s11373_s18   ;;  %s8106_s23 = sadd.s32 4294967294, %s11373_s18  }
  0xb9   : > { %s11940_s26 = sadd.s32 1, %s11373_s18   ;;  %s1930_s28 = sadd.s32 1, %s11369_s16 }
  0xba   : > { %13429 = sst [smem:[#allocation148_spill]] %s11940_s26  ;;  %s1927_s1 = ssub.s32 %s11373_s18, %s11940_s26 }
  0xbb   : > { %p1940_p0 = scmp.ne.s32.totalorder %s11369_s16, %s11365_s15  ;;  %p1928_p1 = scmp.eq.s32.totalorder %s1927_s1, 0 }
  0xbc   : > { %p1941_p2 = scmp.eq.s32.totalorder %s11936_s22, 1  ;;  %p1946_p3 = scmp.ne.s32.totalorder %s11365_s15, %s11361_s0 }
  0xbd   : > { %p1947_p4 = scmp.eq.s32.totalorder %s8106_s23, 1  ;;  %p8107_p7 = scmp.ge.s32.totalorder %s11373_s18, 1 }
  0xbe   : > { %s11951_s2 = scalar_select %p1928_p1, %s11369_s16, %s1930_s28  }
  0xbf   : > { %p11953_p5 = por %p1941_p2, %p1940_p0  ;;  %p11957_p6 = por %p1947_p4, %p1946_p3 }
  0xc0   : > { %13430 = sst [smem:[#allocation149_spill]] %s11951_s2  ;;  %p1954_p8 = scmp.lt.s32.totalorder %s11373_s18, 3 }
  0xc1   : > { %s13431_s7 = scalar_select %p11953_p5, 1, 0 }
  0xc2   : > { %s13432_s10 = scalar_select %p11957_p6, 1, 0 }
  0xc3   : > { %p11963_p9 = pnand %p8107_p7, %p1954_p8 }
  0xc4   : > { %13433 = sst [smem:[#allocation150_spill]] %s13432_s10  ;;  %p10115_p10 = scmp.eq.s32.totalorder (!%p11963_p9), %s11936_s22, 0 }
  0xc5   : > { %1958 = sbr.rel (%p11963_p9) target bundleno = 1017 (0x3f9), region = 12  ;;  %s11457_s23 = smov (!%p11963_p9), [#allocation5]  }
  0xc6   : > { %s2035_s28 = sshll.u32 (!%p11963_p9), %s11457_s23, 4  ;;  %s11458_s1 = smov (!%p11963_p9), [#allocation8]   ;;  %s2036_s28 = int_to_ptr.vmem [resolvable:$true] %s2035_s28 }
  0xc7   : > { %s2063_s2 = sshll.u32 (!%p11963_p9), %s11458_s1, 4  ;;  %s10355_s16 = scalar_lea.hbm (!%p11963_p9), %s13427_s4, 16  ;;  %s2064_s2 = int_to_ptr.vmem [resolvable:$true] %s2063_s2 }
  0xc8   : > { %p10356_p11 = scmp.ne.s32.totalorder (!%p11963_p9), %s13427_s4, %s10355_s16  ;;  %p10361_p0 = scmp.lt.u32.totalorder (!%p11963_p9), %s10355_s16, %s13427_s4 }
  0xca   : > { %p10357_p12 = pnand (!%p11963_p9), %p10356_p11, %p10115_p10 }
  0xcc   : > { %p10358_p13 = pneg %p10357_p12 }
  0xce   : > { %p10363_p1 = pnand %p10361_p0, %p10358_p13 }
  0xd0   : > { %10366 = shalt.err (!%p10363_p1)
}
  0xd1   : > { %s10367_s26 = scalar_lea.vmem %s2036_s28, 16  ;;  %s10373_s10 = scalar_lea.vmem %s2036_s28, 32 }
  0xd2   : > { %p10368_p2 = scmp.ne.s32.totalorder %s2036_s28, %s10367_s26  ;;  %p10374_p7 = scmp.lt.s32.totalorder %s2036_s28, %s2036_s28 }
  0xd3   : > { %p10375_p8 = scmp.lt.s32.totalorder %s10373_s10, %s10367_s26 }
  0xd4   : > { %p10369_p3 = pnand %p10368_p2, %p10115_p10 }
  0xd5   : > { %p10376_p6 = por %p10375_p8, %p10374_p7 }
  0xd6   : > { %p10370_p4 = pneg %p10369_p3 }
  0xd8   : > { %p10377_p5 = pnand %p10376_p6, %p10370_p4 }
  0xda   : > { %10380 = shalt.err (!%p10377_p5)
}
  0xdb   : > { %9976 = dma.hbm_to_vmem [thread:$0]  (%p10115_p10), %s13427_s4, 16, %s2036_s28, [#allocation6]  }
  0xdc   : > { %s10381_s16 = scalar_lea.hbm %s11628_s30, 16 }
  0xdd   : > { %p10382_p11 = scmp.ne.s32.totalorder %s11628_s30, %s10381_s16  ;;  %p10387_p0 = scmp.lt.u32.totalorder %s10381_s16, %s11628_s30 }
  0xdf   : > { %p10383_p12 = pnand %p10382_p11, %p10115_p10 }
  0xe1   : > { %p10384_p13 = pneg %p10383_p12 }
  0xe3   : > { %p10389_p1 = pnand %p10387_p0, %p10384_p13 }
  0xe5   : > { %10392 = shalt.err (!%p10389_p1)
}
  0xe6   : > { %s10393_s26 = scalar_lea.vmem %s2064_s2, 16  ;;  %s10399_s10 = scalar_lea.vmem %s2064_s2, 32 }
  0xe7   : > { %p10394_p5 = scmp.ne.s32.totalorder %s2064_s2, %s10393_s26  ;;  %p10400_p3 = scmp.lt.s32.totalorder %s2064_s2, %s2064_s2 }
  0xe8   : > { %p10401_p4 = scmp.lt.s32.totalorder %s10399_s10, %s10393_s26 }
  0xe9   : > { %p10395_p6 = pnand %p10394_p5, %p10115_p10 }
  0xea   : > { %p10402_p7 = por %p10401_p4, %p10400_p3 }
  0xeb   : > { %p10396_p2 = pneg %p10395_p6 }
  0xed   : > { %p10403_p8 = pnand %p10402_p7, %p10396_p2 }
  0xef   : > { %10406 = shalt.err (!%p10403_p8)
}
  0xf0   : > { %9980 = dma.hbm_to_vmem [thread:$0]  (%p10115_p10), %s11628_s30, 16, %s2064_s2, [#allocation9]  }
  0xf1   : > { %s11459_s23 = smov [#allocation11]   ;;  %s11460_s1 = smov [#allocation14]  }
  0xf2   : > { %s2088_s28 = sshll.u32 %s11459_s23, 4  ;;  %s2116_s16 = sshll.u32 %s11460_s1, 4  ;;  %s2089_s28 = int_to_ptr.vmem [resolvable:$true] %s2088_s28  ;;  %s2117_s16 = int_to_ptr.vmem [resolvable:$true] %s2116_s16 }
  0xf3   : > { %s10407_s4 = scalar_lea.hbm %s11643_s27, 16 }
  0xf4   : > { %p10408_p11 = scmp.ne.s32.totalorder %s11643_s27, %s10407_s4  ;;  %p10413_p0 = scmp.lt.u32.totalorder %s10407_s4, %s11643_s27 }
  0xf6   : > { %p10409_p12 = pnand %p10408_p11, %p10115_p10 }
  0xf8   : > { %p10410_p13 = pneg %p10409_p12 }
  0xfa   : > { %p10415_p1 = pnand %p10413_p0, %p10410_p13 }
  0xfc   : > { %10418 = shalt.err (!%p10415_p1)
}
  0xfd   : > { %s10419_s26 = scalar_lea.vmem %s2089_s28, 16  ;;  %s10425_s2 = scalar_lea.vmem %s2089_s28, 32 }
  0xfe   : > { %p10420_p5 = scmp.ne.s32.totalorder %s2089_s28, %s10419_s26  ;;  %p10426_p3 = scmp.lt.s32.totalorder %s2089_s28, %s2089_s28 }
  0xff   : > { %p10427_p4 = scmp.lt.s32.totalorder %s10425_s2, %s10419_s26 }
 0x100   : > { %p10421_p6 = pnand %p10420_p5, %p10115_p10 }
 0x101   : > { %p10428_p7 = por %p10427_p4, %p10426_p3 }
 0x102   : > { %p10422_p2 = pneg %p10421_p6 }
 0x104   : > { %p10429_p8 = pnand %p10428_p7, %p10422_p2 }
 0x106   : > { %10432 = shalt.err (!%p10429_p8)
}
 0x107   : > { %9984 = dma.hbm_to_vmem [thread:$0]  (%p10115_p10), %s11643_s27, 16, %s2089_s28, [#allocation12]  }
 0x108   : > { %s10433_s4 = scalar_lea.hbm %s13425_s8, 16 }
 0x109   : > { %p10434_p11 = scmp.ne.s32.totalorder %s13425_s8, %s10433_s4  ;;  %p10439_p0 = scmp.lt.u32.totalorder %s10433_s4, %s13425_s8 }
 0x10b   : > { %p10435_p12 = pnand %p10434_p11, %p10115_p10 }
 0x10d   : > { %p10436_p13 = pneg %p10435_p12 }
 0x10f   : > { %p10441_p1 = pnand %p10439_p0, %p10436_p13 }
 0x111   : > { %10444 = shalt.err (!%p10441_p1)
}
 0x112   : > { %s10445_s10 = scalar_lea.vmem %s2117_s16, 16  ;;  %s10451_s23 = scalar_lea.vmem %s2117_s16, 32 }
 0x113   : > { %p10446_p5 = scmp.ne.s32.totalorder %s2117_s16, %s10445_s10  ;;  %p10452_p3 = scmp.lt.s32.totalorder %s2117_s16, %s2117_s16 }
 0x114   : > { %p10453_p4 = scmp.lt.s32.totalorder %s10451_s23, %s10445_s10 }
 0x115   : > { %p10447_p6 = pnand %p10446_p5, %p10115_p10 }
 0x116   : > { %p10454_p7 = por %p10453_p4, %p10452_p3 }
 0x117   : > { %p10448_p2 = pneg %p10447_p6 }
 0x119   : > { %p10455_p8 = pnand %p10454_p7, %p10448_p2 }
 0x11b   : > { %10458 = shalt.err (!%p10455_p8)
}
 0x11c   : > { %9988 = dma.hbm_to_vmem [thread:$0]  (%p10115_p10), %s13425_s8, 16, %s2117_s16, [#allocation15]  }
 0x11d   : > { %s11461_s28 = smov [#allocation17]   ;;  %s11462_s26 = smov [#allocation20]  }
 0x11e   : > { %s2144_s1 = sshll.u32 %s11461_s28, 4  ;;  %s2169_s2 = sshll.u32 %s11462_s26, 4  ;;  %s2145_s1 = int_to_ptr.vmem [resolvable:$true] %s2144_s1  ;;  %s2170_s2 = int_to_ptr.vmem [resolvable:$true] %s2169_s2 }
 0x11f   : > { %s10459_s4 = scalar_lea.hbm %s11683_s29, 16 }
 0x120   : > { %p10460_p11 = scmp.ne.s32.totalorder %s11683_s29, %s10459_s4  ;;  %p10465_p0 = scmp.lt.u32.totalorder %s10459_s4, %s11683_s29 }
 0x122   : > { %p10461_p12 = pnand %p10460_p11, %p10115_p10 }
 0x124   : > { %p10462_p13 = pneg %p10461_p12 }
 0x126   : > { %p10467_p1 = pnand %p10465_p0, %p10462_p13 }
 0x128   : > { %10470 = shalt.err (!%p10467_p1)
}
 0x129   : > { %s10471_s10 = scalar_lea.vmem %s2145_s1, 16  ;;  %s10477_s16 = scalar_lea.vmem %s2145_s1, 32 }
 0x12a   : > { %p10472_p5 = scmp.ne.s32.totalorder %s2145_s1, %s10471_s10  ;;  %p10478_p3 = scmp.lt.s32.totalorder %s2145_s1, %s2145_s1 }
 0x12b   : > { %p10479_p4 = scmp.lt.s32.totalorder %s10477_s16, %s10471_s10 }
 0x12c   : > { %p10473_p6 = pnand %p10472_p5, %p10115_p10 }
 0x12d   : > { %p10480_p7 = por %p10479_p4, %p10478_p3 }
 0x12e   : > { %p10474_p2 = pneg %p10473_p6 }
 0x130   : > { %p10481_p8 = pnand %p10480_p7, %p10474_p2 }
 0x132   : > { %10484 = shalt.err (!%p10481_p8)
}
 0x133   : > { %9992 = dma.hbm_to_vmem [thread:$0]  (%p10115_p10), %s11683_s29, 16, %s2145_s1, [#allocation18]  }
 0x134   : > { %s10485_s23 = scalar_lea.hbm %s11698_s24, 16 }
 0x135   : > { %p10486_p11 = scmp.ne.s32.totalorder %s11698_s24, %s10485_s23  ;;  %p10491_p0 = scmp.lt.u32.totalorder %s10485_s23, %s11698_s24 }
 0x137   : > { %p10487_p12 = pnand %p10486_p11, %p10115_p10 }
 0x139   : > { %p10488_p13 = pneg %p10487_p12 }
 0x13b   : > { %p10493_p1 = pnand %p10491_p0, %p10488_p13 }
 0x13d   : > { %10496 = shalt.err (!%p10493_p1)
}
 0x13e   : > { %s10497_s28 = scalar_lea.vmem %s2170_s2, 16  ;;  %s10503_s26 = scalar_lea.vmem %s2170_s2, 32 }
 0x13f   : > { %p10498_p5 = scmp.ne.s32.totalorder %s2170_s2, %s10497_s28  ;;  %p10504_p3 = scmp.lt.s32.totalorder %s2170_s2, %s2170_s2 }
 0x140   : > { %p10505_p4 = scmp.lt.s32.totalorder %s10503_s26, %s10497_s28 }
 0x141   : > { %p10499_p6 = pnand %p10498_p5, %p10115_p10 }
 0x142   : > { %p10506_p7 = por %p10505_p4, %p10504_p3 }
 0x143   : > { %p10500_p2 = pneg %p10499_p6 }
 0x145   : > { %p10507_p8 = pnand %p10506_p7, %p10500_p2 }
 0x147   : > { %10510 = shalt.err (!%p10507_p8)
}
 0x148   : > { %9996 = dma.hbm_to_vmem [thread:$0]  (%p10115_p10), %s11698_s24, 16, %s2170_s2, [#allocation21]  }
 0x149   : > { %s11463_s1 = smov [#allocation23]   ;;  %s11464_s10 = smov [#allocation26]  }
 0x14a   : > { %s2197_s4 = sshll.u32 %s11463_s1, 4  ;;  %s2225_s16 = sshll.u32 %s11464_s10, 4  ;;  %s2198_s4 = int_to_ptr.vmem [resolvable:$true] %s2197_s4  ;;  %s2226_s16 = int_to_ptr.vmem [resolvable:$true] %s2225_s16 }
 0x14b   : > { %s10511_s23 = scalar_lea.hbm %s11718_s25, 16 }
 0x14c   : > { %p10512_p11 = scmp.ne.s32.totalorder %s11718_s25, %s10511_s23  ;;  %p10517_p0 = scmp.lt.u32.totalorder %s10511_s23, %s11718_s25 }
 0x14e   : > { %p10513_p12 = pnand %p10512_p11, %p10115_p10 }
 0x150   : > { %p10514_p13 = pneg %p10513_p12 }
 0x152   : > { %p10519_p1 = pnand %p10517_p0, %p10514_p13 }
 0x154   : > { %10522 = shalt.err (!%p10519_p1)
}
 0x155   : > { %s10523_s28 = scalar_lea.vmem %s2198_s4, 16  ;;  %s10529_s2 = scalar_lea.vmem %s2198_s4, 32 }
 0x156   : > { %p10524_p5 = scmp.ne.s32.totalorder %s2198_s4, %s10523_s28  ;;  %p10530_p3 = scmp.lt.s32.totalorder %s2198_s4, %s2198_s4 }
 0x157   : > { %p10531_p4 = scmp.lt.s32.totalorder %s10529_s2, %s10523_s28 }
 0x158   : > { %p10525_p6 = pnand %p10524_p5, %p10115_p10 }
 0x159   : > { %p10532_p7 = por %p10531_p4, %p10530_p3 }
 0x15a   : > { %p10526_p2 = pneg %p10525_p6 }
 0x15c   : > { %p10533_p8 = pnand %p10532_p7, %p10526_p2 }
 0x15e   : > { %10536 = shalt.err (!%p10533_p8)
}
 0x15f   : > { %10000 = dma.hbm_to_vmem [thread:$0]  (%p10115_p10), %s11718_s25, 16, %s2198_s4, [#allocation24]  }
 0x160   : > { %s10537_s26 = scalar_lea.hbm %s13426_s5, 16 }
 0x161   : > { %p10538_p11 = scmp.ne.s32.totalorder %s13426_s5, %s10537_s26  ;;  %p10543_p0 = scmp.lt.u32.totalorder %s10537_s26, %s13426_s5 }
 0x163   : > { %p10539_p12 = pnand %p10538_p11, %p10115_p10 }
 0x165   : > { %p10540_p13 = pneg %p10539_p12 }
 0x167   : > { %p10545_p1 = pnand %p10543_p0, %p10540_p13 }
 0x169   : > { %10548 = shalt.err (!%p10545_p1)
}
 0x16a   : > { %s10549_s1 = scalar_lea.vmem %s2226_s16, 16  ;;  %s10555_s10 = scalar_lea.vmem %s2226_s16, 32 }
 0x16b   : > { %p10550_p5 = scmp.ne.s32.totalorder %s2226_s16, %s10549_s1  ;;  %p10556_p3 = scmp.lt.s32.totalorder %s2226_s16, %s2226_s16 }
 0x16c   : > { %p10557_p4 = scmp.lt.s32.totalorder %s10555_s10, %s10549_s1 }
 0x16d   : > { %p10551_p6 = pnand %p10550_p5, %p10115_p10 }
 0x16e   : > { %p10558_p7 = por %p10557_p4, %p10556_p3 }
 0x16f   : > { %p10552_p2 = pneg %p10551_p6 }
 0x171   : > { %p10559_p8 = pnand %p10558_p7, %p10552_p2 }
 0x173   : > { %10562 = shalt.err (!%p10559_p8)
}
 0x174   : > { %10004 = dma.hbm_to_vmem [thread:$0]  (%p10115_p10), %s13426_s5, 16, %s2226_s16, [#allocation27]  }
 0x175   : > { %s11465_s4 = smov [#allocation29]   ;;  %s11466_s28 = smov [#allocation32]  }
 0x176   : > { %s2253_s23 = sshll.u32 %s11465_s4, 4  ;;  %s2278_s2 = sshll.u32 %s11466_s28, 4  ;;  %s2254_s23 = int_to_ptr.vmem [resolvable:$true] %s2253_s23  ;;  %s2279_s2 = int_to_ptr.vmem [resolvable:$true] %s2278_s2 }
 0x177   : > { %s10563_s26 = scalar_lea.hbm %s11758_s19, 16 }
 0x178   : > { %p10564_p11 = scmp.ne.s32.totalorder %s11758_s19, %s10563_s26  ;;  %p10569_p0 = scmp.lt.u32.totalorder %s10563_s26, %s11758_s19 }
 0x17a   : > { %p10565_p12 = pnand %p10564_p11, %p10115_p10 }
 0x17c   : > { %p10566_p13 = pneg %p10565_p12 }
 0x17e   : > { %p10571_p1 = pnand %p10569_p0, %p10566_p13 }
 0x180   : > { %10574 = shalt.err (!%p10571_p1)
}
 0x181   : > { %s10575_s1 = scalar_lea.vmem %s2254_s23, 16  ;;  %s10581_s16 = scalar_lea.vmem %s2254_s23, 32 }
 0x182   : > { %p10576_p5 = scmp.ne.s32.totalorder %s2254_s23, %s10575_s1  ;;  %p10582_p3 = scmp.lt.s32.totalorder %s2254_s23, %s2254_s23 }
 0x183   : > { %p10583_p4 = scmp.lt.s32.totalorder %s10581_s16, %s10575_s1 }
 0x184   : > { %p10577_p6 = pnand %p10576_p5, %p10115_p10 }
 0x185   : > { %p10584_p7 = por %p10583_p4, %p10582_p3 }
 0x186   : > { %p10578_p2 = pneg %p10577_p6 }
 0x188   : > { %p10585_p8 = pnand %p10584_p7, %p10578_p2 }
 0x18a   : > { %10588 = shalt.err (!%p10585_p8)
}
 0x18b   : > { %10008 = dma.hbm_to_vmem [thread:$0]  (%p10115_p10), %s11758_s19, 16, %s2254_s23, [#allocation30]  }
 0x18c   : > { %s10589_s10 = scalar_lea.hbm %s11773_s17, 16 }
 0x18d   : > { %p10590_p11 = scmp.ne.s32.totalorder %s11773_s17, %s10589_s10  ;;  %p10595_p0 = scmp.lt.u32.totalorder %s10589_s10, %s11773_s17 }
 0x18f   : > { %p10591_p12 = pnand %p10590_p11, %p10115_p10 }
 0x191   : > { %p10592_p13 = pneg %p10591_p12 }
 0x193   : > { %p10597_p1 = pnand %p10595_p0, %p10592_p13 }
 0x195   : > { %10600 = shalt.err (!%p10597_p1)
}
 0x196   : > { %s10601_s4 = scalar_lea.vmem %s2279_s2, 16  ;;  %s10607_s28 = scalar_lea.vmem %s2279_s2, 32 }
 0x197   : > { %p10602_p5 = scmp.ne.s32.totalorder %s2279_s2, %s10601_s4  ;;  %p10608_p3 = scmp.lt.s32.totalorder %s2279_s2, %s2279_s2 }
 0x198   : > { %p10609_p4 = scmp.lt.s32.totalorder %s10607_s28, %s10601_s4 }
 0x199   : > { %p10603_p6 = pnand %p10602_p5, %p10115_p10 }
 0x19a   : > { %p10610_p7 = por %p10609_p4, %p10608_p3 }
 0x19b   : > { %p10604_p2 = pneg %p10603_p6 }
 0x19d   : > { %p10611_p8 = pnand %p10610_p7, %p10604_p2 }
 0x19f   : > { %10614 = shalt.err (!%p10611_p8)
}
 0x1a0   : > { %10012 = dma.hbm_to_vmem [thread:$0]  (%p10115_p10), %s11773_s17, 16, %s2279_s2, [#allocation33]  }
 0x1a1   : > { %s11467_s23 = smov [#allocation35]   ;;  %s11468_s1 = smov [#allocation38]  }
 0x1a2   : > { %s2306_s26 = sshll.u32 %s11467_s23, 4  ;;  %s2334_s16 = sshll.u32 %s11468_s1, 4  ;;  %s2307_s26 = int_to_ptr.vmem [resolvable:$true] %s2306_s26  ;;  %s2335_s16 = int_to_ptr.vmem [resolvable:$true] %s2334_s16 }
 0x1a3   : > { %s10615_s10 = scalar_lea.hbm %s13422_s14, 16 }
 0x1a4   : > { %p10616_p11 = scmp.ne.s32.totalorder %s13422_s14, %s10615_s10  ;;  %p10621_p0 = scmp.lt.u32.totalorder %s10615_s10, %s13422_s14 }
 0x1a6   : > { %p10617_p12 = pnand %p10616_p11, %p10115_p10 }
 0x1a8   : > { %p10618_p13 = pneg %p10617_p12 }
 0x1aa   : > { %p10623_p1 = pnand %p10621_p0, %p10618_p13 }
 0x1ac   : > { %10626 = shalt.err (!%p10623_p1)
}
 0x1ad   : > { %s10627_s4 = scalar_lea.vmem %s2307_s26, 16  ;;  %s10633_s2 = scalar_lea.vmem %s2307_s26, 32 }
 0x1ae   : > { %p10628_p5 = scmp.ne.s32.totalorder %s2307_s26, %s10627_s4  ;;  %p10634_p3 = scmp.lt.s32.totalorder %s2307_s26, %s2307_s26 }
 0x1af   : > { %p10635_p4 = scmp.lt.s32.totalorder %s10633_s2, %s10627_s4 }
 0x1b0   : > { %p10629_p6 = pnand %p10628_p5, %p10115_p10 }
 0x1b1   : > { %p10636_p7 = por %p10635_p4, %p10634_p3 }
 0x1b2   : > { %p10630_p2 = pneg %p10629_p6 }
 0x1b4   : > { %p10637_p8 = pnand %p10636_p7, %p10630_p2 }
 0x1b6   : > { %10640 = shalt.err (!%p10637_p8)
}
 0x1b7   : > { %10016 = dma.hbm_to_vmem [thread:$0]  (%p10115_p10), %s13422_s14, 16, %s2307_s26, [#allocation36]  }
 0x1b8   : > { %s10641_s28 = scalar_lea.hbm %s13423_s12, 16 }
 0x1b9   : > { %p10642_p11 = scmp.ne.s32.totalorder %s13423_s12, %s10641_s28  ;;  %p10647_p0 = scmp.lt.u32.totalorder %s10641_s28, %s13423_s12 }
 0x1bb   : > { %p10643_p12 = pnand %p10642_p11, %p10115_p10 }
 0x1bd   : > { %p10644_p13 = pneg %p10643_p12 }
 0x1bf   : > { %p10649_p1 = pnand %p10647_p0, %p10644_p13 }
 0x1c1   : > { %10652 = shalt.err (!%p10649_p1)
}
 0x1c2   : > { %s10653_s23 = scalar_lea.vmem %s2335_s16, 16  ;;  %s10659_s1 = scalar_lea.vmem %s2335_s16, 32 }
 0x1c3   : > { %p10654_p5 = scmp.ne.s32.totalorder %s2335_s16, %s10653_s23  ;;  %p10660_p3 = scmp.lt.s32.totalorder %s2335_s16, %s2335_s16 }
 0x1c4   : > { %p10661_p4 = scmp.lt.s32.totalorder %s10659_s1, %s10653_s23 }
 0x1c5   : > { %p10655_p6 = pnand %p10654_p5, %p10115_p10 }
 0x1c6   : > { %p10662_p7 = por %p10661_p4, %p10660_p3 }
 0x1c7   : > { %p10656_p2 = pneg %p10655_p6 }
 0x1c9   : > { %p10663_p8 = pnand %p10662_p7, %p10656_p2 }
 0x1cb   : > { %10666 = shalt.err (!%p10663_p8)
}
 0x1cc   : > { %10020 = dma.hbm_to_vmem [thread:$0]  (%p10115_p10), %s13423_s12, 16, %s2335_s16, [#allocation39]  }
 0x1cd   : > { %s11469_s26 = smov [#allocation41]   ;;  %s11470_s4 = smov [#allocation44]  }
 0x1ce   : > { %s2362_s10 = sshll.u32 %s11469_s26, 4  ;;  %s2387_s2 = sshll.u32 %s11470_s4, 4  ;;  %s2363_s10 = int_to_ptr.vmem [resolvable:$true] %s2362_s10  ;;  %s2388_s2 = int_to_ptr.vmem [resolvable:$true] %s2387_s2 }
 0x1cf   : > { %s10667_s28 = scalar_lea.hbm %s11833_s21, 16 }
 0x1d0   : > { %p10668_p11 = scmp.ne.s32.totalorder %s11833_s21, %s10667_s28  ;;  %p10673_p0 = scmp.lt.u32.totalorder %s10667_s28, %s11833_s21 }
 0x1d2   : > { %p10669_p12 = pnand %p10668_p11, %p10115_p10 }
 0x1d4   : > { %p10670_p13 = pneg %p10669_p12 }
 0x1d6   : > { %p10675_p1 = pnand %p10673_p0, %p10670_p13 }
 0x1d8   : > { %10678 = shalt.err (!%p10675_p1)
}
 0x1d9   : > { %s10679_s23 = scalar_lea.vmem %s2363_s10, 16  ;;  %s10685_s16 = scalar_lea.vmem %s2363_s10, 32 }
 0x1da   : > { %p10680_p5 = scmp.ne.s32.totalorder %s2363_s10, %s10679_s23  ;;  %p10686_p3 = scmp.lt.s32.totalorder %s2363_s10, %s2363_s10 }
 0x1db   : > { %p10687_p4 = scmp.lt.s32.totalorder %s10685_s16, %s10679_s23 }
 0x1dc   : > { %p10681_p6 = pnand %p10680_p5, %p10115_p10 }
 0x1dd   : > { %p10688_p7 = por %p10687_p4, %p10686_p3 }
 0x1de   : > { %p10682_p2 = pneg %p10681_p6 }
 0x1e0   : > { %p10689_p8 = pnand %p10688_p7, %p10682_p2 }
 0x1e2   : > { %10692 = shalt.err (!%p10689_p8)
}
 0x1e3   : > { %10024 = dma.hbm_to_vmem [thread:$0]  (%p10115_p10), %s11833_s21, 16, %s2363_s10, [#allocation42]  }
 0x1e4   : > { %s10693_s1 = scalar_lea.hbm %s13424_s9, 16 }
 0x1e5   : > { %p10694_p11 = scmp.ne.s32.totalorder %s13424_s9, %s10693_s1  ;;  %p10699_p0 = scmp.lt.u32.totalorder %s10693_s1, %s13424_s9 }
 0x1e7   : > { %p10695_p12 = pnand %p10694_p11, %p10115_p10 }
 0x1e9   : > { %p10696_p13 = pneg %p10695_p12 }
 0x1eb   : > { %p10701_p1 = pnand %p10699_p0, %p10696_p13 }
 0x1ed   : > { %10704 = shalt.err (!%p10701_p1)
}
 0x1ee   : > { %s10705_s26 = scalar_lea.vmem %s2388_s2, 16  ;;  %s10711_s4 = scalar_lea.vmem %s2388_s2, 32 }
 0x1ef   : > { %p10706_p5 = scmp.ne.s32.totalorder %s2388_s2, %s10705_s26  ;;  %p10712_p3 = scmp.lt.s32.totalorder %s2388_s2, %s2388_s2 }
 0x1f0   : > { %p10713_p4 = scmp.lt.s32.totalorder %s10711_s4, %s10705_s26 }
 0x1f1   : > { %p10707_p6 = pnand %p10706_p5, %p10115_p10 }
 0x1f2   : > { %p10714_p7 = por %p10713_p4, %p10712_p3 }
 0x1f3   : > { %p10708_p2 = pneg %p10707_p6 }
 0x1f5   : > { %p10715_p8 = pnand %p10714_p7, %p10708_p2 }
 0x1f7   : > { %10718 = shalt.err (!%p10715_p8)
}
 0x1f8   : > { %s13435_s10 = sld [smem:[#allocation140_spill]]  ;;  %s11471_s28 = smov [#allocation47]  }
 0x1f9   : > { %10028 = dma.hbm_to_vmem [thread:$0]  (%p10115_p10), %s13424_s9, 16, %s2388_s2, [#allocation45]  }
 0x1fa   : > { %s2415_s23 = sshll.u32 %s11471_s28, 4  ;;  %s11472_s16 = smov [#allocation50]   ;;  %s2416_s23 = int_to_ptr.vmem [resolvable:$true] %s2415_s23 }
 0x1fb   : > { %s2443_s1 = sshll.u32 %s11472_s16, 4  ;;  %s2444_s1 = int_to_ptr.vmem [resolvable:$true] %s2443_s1 }
 0x1fe   : > { %s10719_s5 = scalar_lea.hbm %s13435_s10, 16 }
 0x1ff   : > { %p10720_p11 = scmp.ne.s32.totalorder %s13435_s10, %s10719_s5  ;;  %p10725_p0 = scmp.lt.u32.totalorder %s10719_s5, %s13435_s10 }
 0x201   : > { %p10721_p12 = pnand %p10720_p11, %p10115_p10 }
 0x203   : > { %p10722_p13 = pneg %p10721_p12 }
 0x205   : > { %p10727_p1 = pnand %p10725_p0, %p10722_p13 }
 0x207   : > { %10730 = shalt.err (!%p10727_p1)
}
 0x208   : > { %s10731_s26 = scalar_lea.vmem %s2416_s23, 16  ;;  %s10737_s2 = scalar_lea.vmem %s2416_s23, 32 }
 0x209   : > { %p10732_p5 = scmp.ne.s32.totalorder %s2416_s23, %s10731_s26  ;;  %p10738_p3 = scmp.lt.s32.totalorder %s2416_s23, %s2416_s23 }
 0x20a   : > { %p10739_p4 = scmp.lt.s32.totalorder %s10737_s2, %s10731_s26 }
 0x20b   : > { %p10733_p6 = pnand %p10732_p5, %p10115_p10 }
 0x20c   : > { %p10740_p7 = por %p10739_p4, %p10738_p3 }
 0x20d   : > { %p10734_p2 = pneg %p10733_p6 }
 0x20f   : > { %p10741_p8 = pnand %p10740_p7, %p10734_p2 }
 0x211   : > { %10744 = shalt.err (!%p10741_p8)
}
 0x212   : > { %s13436_s4 = sld [smem:[#allocation144_spill]] }
 0x213   : > { %10032 = dma.hbm_to_vmem [thread:$0]  (%p10115_p10), %s13435_s10, 16, %s2416_s23, [#allocation48]  }
 0x218   : > { %s10745_s5 = scalar_lea.hbm %s13436_s4, 16 }
 0x219   : > { %p10746_p11 = scmp.ne.s32.totalorder %s13436_s4, %s10745_s5  ;;  %p10751_p0 = scmp.lt.u32.totalorder %s10745_s5, %s13436_s4 }
 0x21b   : > { %p10747_p12 = pnand %p10746_p11, %p10115_p10 }
 0x21d   : > { %p10748_p13 = pneg %p10747_p12 }
 0x21f   : > { %p10753_p1 = pnand %p10751_p0, %p10748_p13 }
 0x221   : > { %10756 = shalt.err (!%p10753_p1)
}
 0x222   : > { %s10757_s28 = scalar_lea.vmem %s2444_s1, 16  ;;  %s10763_s16 = scalar_lea.vmem %s2444_s1, 32 }
 0x223   : > { %p10758_p5 = scmp.ne.s32.totalorder %s2444_s1, %s10757_s28  ;;  %p10764_p3 = scmp.lt.s32.totalorder %s2444_s1, %s2444_s1 }
 0x224   : > { %p10765_p4 = scmp.lt.s32.totalorder %s10763_s16, %s10757_s28 }
 0x225   : > { %p10759_p6 = pnand %p10758_p5, %p10115_p10 }
 0x226   : > { %p10766_p7 = por %p10765_p4, %p10764_p3 }
 0x227   : > { %p10760_p2 = pneg %p10759_p6 }
 0x229   : > { %p10767_p8 = pnand %p10766_p7, %p10760_p2 }
 0x22b   : > { %10770 = shalt.err (!%p10767_p8)
}
 0x22c   : > { %s13437_s23 = sld [smem:[#allocation94_spill]]  ;;  %s11473_s26 = smov [#allocation2]  }
 0x22d   : > { %10036 = dma.hbm_to_vmem [thread:$0]  (%p10115_p10), %s13436_s4, 16, %s2444_s1, [#allocation51]  }
 0x22e   : > { %s2021_s2 = sshll.u32 %s11473_s26, 4  ;;  %s11474_s5 = smov [#allocation7]   ;;  %s2022_s2 = int_to_ptr.vmem [resolvable:$true] %s2021_s2 }
 0x22f   : > { %s2049_s8 = sshll.u32 %s11474_s5, 4  ;;  %s12130_s8 = int_to_ptr.vmem [resolvable:$true] %s2049_s8 }
 0x232   : > { %s10771_s9 = scalar_lea.hbm %s13437_s23, 16 }
 0x233   : > { %p10772_p11 = scmp.ne.s32.totalorder %s13437_s23, %s10771_s9  ;;  %p10777_p0 = scmp.lt.u32.totalorder %s10771_s9, %s13437_s23 }
 0x235   : > { %p10773_p12 = pnand %p10772_p11, %p10115_p10 }
 0x237   : > { %p10774_p13 = pneg %p10773_p12 }
 0x239   : > { %p10779_p1 = pnand %p10777_p0, %p10774_p13 }
 0x23b   : > { %10782 = shalt.err (!%p10779_p1)
}
 0x23c   : > { %s10783_s28 = scalar_lea.vmem %s2022_s2, 16  ;;  %s10789_s1 = scalar_lea.vmem %s2022_s2, 32 }
 0x23d   : > { %p10784_p5 = scmp.ne.s32.totalorder %s2022_s2, %s10783_s28  ;;  %p10790_p3 = scmp.lt.s32.totalorder %s2022_s2, %s2022_s2 }
 0x23e   : > { %p10791_p4 = scmp.lt.s32.totalorder %s10789_s1, %s10783_s28 }
 0x23f   : > { %p10785_p6 = pnand %p10784_p5, %p10115_p10 }
 0x240   : > { %p10792_p7 = por %p10791_p4, %p10790_p3 }
 0x241   : > { %p10786_p2 = pneg %p10785_p6 }
 0x243   : > { %p10793_p8 = pnand %p10792_p7, %p10786_p2 }
 0x245   : > { %10796 = shalt.err (!%p10793_p8)
}
 0x246   : > { %s13438_s16 = sld [smem:[#allocation98_spill]] }
 0x247   : > { %9974 = dma.hbm_to_vmem [thread:$0]  (%p10115_p10), %s13437_s23, 16, %s2022_s2, [#allocation3]  }
 0x24c   : > { %s13439_s26 = smov %s13438_s16  ;;  %s10797_s9 = scalar_lea.hbm %s13438_s16, 16 }
 0x24d   : > { %p10798_p11 = scmp.ne.s32.totalorder %s13439_s26, %s10797_s9  ;;  %p10803_p0 = scmp.lt.u32.totalorder %s10797_s9, %s13439_s26 }
 0x24f   : > { %p10799_p12 = pnand %p10798_p11, %p10115_p10 }
 0x251   : > { %p10800_p13 = pneg %p10799_p12 }
 0x253   : > { %p10805_p1 = pnand %p10803_p0, %p10800_p13 }
 0x255   : > { %10808 = shalt.err (!%p10805_p1)
}
 0x256   : > { %s10809_s5 = scalar_lea.vmem %s12130_s8, 16  ;;  %s10815_s28 = scalar_lea.vmem %s12130_s8, 32 }
 0x257   : > { %p10810_p5 = scmp.ne.s32.totalorder %s12130_s8, %s10809_s5  ;;  %p10816_p3 = scmp.lt.s32.totalorder %s12130_s8, %s12130_s8 }
 0x258   : > { %p10817_p4 = scmp.lt.s32.totalorder %s10815_s28, %s10809_s5 }
 0x259   : > { %p10811_p6 = pnand %p10810_p5, %p10115_p10 }
 0x25a   : > { %p10818_p7 = por %p10817_p4, %p10816_p3 }
 0x25b   : > { %p10812_p2 = pneg %p10811_p6 }
 0x25d   : > { %p10819_p8 = pnand %p10818_p7, %p10812_p2 }
 0x25f   : > { %10822 = shalt.err (!%p10819_p8)
}
 0x260   : > { %s13440_s2 = sld [smem:[#allocation100_spill]]  ;;  %s11475_s1 = smov [#allocation10]  }
 0x261   : > { %9978 = dma.hbm_to_vmem [thread:$0]  (%p10115_p10), %s13439_s26, 16, %s12130_s8, [#allocation6]  }
 0x262   : > { %s2074_s16 = sshll.u32 %s11475_s1, 4  ;;  %s11476_s9 = smov [#allocation13]   ;;  %s2075_s16 = int_to_ptr.vmem [resolvable:$true] %s2074_s16 }
 0x263   : > { %s2102_s4 = sshll.u32 %s11476_s9, 4  ;;  %s12158_s4 = int_to_ptr.vmem [resolvable:$true] %s2102_s4 }
 0x266   : > { %s10823_s5 = scalar_lea.hbm %s13440_s2, 16 }
 0x267   : > { %p10824_p11 = scmp.ne.s32.totalorder %s13440_s2, %s10823_s5  ;;  %p10829_p0 = scmp.lt.u32.totalorder %s10823_s5, %s13440_s2 }
 0x269   : > { %p10825_p12 = pnand %p10824_p11, %p10115_p10 }
 0x26b   : > { %p10826_p13 = pneg %p10825_p12 }
 0x26d   : > { %p10831_p1 = pnand %p10829_p0, %p10826_p13 }
 0x26f   : > { %10834 = shalt.err (!%p10831_p1)
}
 0x270   : > { %s10835_s28 = scalar_lea.vmem %s2075_s16, 16  ;;  %s10841_s8 = scalar_lea.vmem %s2075_s16, 32 }
 0x271   : > { %p10836_p5 = scmp.ne.s32.totalorder %s2075_s16, %s10835_s28  ;;  %p10842_p3 = scmp.lt.s32.totalorder %s2075_s16, %s2075_s16 }
 0x272   : > { %p10843_p4 = scmp.lt.s32.totalorder %s10841_s8, %s10835_s28 }
 0x273   : > { %p10837_p6 = pnand %p10836_p5, %p10115_p10 }
 0x274   : > { %p10844_p7 = por %p10843_p4, %p10842_p3 }
 0x275   : > { %p10838_p2 = pneg %p10837_p6 }
 0x277   : > { %p10845_p8 = pnand %p10844_p7, %p10838_p2 }
 0x279   : > { %10848 = shalt.err (!%p10845_p8)
}
 0x27a   : > { %s13441_s1 = sld [smem:[#allocation103_spill]] }
 0x27b   : > { %9982 = dma.hbm_to_vmem [thread:$0]  (%p10115_p10), %s13440_s2, 16, %s2075_s16, [#allocation9]  }
 0x280   : > { %s10849_s9 = scalar_lea.hbm %s13441_s1, 16 }
 0x281   : > { %p10850_p11 = scmp.ne.s32.totalorder %s13441_s1, %s10849_s9  ;;  %p10855_p0 = scmp.lt.u32.totalorder %s10849_s9, %s13441_s1 }
 0x283   : > { %p10851_p12 = pnand %p10850_p11, %p10115_p10 }
 0x285   : > { %p10852_p13 = pneg %p10851_p12 }
 0x287   : > { %p10857_p1 = pnand %p10855_p0, %p10852_p13 }
 0x289   : > { %10860 = shalt.err (!%p10857_p1)
}
 0x28a   : > { %s10861_s5 = scalar_lea.vmem %s12158_s4, 16  ;;  %s10867_s28 = scalar_lea.vmem %s12158_s4, 32 }
 0x28b   : > { %p10862_p5 = scmp.ne.s32.totalorder %s12158_s4, %s10861_s5  ;;  %p10868_p3 = scmp.lt.s32.totalorder %s12158_s4, %s12158_s4 }
 0x28c   : > { %p10869_p4 = scmp.lt.s32.totalorder %s10867_s28, %s10861_s5 }
 0x28d   : > { %p10863_p6 = pnand %p10862_p5, %p10115_p10 }
 0x28e   : > { %p10870_p7 = por %p10869_p4, %p10868_p3 }
 0x28f   : > { %p10864_p2 = pneg %p10863_p6 }
 0x291   : > { %p10871_p8 = pnand %p10870_p7, %p10864_p2 }
 0x293   : > { %10874 = shalt.err (!%p10871_p8)
}
 0x294   : > { %s13442_s16 = sld [smem:[#allocation107_spill]]  ;;  %s11477_s9 = smov [#allocation16]  }
 0x295   : > { %9986 = dma.hbm_to_vmem [thread:$0]  (%p10115_p10), %s13441_s1, 16, %s12158_s4, [#allocation12]  }
 0x296   : > { %s2130_s2 = sshll.u32 %s11477_s9, 4  ;;  %s11478_s10 = smov [#allocation19]   ;;  %s2131_s2 = int_to_ptr.vmem [resolvable:$true] %s2130_s2 }
 0x297   : > { %s2158_s12 = sshll.u32 %s11478_s10, 4  ;;  %s12186_s12 = int_to_ptr.vmem [resolvable:$true] %s2158_s12 }
 0x29a   : > { %s13443_s8 = smov %s13442_s16  ;;  %s10875_s5 = scalar_lea.hbm %s13442_s16, 16 }
 0x29b   : > { %p10876_p11 = scmp.ne.s32.totalorder %s13443_s8, %s10875_s5  ;;  %p10881_p0 = scmp.lt.u32.totalorder %s10875_s5, %s13443_s8 }
 0x29d   : > { %p10877_p12 = pnand %p10876_p11, %p10115_p10 }
 0x29f   : > { %p10878_p13 = pneg %p10877_p12 }
 0x2a1   : > { %p10883_p1 = pnand %p10881_p0, %p10878_p13 }
 0x2a3   : > { %10886 = shalt.err (!%p10883_p1)
}
 0x2a4   : > { %s10887_s28 = scalar_lea.vmem %s2131_s2, 16  ;;  %s10893_s4 = scalar_lea.vmem %s2131_s2, 32 }
 0x2a5   : > { %p10888_p5 = scmp.ne.s32.totalorder %s2131_s2, %s10887_s28  ;;  %p10894_p3 = scmp.lt.s32.totalorder %s2131_s2, %s2131_s2 }
 0x2a6   : > { %p10895_p4 = scmp.lt.s32.totalorder %s10893_s4, %s10887_s28 }
 0x2a7   : > { %p10889_p6 = pnand %p10888_p5, %p10115_p10 }
 0x2a8   : > { %p10896_p7 = por %p10895_p4, %p10894_p3 }
 0x2a9   : > { %p10890_p2 = pneg %p10889_p6 }
 0x2ab   : > { %p10897_p8 = pnand %p10896_p7, %p10890_p2 }
 0x2ad   : > { %10900 = shalt.err (!%p10897_p8)
}
 0x2ae   : > { %s13444_s10 = sld [smem:[#allocation110_spill]] }
 0x2af   : > { %9990 = dma.hbm_to_vmem [thread:$0]  (%p10115_p10), %s13443_s8, 16, %s2131_s2, [#allocation15]  }
 0x2b4   : > { %s10901_s16 = scalar_lea.hbm %s13444_s10, 16 }
 0x2b5   : > { %p10902_p11 = scmp.ne.s32.totalorder %s13444_s10, %s10901_s16  ;;  %p10907_p0 = scmp.lt.u32.totalorder %s10901_s16, %s13444_s10 }
 0x2b7   : > { %p10903_p12 = pnand %p10902_p11, %p10115_p10 }
 0x2b9   : > { %p10904_p13 = pneg %p10903_p12 }
 0x2bb   : > { %p10909_p1 = pnand %p10907_p0, %p10904_p13 }
 0x2bd   : > { %10912 = shalt.err (!%p10909_p1)
}
 0x2be   : > { %s10913_s9 = scalar_lea.vmem %s12186_s12, 16  ;;  %s10919_s5 = scalar_lea.vmem %s12186_s12, 32 }
 0x2bf   : > { %p10914_p5 = scmp.ne.s32.totalorder %s12186_s12, %s10913_s9  ;;  %p10920_p3 = scmp.lt.s32.totalorder %s12186_s12, %s12186_s12 }
 0x2c0   : > { %p10921_p4 = scmp.lt.s32.totalorder %s10919_s5, %s10913_s9 }
 0x2c1   : > { %p10915_p6 = pnand %p10914_p5, %p10115_p10 }
 0x2c2   : > { %p10922_p7 = por %p10921_p4, %p10920_p3 }
 0x2c3   : > { %p10916_p2 = pneg %p10915_p6 }
 0x2c5   : > { %p10923_p8 = pnand %p10922_p7, %p10916_p2 }
 0x2c7   : > { %10926 = shalt.err (!%p10923_p8)
}
 0x2c8   : > { %s13445_s2 = sld [smem:[#allocation112_spill]]  ;;  %s11479_s28 = smov [#allocation22]  }
 0x2c9   : > { %9994 = dma.hbm_to_vmem [thread:$0]  (%p10115_p10), %s13444_s10, 16, %s12186_s12, [#allocation18]  }
 0x2ca   : > { %s2183_s4 = sshll.u32 %s11479_s28, 4  ;;  %s11480_s16 = smov [#allocation25]   ;;  %s2184_s4 = int_to_ptr.vmem [resolvable:$true] %s2183_s4 }
 0x2cb   : > { %s2211_s1 = sshll.u32 %s11480_s16, 4  ;;  %s12214_s1 = int_to_ptr.vmem [resolvable:$true] %s2211_s1 }
 0x2ce   : > { %s10927_s9 = scalar_lea.hbm %s13445_s2, 16 }
 0x2cf   : > { %p10928_p11 = scmp.ne.s32.totalorder %s13445_s2, %s10927_s9  ;;  %p10933_p0 = scmp.lt.u32.totalorder %s10927_s9, %s13445_s2 }
 0x2d1   : > { %p10929_p12 = pnand %p10928_p11, %p10115_p10 }
 0x2d3   : > { %p10930_p13 = pneg %p10929_p12 }
 0x2d5   : > { %p10935_p1 = pnand %p10933_p0, %p10930_p13 }
 0x2d7   : > { %10938 = shalt.err (!%p10935_p1)
}
 0x2d8   : > { %s10939_s5 = scalar_lea.vmem %s2184_s4, 16  ;;  %s10945_s12 = scalar_lea.vmem %s2184_s4, 32 }
 0x2d9   : > { %p10940_p5 = scmp.ne.s32.totalorder %s2184_s4, %s10939_s5  ;;  %p10946_p3 = scmp.lt.s32.totalorder %s2184_s4, %s2184_s4 }
 0x2da   : > { %p10947_p4 = scmp.lt.s32.totalorder %s10945_s12, %s10939_s5 }
 0x2db   : > { %p10941_p6 = pnand %p10940_p5, %p10115_p10 }
 0x2dc   : > { %p10948_p7 = por %p10947_p4, %p10946_p3 }
 0x2dd   : > { %p10942_p2 = pneg %p10941_p6 }
 0x2df   : > { %p10949_p8 = pnand %p10948_p7, %p10942_p2 }
 0x2e1   : > { %10952 = shalt.err (!%p10949_p8)
}
 0x2e2   : > { %s13446_s28 = sld [smem:[#allocation115_spill]] }
 0x2e3   : > { %9998 = dma.hbm_to_vmem [thread:$0]  (%p10115_p10), %s13445_s2, 16, %s2184_s4, [#allocation21]  }
 0x2e8   : > { %s10953_s16 = scalar_lea.hbm %s13446_s28, 16 }
 0x2e9   : > { %p10954_p11 = scmp.ne.s32.totalorder %s13446_s28, %s10953_s16  ;;  %p10959_p0 = scmp.lt.u32.totalorder %s10953_s16, %s13446_s28 }
 0x2eb   : > { %p10955_p12 = pnand %p10954_p11, %p10115_p10 }
 0x2ed   : > { %p10956_p13 = pneg %p10955_p12 }
 0x2ef   : > { %p10961_p1 = pnand %p10959_p0, %p10956_p13 }
 0x2f1   : > { %10964 = shalt.err (!%p10961_p1)
}
 0x2f2   : > { %s10965_s9 = scalar_lea.vmem %s12214_s1, 16  ;;  %s10971_s5 = scalar_lea.vmem %s12214_s1, 32 }
 0x2f3   : > { %p10966_p5 = scmp.ne.s32.totalorder %s12214_s1, %s10965_s9  ;;  %p10972_p3 = scmp.lt.s32.totalorder %s12214_s1, %s12214_s1 }
 0x2f4   : > { %p10973_p4 = scmp.lt.s32.totalorder %s10971_s5, %s10965_s9 }
 0x2f5   : > { %p10967_p6 = pnand %p10966_p5, %p10115_p10 }
 0x2f6   : > { %p10974_p7 = por %p10973_p4, %p10972_p3 }
 0x2f7   : > { %p10968_p2 = pneg %p10967_p6 }
 0x2f9   : > { %p10975_p8 = pnand %p10974_p7, %p10968_p2 }
 0x2fb   : > { %10978 = shalt.err (!%p10975_p8)
}
 0x2fc   : > { %s13447_s4 = sld [smem:[#allocation119_spill]]  ;;  %s11481_s12 = smov [#allocation28]  }
 0x2fd   : > { %10002 = dma.hbm_to_vmem [thread:$0]  (%p10115_p10), %s13446_s28, 16, %s12214_s1, [#allocation24]  }
 0x2fe   : > { %s2239_s16 = sshll.u32 %s11481_s12, 4  ;;  %s11482_s2 = smov [#allocation31]   ;;  %s2240_s16 = int_to_ptr.vmem [resolvable:$true] %s2239_s16 }
 0x2ff   : > { %s2267_s8 = sshll.u32 %s11482_s2, 4  ;;  %s12242_s8 = int_to_ptr.vmem [resolvable:$true] %s2267_s8 }
 0x302   : > { %s10979_s9 = scalar_lea.hbm %s13447_s4, 16 }
 0x303   : > { %p10980_p11 = scmp.ne.s32.totalorder %s13447_s4, %s10979_s9  ;;  %p10985_p0 = scmp.lt.u32.totalorder %s10979_s9, %s13447_s4 }
 0x305   : > { %p10981_p12 = pnand %p10980_p11, %p10115_p10 }
 0x307   : > { %p10982_p13 = pneg %p10981_p12 }
 0x309   : > { %p10987_p1 = pnand %p10985_p0, %p10982_p13 }
 0x30b   : > { %10990 = shalt.err (!%p10987_p1)
}
 0x30c   : > { %s10991_s5 = scalar_lea.vmem %s2240_s16, 16  ;;  %s10997_s1 = scalar_lea.vmem %s2240_s16, 32 }
 0x30d   : > { %p10992_p5 = scmp.ne.s32.totalorder %s2240_s16, %s10991_s5  ;;  %p10998_p3 = scmp.lt.s32.totalorder %s2240_s16, %s2240_s16 }
 0x30e   : > { %p10999_p4 = scmp.lt.s32.totalorder %s10997_s1, %s10991_s5 }
 0x30f   : > { %p10993_p6 = pnand %p10992_p5, %p10115_p10 }
 0x310   : > { %p11000_p7 = por %p10999_p4, %p10998_p3 }
 0x311   : > { %p10994_p2 = pneg %p10993_p6 }
 0x313   : > { %p11001_p8 = pnand %p11000_p7, %p10994_p2 }
 0x315   : > { %11004 = shalt.err (!%p11001_p8)
}
 0x316   : > { %s13448_s2 = sld [smem:[#allocation122_spill]] }
 0x317   : > { %10006 = dma.hbm_to_vmem [thread:$0]  (%p10115_p10), %s13447_s4, 16, %s2240_s16, [#allocation27]  }
 0x31c   : > { %s11005_s12 = scalar_lea.hbm %s13448_s2, 16 }
 0x31d   : > { %p11006_p11 = scmp.ne.s32.totalorder %s13448_s2, %s11005_s12  ;;  %p11011_p0 = scmp.lt.u32.totalorder %s11005_s12, %s13448_s2 }
 0x31f   : > { %p11007_p12 = pnand %p11006_p11, %p10115_p10 }
 0x321   : > { %p11008_p13 = pneg %p11007_p12 }
 0x323   : > { %p11013_p1 = pnand %p11011_p0, %p11008_p13 }
 0x325   : > { %11016 = shalt.err (!%p11013_p1)
}
 0x326   : > { %s11017_s9 = scalar_lea.vmem %s12242_s8, 16  ;;  %s11023_s5 = scalar_lea.vmem %s12242_s8, 32 }
 0x327   : > { %p11018_p5 = scmp.ne.s32.totalorder %s12242_s8, %s11017_s9  ;;  %p11024_p3 = scmp.lt.s32.totalorder %s12242_s8, %s12242_s8 }
 0x328   : > { %p11025_p4 = scmp.lt.s32.totalorder %s11023_s5, %s11017_s9 }
 0x329   : > { %p11019_p6 = pnand %p11018_p5, %p10115_p10 }
 0x32a   : > { %p11026_p7 = por %p11025_p4, %p11024_p3 }
 0x32b   : > { %p11020_p2 = pneg %p11019_p6 }
 0x32d   : > { %p11027_p8 = pnand %p11026_p7, %p11020_p2 }
 0x32f   : > { %11030 = shalt.err (!%p11027_p8)
}
 0x330   : > { %s13449_s16 = sld [smem:[#allocation124_spill]]  ;;  %s11483_s12 = smov [#allocation34]  }
 0x331   : > { %10010 = dma.hbm_to_vmem [thread:$0]  (%p10115_p10), %s13448_s2, 16, %s12242_s8, [#allocation30]  }
 0x332   : > { %s2292_s4 = sshll.u32 %s11483_s12, 4  ;;  %s11484_s10 = smov [#allocation37]   ;;  %s2293_s4 = int_to_ptr.vmem [resolvable:$true] %s2292_s4 }
 0x333   : > { %s2320_s14 = sshll.u32 %s11484_s10, 4  ;;  %s12270_s14 = int_to_ptr.vmem [resolvable:$true] %s2320_s14 }
 0x336   : > { %s13450_s1 = smov %s13449_s16  ;;  %s11031_s9 = scalar_lea.hbm %s13449_s16, 16 }
 0x337   : > { %p11032_p11 = scmp.ne.s32.totalorder %s13450_s1, %s11031_s9  ;;  %p11037_p0 = scmp.lt.u32.totalorder %s11031_s9, %s13450_s1 }
 0x339   : > { %p11033_p12 = pnand %p11032_p11, %p10115_p10 }
 0x33b   : > { %p11034_p13 = pneg %p11033_p12 }
 0x33d   : > { %p11039_p1 = pnand %p11037_p0, %p11034_p13 }
 0x33f   : > { %11042 = shalt.err (!%p11039_p1)
}
 0x340   : > { %s11043_s5 = scalar_lea.vmem %s2293_s4, 16  ;;  %s11049_s8 = scalar_lea.vmem %s2293_s4, 32 }
 0x341   : > { %p11044_p5 = scmp.ne.s32.totalorder %s2293_s4, %s11043_s5  ;;  %p11050_p3 = scmp.lt.s32.totalorder %s2293_s4, %s2293_s4 }
 0x342   : > { %p11051_p4 = scmp.lt.s32.totalorder %s11049_s8, %s11043_s5 }
 0x343   : > { %p11045_p6 = pnand %p11044_p5, %p10115_p10 }
 0x344   : > { %p11052_p7 = por %p11051_p4, %p11050_p3 }
 0x345   : > { %p11046_p2 = pneg %p11045_p6 }
 0x347   : > { %p11053_p8 = pnand %p11052_p7, %p11046_p2 }
 0x349   : > { %11056 = shalt.err (!%p11053_p8)
}
 0x34a   : > { %s13451_s10 = sld [smem:[#allocation128_spill]] }
 0x34b   : > { %10014 = dma.hbm_to_vmem [thread:$0]  (%p10115_p10), %s13450_s1, 16, %s2293_s4, [#allocation33]  }
 0x350   : > { %s11057_s16 = scalar_lea.hbm %s13451_s10, 16 }
 0x351   : > { %p11058_p11 = scmp.ne.s32.totalorder %s13451_s10, %s11057_s16  ;;  %p11063_p0 = scmp.lt.u32.totalorder %s11057_s16, %s13451_s10 }
 0x353   : > { %p11059_p12 = pnand %p11058_p11, %p10115_p10 }
 0x355   : > { %p11060_p13 = pneg %p11059_p12 }
 0x357   : > { %p11065_p1 = pnand %p11063_p0, %p11060_p13 }
 0x359   : > { %11068 = shalt.err (!%p11065_p1)
}
 0x35a   : > { %s11069_s12 = scalar_lea.vmem %s12270_s14, 16  ;;  %s11075_s9 = scalar_lea.vmem %s12270_s14, 32 }
 0x35b   : > { %p11070_p5 = scmp.ne.s32.totalorder %s12270_s14, %s11069_s12  ;;  %p11076_p3 = scmp.lt.s32.totalorder %s12270_s14, %s12270_s14 }
 0x35c   : > { %p11077_p4 = scmp.lt.s32.totalorder %s11075_s9, %s11069_s12 }
 0x35d   : > { %p11071_p6 = pnand %p11070_p5, %p10115_p10 }
 0x35e   : > { %p11078_p7 = por %p11077_p4, %p11076_p3 }
 0x35f   : > { %p11072_p2 = pneg %p11071_p6 }
 0x361   : > { %p11079_p8 = pnand %p11078_p7, %p11072_p2 }
 0x363   : > { %11082 = shalt.err (!%p11079_p8)
}
 0x364   : > { %s13452_s4 = sld [smem:[#allocation132_spill]]  ;;  %s11485_s5 = smov [#allocation40]  }
 0x365   : > { %10018 = dma.hbm_to_vmem [thread:$0]  (%p10115_p10), %s13451_s10, 16, %s12270_s14, [#allocation36]  }
 0x366   : > { %s2348_s8 = sshll.u32 %s11485_s5, 4  ;;  %s11486_s16 = smov [#allocation43]   ;;  %s2349_s8 = int_to_ptr.vmem [resolvable:$true] %s2348_s8 }
 0x367   : > { %s2373_s1 = sshll.u32 %s11486_s16, 4  ;;  %s12298_s1 = int_to_ptr.vmem [resolvable:$true] %s2373_s1 }
 0x36a   : > { %s11083_s12 = scalar_lea.hbm %s13452_s4, 16 }
 0x36b   : > { %p11084_p11 = scmp.ne.s32.totalorder %s13452_s4, %s11083_s12  ;;  %p11089_p0 = scmp.lt.u32.totalorder %s11083_s12, %s13452_s4 }
 0x36d   : > { %p11085_p12 = pnand %p11084_p11, %p10115_p10 }
 0x36f   : > { %p11086_p13 = pneg %p11085_p12 }
 0x371   : > { %p11091_p1 = pnand %p11089_p0, %p11086_p13 }
 0x373   : > { %11094 = shalt.err (!%p11091_p1)
}
 0x374   : > { %s11095_s9 = scalar_lea.vmem %s2349_s8, 16  ;;  %s11101_s14 = scalar_lea.vmem %s2349_s8, 32 }
 0x375   : > { %p11096_p5 = scmp.ne.s32.totalorder %s2349_s8, %s11095_s9  ;;  %p11102_p3 = scmp.lt.s32.totalorder %s2349_s8, %s2349_s8 }
 0x376   : > { %p11103_p4 = scmp.lt.s32.totalorder %s11101_s14, %s11095_s9 }
 0x377   : > { %p11097_p6 = pnand %p11096_p5, %p10115_p10 }
 0x378   : > { %p11104_p7 = por %p11103_p4, %p11102_p3 }
 0x379   : > { %p11098_p2 = pneg %p11097_p6 }
 0x37b   : > { %p11105_p8 = pnand %p11104_p7, %p11098_p2 }
 0x37d   : > { %11108 = shalt.err (!%p11105_p8)
}
 0x37e   : > { %s13453_s5 = sld [smem:[#allocation134_spill]] }
 0x37f   : > { %10022 = dma.hbm_to_vmem [thread:$0]  (%p10115_p10), %s13452_s4, 16, %s2349_s8, [#allocation39]  }
 0x384   : > { %s11109_s16 = scalar_lea.hbm %s13453_s5, 16 }
 0x385   : > { %p11110_p11 = scmp.ne.s32.totalorder %s13453_s5, %s11109_s16  ;;  %p11115_p0 = scmp.lt.u32.totalorder %s11109_s16, %s13453_s5 }
 0x387   : > { %p11111_p12 = pnand %p11110_p11, %p10115_p10 }
 0x389   : > { %p11112_p13 = pneg %p11111_p12 }
 0x38b   : > { %p11117_p1 = pnand %p11115_p0, %p11112_p13 }
 0x38d   : > { %11120 = shalt.err (!%p11117_p1)
}
 0x38e   : > { %s11121_s12 = scalar_lea.vmem %s12298_s1, 16  ;;  %s11127_s9 = scalar_lea.vmem %s12298_s1, 32 }
 0x38f   : > { %p11122_p5 = scmp.ne.s32.totalorder %s12298_s1, %s11121_s12  ;;  %p11128_p3 = scmp.lt.s32.totalorder %s12298_s1, %s12298_s1 }
 0x390   : > { %p11129_p4 = scmp.lt.s32.totalorder %s11127_s9, %s11121_s12 }
 0x391   : > { %p11123_p6 = pnand %p11122_p5, %p10115_p10 }
 0x392   : > { %p11130_p7 = por %p11129_p4, %p11128_p3 }
 0x393   : > { %p11124_p2 = pneg %p11123_p6 }
 0x395   : > { %p11131_p8 = pnand %p11130_p7, %p11124_p2 }
 0x397   : > { %11134 = shalt.err (!%p11131_p8)
}
 0x398   : > { %s13454_s8 = sld [smem:[#allocation138_spill]]  ;;  %s11487_s14 = smov [#allocation46]  }
 0x399   : > { %10026 = dma.hbm_to_vmem [thread:$0]  (%p10115_p10), %s13453_s5, 16, %s12298_s1, [#allocation42]  }
 0x39a   : > { %s2401_s16 = sshll.u32 %s11487_s14, 4  ;;  %s11488_s2 = smov [#allocation49]   ;;  %s2402_s16 = int_to_ptr.vmem [resolvable:$true] %s2401_s16 }
 0x39b   : > { %s2429_s4 = sshll.u32 %s11488_s2, 4  ;;  %s12326_s4 = int_to_ptr.vmem [resolvable:$true] %s2429_s4 }
 0x39e   : > { %s11135_s12 = scalar_lea.hbm %s13454_s8, 16 }
 0x39f   : > { %p11136_p11 = scmp.ne.s32.totalorder %s13454_s8, %s11135_s12  ;;  %p11141_p0 = scmp.lt.u32.totalorder %s11135_s12, %s13454_s8 }
 0x3a1   : > { %p11137_p12 = pnand %p11136_p11, %p10115_p10 }
 0x3a3   : > { %p11138_p13 = pneg %p11137_p12 }
 0x3a5   : > { %p11143_p1 = pnand %p11141_p0, %p11138_p13 }
 0x3a7   : > { %11146 = shalt.err (!%p11143_p1)
}
 0x3a8   : > { %s11147_s9 = scalar_lea.vmem %s2402_s16, 16  ;;  %s11153_s1 = scalar_lea.vmem %s2402_s16, 32 }
 0x3a9   : > { %p11148_p5 = scmp.ne.s32.totalorder %s2402_s16, %s11147_s9  ;;  %p11154_p3 = scmp.lt.s32.totalorder %s2402_s16, %s2402_s16 }
 0x3aa   : > { %p11155_p4 = scmp.lt.s32.totalorder %s11153_s1, %s11147_s9 }
 0x3ab   : > { %p11149_p6 = pnand %p11148_p5, %p10115_p10 }
 0x3ac   : > { %p11156_p7 = por %p11155_p4, %p11154_p3 }
 0x3ad   : > { %p11150_p2 = pneg %p11149_p6 }
 0x3af   : > { %p11157_p8 = pnand %p11156_p7, %p11150_p2 }
 0x3b1   : > { %11160 = shalt.err (!%p11157_p8)
}
 0x3b2   : > { %s13455_s2 = sld [smem:[#allocation142_spill]] }
 0x3b3   : > { %10030 = dma.hbm_to_vmem [thread:$0]  (%p10115_p10), %s13454_s8, 16, %s2402_s16, [#allocation45]  }
 0x3b8   : > { %s11161_s14 = scalar_lea.hbm %s13455_s2, 16 }
 0x3b9   : > { %p11162_p11 = scmp.ne.s32.totalorder %s13455_s2, %s11161_s14  ;;  %p11167_p0 = scmp.lt.u32.totalorder %s11161_s14, %s13455_s2 }
 0x3bb   : > { %p11163_p12 = pnand %p11162_p11, %p10115_p10 }
 0x3bd   : > { %p11164_p13 = pneg %p11163_p12 }
 0x3bf   : > { %p11169_p1 = pnand %p11167_p0, %p11164_p13 }
 0x3c1   : > { %11172 = shalt.err (!%p11169_p1)
}
 0x3c2   : > { %s11173_s12 = scalar_lea.vmem %s12326_s4, 16  ;;  %s11179_s9 = scalar_lea.vmem %s12326_s4, 32 }
 0x3c3   : > { %p11174_p5 = scmp.ne.s32.totalorder %s12326_s4, %s11173_s12  ;;  %p11180_p3 = scmp.lt.s32.totalorder %s12326_s4, %s12326_s4 }
 0x3c4   : > { %p11181_p4 = scmp.lt.s32.totalorder %s11179_s9, %s11173_s12 }
 0x3c5   : > { %p11175_p6 = pnand %p11174_p5, %p10115_p10 }
 0x3c6   : > { %p11182_p7 = por %p11181_p4, %p11180_p3 }
 0x3c7   : > { %p11176_p2 = pneg %p11175_p6 }
 0x3c9   : > { %p11183_p8 = pnand %p11182_p7, %p11176_p2 }
 0x3cb   : > { %11186 = shalt.err (!%p11183_p8)
}
 0x3cc   : > { %10034 = dma.hbm_to_vmem [thread:$0]  (%p10115_p10), %s13455_s2, 16, %s12326_s4, [#allocation48]  }
 0x3cd   : > { %s11489_s16 = smov [#allocation52]   ;;  %s11490_s14 = smov [#allocation53]  }
 0x3ce   : > { %s2457_s1 = sshll.u32 %s11489_s16, 4  ;;  %s2471_s5 = sshll.u32 %s11490_s14, 4  ;;  %s2458_s1 = int_to_ptr.vmem [resolvable:$true] %s2457_s1  ;;  %s12354_s5 = int_to_ptr.vmem [resolvable:$true] %s2471_s5 }
 0x3cf   : > { %s11187_s12 = scalar_lea.hbm %s13421_s3, 16 }
 0x3d0   : > { %p11188_p11 = scmp.ne.s32.totalorder %s13421_s3, %s11187_s12  ;;  %p11193_p0 = scmp.lt.u32.totalorder %s11187_s12, %s13421_s3 }
 0x3d2   : > { %p11189_p12 = pnand %p11188_p11, %p10115_p10 }
 0x3d4   : > { %p11190_p13 = pneg %p11189_p12 }
 0x3d6   : > { %p11195_p1 = pnand %p11193_p0, %p11190_p13 }
 0x3d8   : > { %11198 = shalt.err (!%p11195_p1)
}
 0x3d9   : > { %s11199_s9 = scalar_lea.vmem %s2458_s1, 16  ;;  %s11205_s4 = scalar_lea.vmem %s2458_s1, 32 }
 0x3da   : > { %p11200_p5 = scmp.ne.s32.totalorder %s2458_s1, %s11199_s9  ;;  %p11206_p3 = scmp.lt.s32.totalorder %s2458_s1, %s2458_s1 }
 0x3db   : > { %p11207_p4 = scmp.lt.s32.totalorder %s11205_s4, %s11199_s9 }
 0x3dc   : > { %p11201_p6 = pnand %p11200_p5, %p10115_p10 }
 0x3dd   : > { %p11208_p7 = por %p11207_p4, %p11206_p3 }
 0x3de   : > { %p11202_p2 = pneg %p11201_p6 }
 0x3e0   : > { %p11209_p8 = pnand %p11208_p7, %p11202_p2 }
 0x3e2   : > { %11212 = shalt.err (!%p11209_p8)
}
 0x3e3   : > { %10038 = dma.hbm_to_vmem [thread:$0]  (%p10115_p10), %s13421_s3, 16, %s2458_s1, [#allocation51]  }
 0x3e4   : > { %s11213_s16 = scalar_lea.hbm %s11908_s20, 16 }
 0x3e5   : > { %p11214_p11 = scmp.ne.s32.totalorder %s11908_s20, %s11213_s16  ;;  %p11219_p0 = scmp.lt.u32.totalorder %s11213_s16, %s11908_s20 }
 0x3e7   : > { %p11215_p12 = pnand %p11214_p11, %p10115_p10 }
 0x3e9   : > { %p11216_p13 = pneg %p11215_p12 }
 0x3eb   : > { %p11221_p1 = pnand %p11219_p0, %p11216_p13 }
 0x3ed   : > { %11224 = shalt.err (!%p11221_p1)
}
 0x3ee   : > { %s11225_s14 = scalar_lea.vmem %s12354_s5, 16  ;;  %s11231_s12 = scalar_lea.vmem %s12354_s5, 32 }
 0x3ef   : > { %p11226_p5 = scmp.ne.s32.totalorder %s12354_s5, %s11225_s14  ;;  %p11232_p3 = scmp.lt.s32.totalorder %s12354_s5, %s12354_s5 }
 0x3f0   : > { %p11233_p4 = scmp.lt.s32.totalorder %s11231_s12, %s11225_s14 }
 0x3f1   : > { %p11227_p6 = pnand %p11226_p5, %p10115_p10 }
 0x3f2   : > { %p11234_p7 = por %p11233_p4, %p11232_p3 }
 0x3f3   : > { %p11228_p2 = pneg %p11227_p6 }
 0x3f5   : > { %p11235_p8 = pnand %p11234_p7, %p11228_p2 }
 0x3f7   : > { %11238 = shalt.err (!%p11235_p8)
}
 0x3f8   : > { %10040 = dma.hbm_to_vmem [thread:$0]  (%p10115_p10), %s11908_s20, 16, %s12354_s5, [#allocation54]  }
 0x3f9 PF: > { %2492 = sbr.rel (%p11963_p9) target bundleno = 8381 (0x20bd), region = 348  ;;  %p10149_p11 = scmp.eq.s32.totalorder (!%p11963_p9), %s11936_s22, 0 }
 0x400   : > { %11284 = dma.done.wait (%p10149_p11), [#allocation3], 16  }
 0x401   : > { %11286 = vsyncadd (%p10149_p11), [#allocation3], 4294967280 }
 0x402   : > { %11288 = dma.done.wait (%p10149_p11), [#allocation6], 32  }
 0x403   : > { %11290 = vsyncadd (%p10149_p11), [#allocation6], 4294967264 }
 0x404   : > { %11292 = dma.done.wait (%p10149_p11), [#allocation9], 32  }
 0x405   : > { %11294 = vsyncadd (%p10149_p11), [#allocation9], 4294967264 }
 0x406   : > { %11296 = dma.done.wait (%p10149_p11), [#allocation12], 32  }
 0x407   : > { %11298 = vsyncadd (%p10149_p11), [#allocation12], 4294967264 }
 0x408   : > { %11300 = dma.done.wait (%p10149_p11), [#allocation15], 32  }
 0x409   : > { %11302 = vsyncadd (%p10149_p11), [#allocation15], 4294967264 }
 0x40a   : > { %11304 = dma.done.wait (%p10149_p11), [#allocation18], 32  }
 0x40b   : > { %11306 = vsyncadd (%p10149_p11), [#allocation18], 4294967264 }
 0x40c   : > { %11308 = dma.done.wait (%p10149_p11), [#allocation21], 32  }
 0x40d   : > { %11310 = vsyncadd (%p10149_p11), [#allocation21], 4294967264 }
 0x40e   : > { %11312 = dma.done.wait (%p10149_p11), [#allocation24], 32  }
 0x40f   : > { %11314 = vsyncadd (%p10149_p11), [#allocation24], 4294967264 }
 0x410   : > { %11316 = dma.done.wait (%p10149_p11), [#allocation27], 32  }
 0x411   : > { %11318 = vsyncadd (%p10149_p11), [#allocation27], 4294967264 }
 0x412   : > { %11320 = dma.done.wait (%p10149_p11), [#allocation30], 32  }
 0x413   : > { %11322 = vsyncadd (%p10149_p11), [#allocation30], 4294967264 }
 0x414   : > { %11324 = dma.done.wait (%p10149_p11), [#allocation33], 32  }
 0x415   : > { %11326 = vsyncadd (%p10149_p11), [#allocation33], 4294967264 }
 0x416   : > { %11328 = dma.done.wait (%p10149_p11), [#allocation36], 32  }
 0x417   : > { %11330 = vsyncadd (%p10149_p11), [#allocation36], 4294967264 }
 0x418   : > { %11332 = dma.done.wait (%p10149_p11), [#allocation39], 32  }
 0x419   : > { %11334 = vsyncadd (%p10149_p11), [#allocation39], 4294967264 }
 0x41a   : > { %11336 = dma.done.wait (%p10149_p11), [#allocation42], 32  }
 0x41b   : > { %11338 = vsyncadd (%p10149_p11), [#allocation42], 4294967264 }
 0x41c   : > { %11340 = dma.done.wait (%p10149_p11), [#allocation45], 32  }
 0x41d   : > { %11342 = vsyncadd (%p10149_p11), [#allocation45], 4294967264 }
 0x41e   : > { %11344 = dma.done.wait (%p10149_p11), [#allocation48], 32  }
 0x41f   : > { %11346 = vsyncadd (%p10149_p11), [#allocation48], 4294967264 }
 0x420   : > { %11348 = dma.done.wait (%p10149_p11), [#allocation51], 32  }
 0x421   : > { %11350 = vsyncadd (%p10149_p11), [#allocation51], 4294967264 }
 0x422   : > { %11352 = dma.done.wait (%p10149_p11), [#allocation54], 16  }
 0x423   : > { %11354 = vsyncadd (%p10149_p11), [#allocation54], 4294967280  ;;  %s13456_s11 = sld [smem:[#allocation75_spill]]  ;;  %s13457_s5 = sld [smem:[#allocation76_spill]]  ;;  %v2812_v0 = vlaneseq  ;;  %vm2832_vm0 = vcmask 318464   ;;  %vm2839_vm2 = vcmask 1046528  }
 0x424   : > { %p2805_p9 = scmp.lt.s32.totalorder %s11936_s22, 1  ;;  %s13458_s16 = sld [smem:[#allocation80_spill]]  ;;  %vm3228_vm6 = vcmask 523264   ;;  %vm3330_vm7 = vcmask 130048   ;;  %vm11492_vm8 = vmmov 0   ;;  %vm3767_vm9 = vcmask 1040384  }
 0x425   : > { %v12464_v7 = vshrl.u32 %v2812_v0, 7  ;;  %s13460_s12 = sld [smem:[#allocation78_spill]]  ;;  %vm3859_vm10 = vcmask 1043456   ;;  %vm3855_vm11 = vcmask 31744   ;;  %vm3933_vm12 = vcmask 517120   ;;  %s13484_s3 = sld [smem:[#allocation106_spill]] }
 0x426   : > { %s2806_s1 = scalar_select %p2805_p9, %s11936_s22, 1  ;;  %vm4808_vm13 = vcmask 261120   ;;  %vm5336_vm14 = vcmask 64512   ;;  %vm5410_vm15 = vcmask 1041408  }
 0x427   : > { %vm2920_vm1 = vcmp.lt.s32.totalorder %v12464_v7, 1  ;;  %vm2815_vm3 = vcmp.gt.s32.totalorder %v12464_v7, 0  ;;  %vm2931_vm4 = vcmp.lt.s32.totalorder %v12464_v7, 7  ;;  %v12502_v32 = vadd.s32 8, %v12464_v7  ;;  %p13515_p12 = scmp.ne.s32.totalorder %s13431_s7, 0 }
 0x428   : > { %s8376_s9 = sshll.u32 %s2806_s1, 4  ;;  %s13462_s1 = sld [smem:[#allocation82_spill]] }
 0x429   : > { %s2809_s4 = scalar_lea.vmem %s13456_s11, %s8376_s9  ;;  %v8184_v1 = vld [vmem:[%s13457_s5 + $0x28] sm:$0xff]  ;;  %v8185_v2 = vld [vmem:[%s13457_s5 + $0x30] sm:$0xff]  ;;  %v8186_v3 = vld [vmem:[%s13457_s5 + $0x38] sm:$0xff]  ;;  %vm2818_vm5 = vcmp.lt.s32.totalorder %v12502_v32, 15  ;;  %s13461_s11 = sld [smem:[#allocation77_spill]] }
 0x42a   : > { %v9446_v4 = vpack.c.bf16 %v8185_v2, %v8184_v1  ;;  %v8187_v5 = vld [vmem:[%s13457_s5 + $0x40] sm:$0xff]  ;;  %v12468_v9 = vld [vmem:[%s2809_s4 + $0x8] sm:$0xff]  ;;  %v2942_v15 = vld [vmem:[%s13457_s5 + $0x10] sm:$0xff]  ;;  %s13459_s14 = smov %s13458_s16  ;;  %s13463_s9 = sld [smem:[#allocation81_spill]] }
 0x42b   : > { %v2810_v6 = vld [vmem:[%s2809_s4] sm:$0xff]  ;;  %v9450_v8 = vpack.c.bf16 %v8187_v5, %v8186_v3  ;;  %v2919_v11 = vrot.slane %v12468_v9, 7  ;;  %v8188_v12 = vld [vmem:[%s13457_s5 + $0x48] sm:$0x7f]  ;;  %v2943_v16 = vld [vmem:[%s13457_s5 + $0x18] sm:$0xff]  ;;  %v2930_v25 = vrot.slane %v12468_v9, 1 }
 0x42c   : > { %8760 = vmatprep.mubr.msk.f32.mxu1 %vm2832_vm0, %v2810_v6  ;;  %8747 = vmatprep.mubr.msk.f32.mxu0 %vm2832_vm0, %v2810_v6  ;;  %v2918_v10 = vrot.slane %v2810_v6, 7  ;;  %v2940_v13 = vld [vmem:[%s13457_s5] sm:$0xff]  ;;  %v2941_v14 = vld [vmem:[%s13457_s5 + $0x8] sm:$0xff]  ;;  %v9458_v19 = vpack.c.bf16 %v2943_v16, %v2942_v15  ;;  %v8195_v22 = vld [vmem:[%s13457_s5 + $0x50] sm:$0xff]  ;;  %v2929_v24 = vrot.slane %v2810_v6, 1  ;;  %s13464_s4 = sld [smem:[#allocation84_spill]] }
 0x42d   : > { %9447 = vmatprep.subr.bf16.mxu1 %v9446_v4  ;;  %v9454_v18 = vpack.c.bf16 %v2941_v14, %v2940_v13  ;;  %v2944_v21 = vld [vmem:[%s13457_s5 + $0x20] sm:$0x7f]  ;;  %v8196_v23 = vld [vmem:[%s13457_s5 + $0x58] sm:$0xff]  ;;  %v8198_v27 = vld [vmem:[%s13457_s5 + $0x68] sm:$0xff] }
 0x42e   : > { %9449 = vmatpush3.bf16.msra.mxu1 %v9446_v4  ;;  %v2922_v17 = vsel %vm2920_vm1, %v2919_v11, %v2918_v10  ;;  %v8197_v26 = vld [vmem:[%s13457_s5 + $0x60] sm:$0xff]  ;;  %v9462_v28 = vpack.c.bf16 %v8196_v23, %v8195_v22  ;;  %v2921_v29 = vsel %vm2920_vm1, %v2918_v10, %v2919_v11  ;;  %v2932_v31 = vsel %vm2931_vm4, %v2929_v24, %v2930_v25  ;;  %v8199_v33 = vld [vmem:[%s13457_s5 + $0x70] sm:$0x7f]  ;;  %v3214_v35 = vld [vmem:[%s13459_s14 + $0x8] sm:$0xff] }
 0x42f   : > { %9451 = vmatprep.subr.bf16.mxu1 %v9450_v8  ;;  %v2927_v20 = vsel %vm2815_vm3, %v2922_v17, 0.0  ;;  %v9466_v30 = vpack.c.bf16 %v8198_v27, %v8197_v26  ;;  %v3213_v34 = vld [vmem:[%s13458_s16] sm:$0xff]  ;;  %v2933_v36 = vsel %vm2931_vm4, %v2930_v25, %v2929_v24  ;;  %v3215_v37 = vld [vmem:[%s13459_s14 + $0x10] sm:$0xff]  ;;  %v3216_v38 = vld [vmem:[%s13459_s14 + $0x18] sm:$0xff]  ;;  %s13465_s16 = sld [smem:[#allocation83_spill]] }
 0x430   : > { %v9470_v39 = vpack.c.bf16 %v3214_v35, %v3213_v34  ;;  %v2939_v40 = vsel %vm2818_vm5, %v2933_v36, 0.0  ;;  %v9474_v41 = vpack.c.bf16 %v3216_v38, %v3215_v37  ;;  %v3217_v42 = vld [vmem:[%s13459_s14 + $0x20] sm:$0xff]  ;;  %v3218_v43 = vld [vmem:[%s13459_s14 + $0x28] sm:$0xff]  ;;  %v3219_v45 = vld [vmem:[%s13459_s14 + $0x30] sm:$0xff]  ;;  %v11491_v37 = vmov 0.0|0.0  }
 0x431   : > { %v9478_v44 = vpack.c.bf16 %v3218_v43, %v3217_v42  ;;  %v3220_v46 = vld [vmem:[%s13459_s14 + $0x38] sm:$0xff]  ;;  %v2820_v48 = vld [vmem:[%s13460_s12] sm:$0xff]  ;;  %v2821_v49 = vld [vmem:[%s13460_s12 + $0x8] sm:$0xff] }
 0x432   : > { %9453 = vmatpush3.bf16.msra.mxu1 %v9450_v8  ;;  %v9482_v47 = vpack.c.bf16 %v3220_v46, %v3219_v45  ;;  %v2822_v50 = vld [vmem:[%s13460_s12 + $0x10] sm:$0xff]  ;;  %v9438_v51 = vpack.c.bf16 %v2821_v49, %v2820_v48  ;;  %v2823_v52 = vld [vmem:[%s13460_s12 + $0x18] sm:$0xff]  ;;  %v8203_v54 = vld [vmem:[%s13461_s11] ss:$0 sm:$0xff]  ;;  %s13466_s11 = sld [smem:[#allocation89_spill]] }
 0x433   : > { %8758 = vmatprep.subr.msk.mxu1 %vm2839_vm2, %v8188_v12  ;;  %v9442_v53 = vpack.c.bf16 %v2823_v52, %v2822_v50  ;;  %v2824_v59 = vld [vmem:[%s13460_s12 + $0x20] sm:$0x7f]  ;;  %v8207_v60 = vld [vmem:[%s13462_s1 + $0x10] sm:$0xff]  ;;  %v8208_v61 = vld [vmem:[%s13462_s1 + $0x18] sm:$0xff] }
 0x434   : > { %9439 = vmatprep.subr.bf16.mxu0 %v9438_v51  ;;  %v9486_v62 = vpack.c.bf16 %v8208_v61, %v8207_v60  ;;  %v3325_v63 = vld [vmem:[%s13462_s1] sm:$0xff]  ;;  %v3326_v0 = vld [vmem:[%s13462_s1 + $0x8] sm:$0xff] }
 0x435   : > { %9441 = vmatpush3.bf16.msra.mxu0 %v9438_v51  ;;  %v9490_v1 = vpack.c.bf16 %v3326_v0, %v3325_v63  ;;  %v8204_v2 = vld [vmem:[%s13463_s9] ss:$0 sm:$0xff]  ;;  %v8214_v10 = vld [vmem:[%s13462_s1 + $0x28] sm:$0xff]  ;;  %s13467_s9 = sld [smem:[#allocation85_spill]]  ;;  %v12589_v51 = vsub.s32 1, %v12464_v7 }
 0x436   : > { %8759 = vmatpush3.msk.msra.mxu1 %vm2839_vm2, %v8188_v12  ;;  %9443 = vmatprep.subr.bf16.mxu0 %v9442_v53  ;;  %v8213_v8 = vld [vmem:[%s13462_s1 + $0x20] sm:$0xff]  ;;  %v3590_v24 = vld [vmem:[%s13464_s4 + $0x8] sm:$0xff]  ;;  %s13473_s1 = sld [smem:[#allocation93_spill]] }
 0x437   : > { %9455 = vmatprep.subr.bf16.mxu1 %v9454_v18  ;;  %8761 = vmatmul.mubr.msk.f32.vlgmr.msra.gmra.mrb[0].mxu1 %vm2832_vm0, %v12468_v9  ;;  %v9494_v15 = vpack.c.bf16 %v8214_v10, %v8213_v8  ;;  %v3589_v23 = vld [vmem:[%s13464_s4] sm:$0xff] }
 0x438   : > { %9457 = vmatpush3.bf16.msra.mxu1 %v9454_v18  ;;  %8773 = vmatprep.mubr.msk.f32.mxu1 %vm2832_vm0, %v2927_v20  ;;  %v9498_v25 = vpack.c.bf16 %v3590_v24, %v3589_v23  ;;  %v8217_v26 = vld [vmem:[%s13465_s16] ss:$0 sm:$0xff]  ;;  %v3737_v35 = vld [vmem:[%s13466_s11 + $0x8] sm:$0xff]  ;;  %v3738_v36 = vld [vmem:[%s13466_s11 + $0x10] sm:$0xff]  ;;  %s13468_s16 = sld [smem:[#allocation86_spill]] }
 0x439   : > { %9459 = vmatprep.subr.bf16.mxu1 %v9458_v19  ;;  %9445 = vmatpush3.bf16.msra.mxu0 %v9442_v53  ;;  %v3736_v34 = vld [vmem:[%s13466_s11] sm:$0xff]  ;;  %v3741_v43 = vld [vmem:[%s13466_s11 + $0x28] sm:$0xff]  ;;  %v3742_v45 = vld [vmem:[%s13466_s11 + $0x30] sm:$0xff]  ;;  %v12592_v53 = vsub.s32 0, %v12464_v7 }
 0x43a   : > { %8745 = vmatprep.subr.msk.mxu0 %vm2839_vm2, %v2824_v59  ;;  %v9503_v38 = vpack.c.bf16 %v3737_v35, %v3736_v34  ;;  %v3740_v42 = vld [vmem:[%s13466_s11 + $0x20] sm:$0xff]  ;;  %v3743_v46 = vld [vmem:[%s13466_s11 + $0x38] sm:$0xff] }
 0x43b   : > { %v8218_v48 = vld [vmem:[%s13467_s9] ss:$0 sm:$0xff]  ;;  %s13469_s9 = sld [smem:[#allocation87_spill]] }
 0x43c   : > { %9461 = vmatpush3.bf16.msra.mxu1 %v9458_v19 }
 0x43d   : > { %8771 = vmatprep.subr.msk.mxu1 %vm2839_vm2, %v2944_v21  ;;  %8746 = vmatpush3.msk.msra.mxu0 %vm2839_vm2, %v2824_v59 }
 0x43e   : > { %8748 = vmatmul.mubr.msk.f32.vlgmr.msra.gmra.mrb[0].mxu0 %vm2832_vm0, %v12468_v9  ;;  %9487 = vmatprep.subr.bf16.mxu0 %v9486_v62 }
 0x43f   : > { %9489 = vmatpush3.bf16.msra.mxu0 %v9486_v62 }
 0x440   : > { %8772 = vmatpush3.msk.msra.mxu1 %vm2839_vm2, %v2944_v21  ;;  %9491 = vmatprep.subr.bf16.mxu0 %v9490_v1 }
 0x441   : > { %9463 = vmatprep.subr.bf16.mxu1 %v9462_v28  ;;  %8774 = vmatmul.mubr.msk.f32.vlgmr.msra.gmra.mrb[0].mxu1 %vm2832_vm0, %v2921_v29 }
 0x442   : > { %9465 = vmatpush3.bf16.msra.mxu1 %v9462_v28  ;;  %8786 = vmatprep.mubr.msk.f32.mxu1 %vm2832_vm0, %v2932_v31 }
 0x443   : > { %9467 = vmatprep.subr.bf16.mxu1 %v9466_v30 }
 0x446   : > { %9469 = vmatpush3.bf16.msra.mxu1 %v9466_v30 }
 0x447   : > { %8784 = vmatprep.subr.msk.mxu1 %vm2839_vm2, %v8199_v33 }
 0x44a   : > { %8785 = vmatpush3.msk.msra.mxu1 %vm2839_vm2, %v8199_v33 }
 0x44b   : > { %8787 = vmatmul.mubr.msk.f32.vlgmr.msra.gmra.mrb[0].mxu1 %vm2832_vm0, %v2939_v40  ;;  %9471 = vmatprep.subr.bf16.mxu1 %v9470_v39  ;;  %v11493_v40 = vmov 0.0   ;;  %vm7628_vm0 = vcmask 57344  }
 0x44c   : > { %9473 = vmatpush3.bf16.msra.mxu1 %v9470_v39  ;;  %v3739_v39 = vld [vmem:[%s13466_s11 + $0x18] sm:$0xff] }
 0x44d   : > { %9475 = vmatprep.subr.bf16.mxu1 %v9474_v41 }
 0x450   : > { %9477 = vmatpush3.bf16.msra.mxu1 %v9474_v41  ;;  %v9506_v41 = vpack.c.bf16 %v3739_v39, %v3738_v36 }
 0x451   : > { %9479 = vmatprep.subr.bf16.mxu1 %v9478_v44 }
 0x454   : > { %9481 = vmatpush3.bf16.msra.mxu1 %v9478_v44  ;;  %v9509_v44 = vpack.c.bf16 %v3741_v43, %v3740_v42 }
 0x455   : > { %9483 = vmatprep.subr.bf16.mxu1 %v9482_v47 }
 0x458   : > { %9485 = vmatpush3.bf16.msra.mxu1 %v9482_v47  ;;  %v9512_v47 = vpack.c.bf16 %v3743_v46, %v3742_v45 }
 0x459   : > { %9499 = vmatprep.subr.bf16.mxu1 %v9498_v25 }
 0x51e   : > { %v8788_v55 = vpop.f32.mrb[0].mxu1 }
 0x51f   : > { %v3194_v56 = vpop.f32.mrb[1].mxu1  ;;  %v12529_v58 = vadd.f32 %v8788_v55, %v8203_v54  ;;  %v12596_v55 = vsub.s32 2, %v12464_v7 }
 0x520   : > { %v12527_v57 = vadd.f32 %v8203_v54, %v3194_v56  ;;  %v3681_v54 = vld [vmem:[%s13468_s16] sm:$0x7]  ;;  %s13470_s16 = sld [smem:[#allocation88_spill]] }
 0x521   : > { %v3705_v63 = vrot.slane %v3681_v54, %v12589_v51  ;;  %v3699_v0 = vrot.slane %v3681_v54, %v12592_v53 }
 0x522   : > { %8805 = vmatprep.mubr.msk.f32.mxu1 %vm3228_vm6, %v12527_v57 }
 0x523   : > { %8806 = vmatmul.mubr.msk.f32.vlgmr.msra.gmra.mrb[2].mxu1 %vm3228_vm6, %v12529_v58 }
 0x524   : > { %9501 = vmatpush3.bf16.msra.mxu1 %v9498_v25 }
 0x525   : > { %9502 = vmatprep.subr.bf16.mxu1 %v11491_v37 }
 0x5f6   : > { %v8807_v3 = vpop.f32.mrb[2].mxu1 }
 0x5f7   : > { %v3307_v4 = vadd.f32 %v8807_v3, %v8204_v2  ;;  %v3301_v5 = vpop.f32.mrb[3].mxu1 }
 0x5f8   : > { %v3302_v6 = vadd.f32 %v8204_v2, %v3301_v5 }
 0x5f9   : > { %v3311_v11 = vmax.f32 %v3307_v4, 0.0 }
 0x5fa   : > { %v3310_v12 = vmax.f32 %v3302_v6, 0.0 }
 0x5fb   : > { %v3314_v13 = vrot.slane %v3311_v11, 7  ;;  %v3320_v14 = vrot.slane %v3311_v11, 1 }
 0x5fc   : > { %v3313_v9 = vrot.slane %v3310_v12, 7  ;;  %v3319_v16 = vrot.slane %v3310_v12, 1  ;;  %8812 = vmatprep.mubr.msk.f32.mxu0 %vm3330_vm7, %v3310_v12 }
 0x5fd   : > { %8813 = vmatmul.mubr.msk.f32.vlgmr.msra.gmra.mrb[2].mxu0 %vm3330_vm7, %v3311_v11 }
 0x5fe   : > { %9493 = vmatpush3.bf16.msra.mxu0 %v9490_v1  ;;  %v3316_v17 = vsel %vm2920_vm1, %v3314_v13, %v3313_v9  ;;  %v3315_v18 = vsel %vm2920_vm1, %v3313_v9, %v3314_v13  ;;  %v3321_v19 = vsel %vm2931_vm4, %v3319_v16, %v3320_v14  ;;  %v3322_v20 = vsel %vm2931_vm4, %v3320_v14, %v3319_v16 }
 0x5ff   : > { %v3317_v21 = vsel %vm2815_vm3, %v3316_v17, 0.0  ;;  %9495 = vmatprep.subr.bf16.mxu0 %v9494_v15  ;;  %v3324_v22 = vsel %vm2818_vm5, %v3322_v20, 0.0  ;;  %v3713_v1 = vrot.slane %v3681_v54, %v12596_v55  ;;  %v8221_v17 = vld [vmem:[%s13469_s9] ss:$0 sm:$0xff]  ;;  %s13471_s9 = sld [smem:[#allocation91_spill]] }
 0x600   : > { %8819 = vmatprep.mubr.msk.f32.mxu0 %vm3330_vm7, %v3317_v21  ;;  %v8222_v21 = vld [vmem:[%s13470_s16] ss:$0 sm:$0xff]  ;;  %s13472_s16 = sld [smem:[#allocation90_spill]] }
 0x605   : > { %8820 = vmatmul.mubr.msk.f32.vlgmr.msra.gmra.mrb[2].mxu0 %vm3330_vm7, %v3315_v18  ;;  %v3745_v54 = vld [vmem:[%s13471_s9] sm:$0xf]  ;;  %s13474_s9 = sld [smem:[#allocation92_spill]] }
 0x606   : > { %9497 = vmatpush3.bf16.msra.mxu0 %v9494_v15  ;;  %8826 = vmatprep.mubr.msk.f32.mxu0 %vm3330_vm7, %v3321_v19 }
 0x607   : > { %8855 = vmatprep.subr.mxu0 %v11493_v40 }
 0x60d   : > { %8827 = vmatmul.mubr.msk.f32.vlgmr.msra.gmra.mrb[2].mxu0 %vm3330_vm7, %v3324_v22 }
 0x60e   : > { %8857 = vmatprep.mubr.msk.f32.mxu0 %vm11492_vm8, %v11493_v40  ;;  %8856 = vmatpush3.msk.msra.mxu0 %vm3859_vm10, %v3745_v54 }
 0x6e0   : > { %v8828_v27 = vpop.f32.mrb[2].mxu0 }
 0x6e1   : > { %v3586_v28 = vadd.f32 %v8828_v27, %v8217_v26  ;;  %v3568_v29 = vpop.f32.mrb[3].mxu0 }
 0x6e2   : > { %v3585_v30 = vadd.f32 %v8217_v26, %v3568_v29 }
 0x6e3   : > { %v3588_v33 = vmax.f32 %v3586_v28, 0.0 }
 0x6e4   : > { %v3587_v31 = vmax.f32 %v3585_v30, 0.0 }
 0x6e6   : > { %8833 = vmatprep.mubr.msk.f32.mxu1 %vm3330_vm7, %v3587_v31 }
 0x6e7   : > { %8834 = vmatmul.mubr.msk.f32.vlgmr.msra.gmra.mrb[4].mxu1 %vm3330_vm7, %v3588_v33 }
 0x6e8   : > { %8852 = vmatprep.mubr.msk.f32.mxu1 %vm11492_vm8, %v11493_v40  ;;  %9504 = vmatpush3.bf16.msra.mxu1 %v9503_v38 }
 0x6e9   : > { %9505 = vmatprep.subr.bf16.mxu1 %v11491_v37 }
 0x6ec   : > { %9507 = vmatpush3.bf16.msra.mxu1 %v9506_v41 }
 0x6ed   : > { %9508 = vmatprep.subr.bf16.mxu1 %v11491_v37 }
 0x6f0   : > { %9510 = vmatpush3.bf16.msra.mxu1 %v9509_v44 }
 0x6f1   : > { %9511 = vmatprep.subr.bf16.mxu1 %v11491_v37 }
 0x6f4   : > { %9513 = vmatpush3.bf16.msra.mxu1 %v9512_v47 }
 0x7ba   : > { %v8835_v49 = vpop.f32.mrb[4].mxu1 }
 0x7bb   : > { %v3676_v50 = vadd.f32 %v8835_v49, %v8218_v48  ;;  %v3670_v52 = vpop.f32.mrb[5].mxu1 }
 0x7bc   : > { %v3671_v56 = vadd.f32 %v8218_v48, %v3670_v52 }
 0x7bd   : > { %v3680_v59 = vmax.f32 %v3676_v50, 0.0 }
 0x7be   : > { %v3679_v60 = vmax.f32 %v3671_v56, 0.0  ;;  %v8223_v56 = vld [vmem:[%s13472_s16] ss:$0 sm:$0xff]  ;;  %s13475_s16 = sld [smem:[#allocation95_spill]] }
 0x7bf   : > { %v3685_v61 = vrot.slane %v3680_v59, 7  ;;  %v3691_v62 = vrot.slane %v3680_v59, 1  ;;  %v3707_v10 = vmul.f32 %v3705_v63, %v3680_v59 }
 0x7c0   : > { %v3684_v2 = vrot.slane %v3679_v60, 7  ;;  %v3690_v3 = vrot.slane %v3679_v60, 1  ;;  %v3706_v15 = vmul.f32 %v3705_v63, %v3679_v60  ;;  %v3953_v63 = vld [vmem:[%s13473_s1] sm:$0xff] }
 0x7c2   : > { %v3686_v4 = vsel %vm2920_vm1, %v3684_v2, %v3685_v61  ;;  %v3687_v5 = vsel %vm2920_vm1, %v3685_v61, %v3684_v2  ;;  %v3692_v6 = vsel %vm2931_vm4, %v3690_v3, %v3691_v62  ;;  %v3693_v8 = vsel %vm2931_vm4, %v3691_v62, %v3690_v3  ;;  %v3955_v2 = vld [vmem:[%s13473_s1 + $0x10] sm:$0xff]  ;;  %v3956_v3 = vld [vmem:[%s13473_s1 + $0x18] sm:$0xff] }
 0x7c3   : > { %v3688_v11 = vsel %vm2815_vm3, %v3687_v5, 0.0  ;;  %v3695_v12 = vsel %vm2818_vm5, %v3693_v8, 0.0  ;;  %v3701_v13 = vmul.f32 %v3699_v0, %v3686_v4  ;;  %v3714_v19 = vmul.f32 %v3713_v1, %v3692_v6  ;;  %v3957_v5 = vld [vmem:[%s13473_s1 + $0x20] sm:$0xff]  ;;  %v3958_v6 = vld [vmem:[%s13473_s1 + $0x28] sm:$0xff] }
 0x7c4   : > { %v3700_v14 = vmul.f32 %v3699_v0, %v3688_v11  ;;  %v3715_v9 = vmul.f32 %v3713_v1, %v3695_v12  ;;  %v3954_v0 = vld [vmem:[%s13473_s1 + $0x8] sm:$0xff]  ;;  %v9518_v4 = vpack.c.bf16 %v3956_v3, %v3955_v2  ;;  %v9522_v8 = vpack.c.bf16 %v3958_v6, %v3957_v5  ;;  %v3960_v11 = vld [vmem:[%s13473_s1 + $0x38] sm:$0xff]  ;;  %s13476_s2 = smov %s13475_s16 }
 0x7c5   : > { %v3709_v16 = vadd.f32 %v3707_v10, %v3701_v13  ;;  %v9514_v1 = vpack.c.bf16 %v3954_v0, %v3953_v63  ;;  %v3959_v10 = vld [vmem:[%s13473_s1 + $0x30] sm:$0xff]  ;;  %v8225_v13 = vld [vmem:[%s13474_s9] ss:$0 sm:$0xff]  ;;  %s13477_s9 = sld [smem:[#allocation97_spill]] }
 0x7c6   : > { %v3708_v18 = vadd.f32 %v3706_v15, %v3700_v14  ;;  %v9526_v12 = vpack.c.bf16 %v3960_v11, %v3959_v10 }
 0x7c7   : > { %v3717_v20 = vadd.f32 %v3715_v9, %v3709_v16  ;;  %9515 = vmatprep.subr.bf16.mxu0 %v9514_v1 }
 0x7c8   : > { %v3716_v22 = vadd.f32 %v3714_v19, %v3708_v18 }
 0x7c9   : > { %v3725_v23 = vmul.f32 %v8221_v17, %v3717_v20 }
 0x7ca   : > { %v3724_v24 = vmul.f32 %v8221_v17, %v3716_v22 }
 0x7cb   : > { %v3733_v25 = vadd.f32 %v8222_v21, %v3725_v23  ;;  %v4328_v2 = vld [vmem:[%s13477_s9 + $0x8] sm:$0xff] }
 0x7cc   : > { %v3732_v26 = vadd.f32 %v8222_v21, %v3724_v24 }
 0x7cd   : > { %v12615_v27 = vmax.f32 %v3733_v25, 0.0 }
 0x7ce   : > { %v12617_v28 = vmax.f32 %v3732_v26, 0.0 }
 0x7cf   : > { %v3748_v29 = vsel %vm3228_vm6, %v12615_v27, 0.0  ;;  %v3759_v30 = vsel %vm3228_vm6, %v12615_v27, -inf }
 0x7d0   : > { %v3747_v31 = vsel %vm3228_vm6, %v12617_v28, 0.0  ;;  %v3758_v33 = vsel %vm3228_vm6, %v12617_v28, -inf }
 0x7d1   : > { %v3749_v34 = vadd.f32 %v3748_v29, %v3747_v31  ;;  %v3760_v35 = vmax.f32 %v3758_v33, %v3759_v30 }
 0x7d3   : > { %v3750_v36 = vrot.slane %v3749_v34, 4  ;;  %v3761_v38 = vrot.slane %v3760_v35, 4 }
 0x7d5   : > { %v3751_v39 = vadd.f32 %v3750_v36, %v3749_v34  ;;  %v3762_v41 = vmax.f32 %v3760_v35, %v3761_v38  ;;  %v8232_v36 = vld [vmem:[%s13475_s16 + $0x10] sm:$0xff]  ;;  %s13478_s16 = sld [smem:[#allocation101_spill]] }
 0x7d7   : > { %v3752_v42 = vrot.slane %v3751_v39, 2  ;;  %v3763_v43 = vrot.slane %v3762_v41, 2 }
 0x7d9   : > { %v3753_v44 = vadd.f32 %v3752_v42, %v3751_v39  ;;  %v3764_v45 = vmax.f32 %v3762_v41, %v3763_v43  ;;  %v8229_v39 = vld [vmem:[#allocation2] ss:$0 sm:$0xff] }
 0x7db   : > { %v3754_v46 = vrot.slane %v3753_v44, 1  ;;  %v3765_v47 = vrot.slane %v3764_v45, 1  ;;  %s13479_s1 = smov %s13478_s16 }
 0x7dd   : > { %v3755_v48 = vadd.f32 %v3754_v46, %v3753_v44  ;;  %v3766_v50 = vmax.f32 %v3764_v45, %v3765_v47  ;;  %v8238_v45 = vld [vmem:[%s13476_s2 + $0x20] sm:$0xff]  ;;  %v8239_v46 = vld [vmem:[%s13476_s2 + $0x28] sm:$0xff] }
 0x7df   : > { %v3757_v49 = vmul.f32 0.0625, %v3755_v48 }
 0x7e1   : > { %v3768_v52 = vsel %vm3767_vm9, %v3757_v49, %v3766_v50 }
 0x7e2   : > { %8853 = vmatmul.mubr.msk.f32.vlgmr.msra.gmra.mrb[6].mxu1 %vm3228_vm6, %v3768_v52  ;;  %v9538_v52 = vpack.c.bf16 %v8239_v46, %v8238_v45 }
 0x8b5   : > { %v3844_v59 = vpop.f32.mrb[6].mxu1 }
 0x8b6   : > { %v3845_v60 = vadd.f32 %v8223_v56, %v3844_v59  ;;  %v8854_v61 = vpop.f32.mrb[7].mxu1 }
 0x8b8   : > { %v3848_v62 = vmax.f32 %v3845_v60, 0.0 }
 0x8ba   : > { %8858 = vmatmul.mubr.msk.f32.vlgmr.msra.gmra.mrb[4].mxu0 %vm3855_vm11, %v3848_v62 }
 0x8bb   : > { %9517 = vmatpush3.bf16.msra.mxu0 %v9514_v1  ;;  %v4327_v1 = vld [vmem:[%s13477_s9] sm:$0xff] }
 0x8bc   : > { %9519 = vmatprep.subr.bf16.mxu0 %v9518_v4  ;;  %v9542_v3 = vpack.c.bf16 %v4328_v2, %v4327_v1 }
 0x8bf   : > { %9521 = vmatpush3.bf16.msra.mxu0 %v9518_v4  ;;  %v8242_v4 = vld [vmem:[#allocation5] ss:$0 sm:$0xff] }
 0x8c0   : > { %9523 = vmatprep.subr.bf16.mxu0 %v9522_v8 }
 0x8c3   : > { %9525 = vmatpush3.bf16.msra.mxu0 %v9522_v8 }
 0x8c4   : > { %9527 = vmatprep.subr.bf16.mxu0 %v9526_v12 }
 0x8c7   : > { %9529 = vmatpush3.bf16.msra.mxu0 %v9526_v12 }
 0x8c8   : > { %9543 = vmatprep.subr.bf16.mxu0 %v9542_v3 }
 0x98d   : > { %v3929_v14 = vpop.f32.mrb[4].mxu0 }
 0x98e   : > { %v3930_v15 = vadd.f32 %v8225_v13, %v3929_v14  ;;  %v8859_v9 = vpop.f32.mrb[5].mxu0  ;;  %v4474_v13 = vld [vmem:[%s13478_s16] sm:$0xff]  ;;  %v4475_v14 = vld [vmem:[%s13479_s1 + $0x8] sm:$0xff]  ;;  %s13482_s16 = sld [smem:[#allocation104_spill]] }
 0x98f   : > { %v9547_v9 = vpack.c.bf16 %v4475_v14, %v4474_v13 }
 0x990   : > { %v3934_v16 = vsel %vm3933_vm12, %v3930_v15, 0.0  ;;  %v4476_v15 = vld [vmem:[%s13479_s1 + $0x10] sm:$0xff] }
 0x991   : > { %v3935_v17 = vrot.slane %v3934_v16, 4 }
 0x993   : > { %v3936_v18 = vadd.f32 %v3935_v17, %v3934_v16  ;;  %v4477_v16 = vld [vmem:[%s13479_s1 + $0x18] sm:$0xff] }
 0x994   : > { %v9550_v17 = vpack.c.bf16 %v4477_v16, %v4476_v15 }
 0x995   : > { %v3937_v19 = vrot.slane %v3936_v18, 2 }
 0x997   : > { %v3938_v20 = vadd.f32 %v3937_v19, %v3936_v18  ;;  %v4478_v18 = vld [vmem:[%s13479_s1 + $0x20] sm:$0xff]  ;;  %v4479_v19 = vld [vmem:[%s13479_s1 + $0x28] sm:$0xff] }
 0x999   : > { %v3939_v21 = vrot.slane %v3938_v20, 1 }
 0x99b   : > { %v3940_v22 = vadd.f32 %v3939_v21, %v3938_v20  ;;  %v9553_v20 = vpack.c.bf16 %v4479_v19, %v4478_v18  ;;  %v4480_v21 = vld [vmem:[%s13479_s1 + $0x30] sm:$0xff] }
 0x99d   : > { %v8228_v23 = vmul.f32 -1.442695, %v3940_v22  ;;  %v4481_v22 = vld [vmem:[%s13479_s1 + $0x38] sm:$0xff]  ;;  %s13483_s1 = smov %s13482_s16 }
 0x99f   : > { %10335 = vpow2.f32 %v8228_v23  ;;  %v9556_v23 = vpack.c.bf16 %v4481_v22, %v4480_v21 }
 0x9a9   : > { %v10336_v24 = vpop.eup %10335 }
 0x9aa   : > { %v3944_v25 = vadd.f32 1.0, %v10336_v24  ;;  %v8243_v24 = vld [vmem:[#allocation7] ss:$0 sm:$0xff] }
 0x9ac   : > { %10337 = vrcp.f32 %v3944_v25 }
 0x9b6   : > { %v10338_v26 = vpop.eup %10337 }
 0x9b7   : > { %v3947_v29 = vmul.f32 %v10338_v26, %v12617_v28  ;;  %v3948_v30 = vmul.f32 %v10338_v26, %v12615_v27  ;;  %v8233_v28 = vld [vmem:[%s13476_s2 + $0x18] sm:$0xff]  ;;  %v4065_v27 = vld [vmem:[%s13476_s2 + $0x8] sm:$0xff] }
 0x9b8   : > { %v9530_v38 = vpack.c.bf16 %v8233_v28, %v8232_v36 }
 0x9b9   : > { %v3949_v31 = vadd.f32 %v3947_v29, %v12527_v57  ;;  %v3950_v33 = vadd.f32 %v3948_v30, %v12529_v58  ;;  %v4064_v57 = vld [vmem:[%s13476_s2] sm:$0xff]  ;;  %s13480_s2 = sld [smem:[#allocation99_spill]] }
 0x9ba   : > { %9531 = vmatprep.subr.bf16.mxu1 %v9530_v38  ;;  %v9534_v58 = vpack.c.bf16 %v4065_v27, %v4064_v57 }
 0x9bb   : > { %v12647_v34 = vmax.f32 %v3949_v31, 0.0  ;;  %v12649_v35 = vmax.f32 %v3950_v33, 0.0  ;;  %9533 = vmatpush3.bf16.msra.mxu1 %v9530_v38 }
 0x9bc   : > { %9535 = vmatprep.subr.bf16.mxu1 %v9534_v58 }
 0x9bd   : > { %8876 = vmatprep.mubr.msk.f32.mxu0 %vm3228_vm6, %v12647_v34 }
 0x9be   : > { %8877 = vmatmul.mubr.msk.f32.vlgmr.msra.gmra.mrb[6].mxu0 %vm3228_vm6, %v12649_v35 }
 0x9bf   : > { %9545 = vmatpush3.bf16.msra.mxu0 %v9542_v3  ;;  %v4419_v30 = vld [vmem:[%s13480_s2] sm:$0x7]  ;;  %s13481_s2 = sld [smem:[#allocation102_spill]] }
 0x9c0   : > { %9546 = vmatprep.subr.bf16.mxu0 %v11491_v37  ;;  %v4443_v57 = vrot.slane %v4419_v30, %v12589_v51  ;;  %v4437_v27 = vrot.slane %v4419_v30, %v12592_v53 }
 0xa91   : > { %v8878_v41 = vpop.f32.mrb[6].mxu0 }
 0xa92   : > { %v4046_v42 = vadd.f32 %v8878_v41, %v8229_v39  ;;  %v4040_v43 = vpop.f32.mrb[7].mxu0 }
 0xa93   : > { %v4041_v44 = vadd.f32 %v8229_v39, %v4040_v43 }
 0xa94   : > { %v4050_v47 = vmax.f32 %v4046_v42, 0.0 }
 0xa95   : > { %v4049_v48 = vmax.f32 %v4041_v44, 0.0 }
 0xa96   : > { %v4053_v49 = vrot.slane %v4050_v47, 7  ;;  %v4059_v50 = vrot.slane %v4050_v47, 1 }
 0xa97   : > { %v4052_v54 = vrot.slane %v4049_v48, 7  ;;  %v4058_v56 = vrot.slane %v4049_v48, 1  ;;  %8883 = vmatprep.mubr.msk.f32.mxu1 %vm3330_vm7, %v4049_v48 }
 0xa98   : > { %8884 = vmatmul.mubr.msk.f32.vlgmr.msra.gmra.mrb[8].mxu1 %vm3330_vm7, %v4050_v47 }
 0xa99   : > { %9537 = vmatpush3.bf16.msra.mxu1 %v9534_v58  ;;  %v4055_v59 = vsel %vm2920_vm1, %v4053_v49, %v4052_v54  ;;  %v4054_v60 = vsel %vm2920_vm1, %v4052_v54, %v4053_v49  ;;  %v4060_v61 = vsel %vm2931_vm4, %v4058_v56, %v4059_v50  ;;  %v4061_v62 = vsel %vm2931_vm4, %v4059_v50, %v4058_v56 }
 0xa9a   : > { %v4056_v63 = vsel %vm2815_vm3, %v4055_v59, 0.0  ;;  %9539 = vmatprep.subr.bf16.mxu1 %v9538_v52  ;;  %v4063_v0 = vsel %vm2818_vm5, %v4061_v62, 0.0  ;;  %v4451_v58 = vrot.slane %v4419_v30, %v12596_v55  ;;  %v8246_v59 = vld [vmem:[#allocation8] ss:$0 sm:$0xff]  ;;  %v4483_v30 = vld [vmem:[%s13481_s2] sm:$0xf] }
 0xa9b   : > { %8890 = vmatprep.mubr.msk.f32.mxu1 %vm3330_vm7, %v4056_v63  ;;  %v8247_v63 = vld [vmem:[#allocation10] ss:$0 sm:$0xff]  ;;  %s13485_s2 = sld [smem:[#allocation108_spill]] }
 0xaa0   : > { %8891 = vmatmul.mubr.msk.f32.vlgmr.msra.gmra.mrb[8].mxu1 %vm3330_vm7, %v4054_v60 }
 0xaa1   : > { %9541 = vmatpush3.bf16.msra.mxu1 %v9538_v52  ;;  %8897 = vmatprep.mubr.msk.f32.mxu1 %vm3330_vm7, %v4060_v61 }
 0xaa2   : > { %8926 = vmatprep.subr.mxu1 %v11493_v40 }
 0xaa8   : > { %8898 = vmatmul.mubr.msk.f32.vlgmr.msra.gmra.mrb[8].mxu1 %vm3330_vm7, %v4063_v0 }
 0xaa9   : > { %8928 = vmatprep.mubr.msk.f32.mxu1 %vm11492_vm8, %v11493_v40  ;;  %8927 = vmatpush3.msk.msra.mxu1 %vm3859_vm10, %v4483_v30 }
 0xb7b   : > { %v8899_v5 = vpop.f32.mrb[8].mxu1 }
 0xb7c   : > { %v4324_v6 = vadd.f32 %v8899_v5, %v8242_v4  ;;  %v4306_v8 = vpop.f32.mrb[9].mxu1 }
 0xb7d   : > { %v4323_v10 = vadd.f32 %v8242_v4, %v4306_v8 }
 0xb7e   : > { %v4326_v12 = vmax.f32 %v4324_v6, 0.0 }
 0xb7f   : > { %v4325_v11 = vmax.f32 %v4323_v10, 0.0 }
 0xb81   : > { %8904 = vmatprep.mubr.msk.f32.mxu0 %vm3330_vm7, %v4325_v11 }
 0xb82   : > { %8905 = vmatmul.mubr.msk.f32.vlgmr.msra.gmra.mrb[8].mxu0 %vm3330_vm7, %v4326_v12 }
 0xb83   : > { %8923 = vmatprep.mubr.msk.f32.mxu0 %vm11492_vm8, %v11493_v40  ;;  %9548 = vmatpush3.bf16.msra.mxu0 %v9547_v9 }
 0xb84   : > { %9549 = vmatprep.subr.bf16.mxu0 %v11491_v37 }
 0xb87   : > { %9551 = vmatpush3.bf16.msra.mxu0 %v9550_v17 }
 0xb88   : > { %9552 = vmatprep.subr.bf16.mxu0 %v11491_v37 }
 0xb8b   : > { %9554 = vmatpush3.bf16.msra.mxu0 %v9553_v20 }
 0xb8c   : > { %9555 = vmatprep.subr.bf16.mxu0 %v11491_v37 }
 0xb8f   : > { %9557 = vmatpush3.bf16.msra.mxu0 %v9556_v23 }
 0xc55   : > { %v8906_v25 = vpop.f32.mrb[8].mxu0 }
 0xc56   : > { %v4414_v26 = vadd.f32 %v8906_v25, %v8243_v24  ;;  %v4408_v29 = vpop.f32.mrb[9].mxu0 }
 0xc57   : > { %v4409_v31 = vadd.f32 %v8243_v24, %v4408_v29 }
 0xc58   : > { %v4418_v33 = vmax.f32 %v4414_v26, 0.0 }
 0xc59   : > { %v4417_v36 = vmax.f32 %v4409_v31, 0.0  ;;  %v8248_v31 = vld [vmem:[#allocation11] ss:$0 sm:$0xff] }
 0xc5a   : > { %v4423_v28 = vrot.slane %v4418_v33, 7  ;;  %v4429_v38 = vrot.slane %v4418_v33, 1  ;;  %v4445_v46 = vmul.f32 %v4443_v57, %v4418_v33 }
 0xc5b   : > { %v4422_v39 = vrot.slane %v4417_v36, 7  ;;  %v4428_v41 = vrot.slane %v4417_v36, 1  ;;  %v4444_v52 = vmul.f32 %v4443_v57, %v4417_v36  ;;  %v4688_v57 = vld [vmem:[%s13482_s16] sm:$0xff]  ;;  %s13486_s16 = sld [smem:[#allocation111_spill]] }
 0xc5d   : > { %v4424_v42 = vsel %vm2920_vm1, %v4422_v39, %v4423_v28  ;;  %v4425_v43 = vsel %vm2920_vm1, %v4423_v28, %v4422_v39  ;;  %v4430_v44 = vsel %vm2931_vm4, %v4428_v41, %v4429_v38  ;;  %v4431_v45 = vsel %vm2931_vm4, %v4429_v38, %v4428_v41  ;;  %v4691_v41 = vld [vmem:[%s13483_s1 + $0x18] sm:$0xff] }
 0xc5e   : > { %v4426_v47 = vsel %vm2815_vm3, %v4425_v43, 0.0  ;;  %v4433_v48 = vsel %vm2818_vm5, %v4431_v45, 0.0  ;;  %v4439_v49 = vmul.f32 %v4437_v27, %v4424_v42  ;;  %v4452_v61 = vmul.f32 %v4451_v58, %v4430_v44  ;;  %v4692_v43 = vld [vmem:[%s13483_s1 + $0x20] sm:$0xff]  ;;  %v4693_v44 = vld [vmem:[%s13483_s1 + $0x28] sm:$0xff] }
 0xc5f   : > { %v4438_v50 = vmul.f32 %v4437_v27, %v4426_v47  ;;  %v4453_v54 = vmul.f32 %v4451_v58, %v4433_v48  ;;  %v4689_v27 = vld [vmem:[%s13483_s1 + $0x8] sm:$0xff]  ;;  %v4690_v58 = vld [vmem:[%s13483_s1 + $0x10] sm:$0xff]  ;;  %v9566_v45 = vpack.c.bf16 %v4693_v44, %v4692_v43  ;;  %v4695_v47 = vld [vmem:[%s13483_s1 + $0x38] sm:$0xff] }
 0xc60   : > { %v4447_v56 = vadd.f32 %v4445_v46, %v4439_v49  ;;  %v9558_v39 = vpack.c.bf16 %v4689_v27, %v4688_v57  ;;  %v9562_v42 = vpack.c.bf16 %v4691_v41, %v4690_v58  ;;  %v4694_v46 = vld [vmem:[%s13483_s1 + $0x30] sm:$0xff]  ;;  %v8257_v49 = vld [vmem:[%s13484_s3 + $0x20] sm:$0xff] }
 0xc61   : > { %v4446_v60 = vadd.f32 %v4444_v52, %v4438_v50  ;;  %v9570_v48 = vpack.c.bf16 %v4695_v47, %v4694_v46  ;;  %v8258_v50 = vld [vmem:[%s13484_s3 + $0x28] sm:$0xff]  ;;  %v8267_v41 = vld [vmem:[%s13484_s3 + $0x50] sm:$0xff]  ;;  %s13487_s1 = smov %s13486_s16 }
 0xc62   : > { %v4455_v62 = vadd.f32 %v4453_v54, %v4447_v56  ;;  %9559 = vmatprep.subr.bf16.mxu1 %v9558_v39  ;;  %v9574_v52 = vpack.c.bf16 %v8258_v50, %v8257_v49  ;;  %v8250_v54 = vld [vmem:[#allocation13] ss:$0 sm:$0xff]  ;;  %v5069_v50 = vld [vmem:[%s13485_s2] sm:$0xff] }
 0xc63   : > { %v4454_v0 = vadd.f32 %v4452_v61, %v4446_v60 }
 0xc64   : > { %v4463_v1 = vmul.f32 %v8246_v59, %v4455_v62 }
 0xc65   : > { %v4462_v2 = vmul.f32 %v8246_v59, %v4454_v0 }
 0xc66   : > { %v4471_v3 = vadd.f32 %v8247_v63, %v4463_v1 }
 0xc67   : > { %v4470_v4 = vadd.f32 %v8247_v63, %v4462_v2 }
 0xc68   : > { %v12716_v5 = vmax.f32 %v4471_v3, 0.0 }
 0xc69   : > { %v12718_v6 = vmax.f32 %v4470_v4, 0.0 }
 0xc6a   : > { %v4486_v8 = vsel %vm3228_vm6, %v12716_v5, 0.0  ;;  %v4496_v10 = vsel %vm3228_vm6, %v12716_v5, -inf }
 0xc6b   : > { %v4485_v11 = vsel %vm3228_vm6, %v12718_v6, 0.0  ;;  %v4495_v12 = vsel %vm3228_vm6, %v12718_v6, -inf }
 0xc6c   : > { %v4487_v13 = vadd.f32 %v4486_v8, %v4485_v11  ;;  %v4497_v14 = vmax.f32 %v4495_v12, %v4496_v10 }
 0xc6e   : > { %v4488_v15 = vrot.slane %v4487_v13, 4  ;;  %v4498_v9 = vrot.slane %v4497_v14, 4 }
 0xc70   : > { %v4489_v16 = vadd.f32 %v4488_v15, %v4487_v13  ;;  %v4499_v17 = vmax.f32 %v4497_v14, %v4498_v9 }
 0xc72   : > { %v4490_v18 = vrot.slane %v4489_v16, 2  ;;  %v4500_v19 = vrot.slane %v4499_v17, 2 }
 0xc74   : > { %v4491_v20 = vadd.f32 %v4490_v18, %v4489_v16  ;;  %v4501_v21 = vmax.f32 %v4499_v17, %v4500_v19 }
 0xc76   : > { %v4492_v22 = vrot.slane %v4491_v20, 1  ;;  %v4502_v23 = vrot.slane %v4501_v21, 1 }
 0xc78   : > { %v4493_v24 = vadd.f32 %v4492_v22, %v4491_v20  ;;  %v4503_v26 = vmax.f32 %v4501_v21, %v4502_v23  ;;  %v4799_v20 = vld [vmem:[%s13484_s3] sm:$0xff]  ;;  %v4800_v21 = vld [vmem:[%s13484_s3 + $0x8] sm:$0xff] }
 0xc79   : > { %v9582_v22 = vpack.c.bf16 %v4800_v21, %v4799_v20  ;;  %v5224_v20 = vld [vmem:[%s13487_s1 + $0x30] sm:$0xff]  ;;  %v5225_v21 = vld [vmem:[%s13487_s1 + $0x38] sm:$0xff] }
 0xc7a   : > { %v4494_v25 = vmul.f32 0.0625, %v4493_v24  ;;  %v8265_v24 = vld [vmem:[%s13484_s3 + $0x40] sm:$0xff] }
 0xc7b   : > { %9583 = vmatprep.subr.bf16.mxu0 %v9582_v22 }
 0xc7c   : > { %v4504_v29 = vsel %vm3767_vm9, %v4494_v25, %v4503_v26  ;;  %v8266_v25 = vld [vmem:[%s13484_s3 + $0x48] sm:$0xff] }
 0xc7d   : > { %8924 = vmatmul.mubr.msk.f32.vlgmr.msra.gmra.mrb[10].mxu0 %vm3228_vm6, %v4504_v29  ;;  %v9590_v26 = vpack.c.bf16 %v8266_v25, %v8265_v24  ;;  %v8254_v29 = vld [vmem:[#allocation14] ss:$0 sm:$0xff]  ;;  %v5228_v24 = vld [vmem:[%s13487_s1 + $0x50] sm:$0xff]  ;;  %v5229_v25 = vld [vmem:[%s13487_s1 + $0x58] sm:$0xff] }
 0xc7e   : > { %9585 = vmatpush3.bf16.msra.mxu0 %v9582_v22  ;;  %v9616_v22 = vpack.c.bf16 %v5225_v21, %v5224_v20 }
 0xd50   : > { %v4580_v33 = vpop.f32.mrb[10].mxu0 }
 0xd51   : > { %v4581_v36 = vadd.f32 %v8248_v31, %v4580_v33  ;;  %v8925_v28 = vpop.f32.mrb[11].mxu0 }
 0xd53   : > { %v4584_v38 = vmax.f32 %v4581_v36, 0.0 }
 0xd55   : > { %8929 = vmatmul.mubr.msk.f32.vlgmr.msra.gmra.mrb[10].mxu1 %vm3855_vm11, %v4584_v38 }
 0xd56   : > { %9561 = vmatpush3.bf16.msra.mxu1 %v9558_v39 }
 0xd57   : > { %9563 = vmatprep.subr.bf16.mxu1 %v9562_v42 }
 0xd5a   : > { %9565 = vmatpush3.bf16.msra.mxu1 %v9562_v42  ;;  %v8268_v42 = vld [vmem:[%s13484_s3 + $0x58] sm:$0xff] }
 0xd5b   : > { %9567 = vmatprep.subr.bf16.mxu1 %v9566_v45 }
 0xd5e   : > { %9569 = vmatpush3.bf16.msra.mxu1 %v9566_v45 }
 0xd5f   : > { %9571 = vmatprep.subr.bf16.mxu1 %v9570_v48 }
 0xd62   : > { %9573 = vmatpush3.bf16.msra.mxu1 %v9570_v48  ;;  %v9594_v48 = vpack.c.bf16 %v8268_v42, %v8267_v41 }
 0xd63   : > { %9575 = vmatprep.subr.bf16.mxu1 %v9574_v52 }
 0xe28   : > { %v4663_v56 = vpop.f32.mrb[10].mxu1 }
 0xe29   : > { %v4664_v59 = vadd.f32 %v8250_v54, %v4663_v56  ;;  %v8930_v60 = vpop.f32.mrb[11].mxu1  ;;  %v5071_v56 = vld [vmem:[%s13485_s2 + $0x10] sm:$0xff] }
 0xe2b   : > { %v4667_v61 = vsel %vm3933_vm12, %v4664_v59, 0.0  ;;  %v5072_v59 = vld [vmem:[%s13485_s2 + $0x18] sm:$0xff] }
 0xe2c   : > { %v4668_v62 = vrot.slane %v4667_v61, 4  ;;  %v9602_v60 = vpack.c.bf16 %v5072_v59, %v5071_v56 }
 0xe2e   : > { %v4669_v63 = vadd.f32 %v4668_v62, %v4667_v61 }
 0xe30   : > { %v4670_v0 = vrot.slane %v4669_v63, 2 }
 0xe32   : > { %v4671_v1 = vadd.f32 %v4670_v0, %v4669_v63  ;;  %v8271_v63 = vld [vmem:[#allocation16] ss:$0 sm:$0xff] }
 0xe34   : > { %v4672_v2 = vrot.slane %v4671_v1, 1 }
 0xe36   : > { %v4673_v3 = vadd.f32 %v4672_v2, %v4671_v1 }
 0xe38   : > { %v8253_v4 = vmul.f32 -1.442695, %v4673_v3 }
 0xe3a   : > { %10339 = vpow2.f32 %v8253_v4 }
 0xe44   : > { %v10340_v8 = vpop.eup %10339 }
 0xe45   : > { %v4677_v10 = vadd.f32 1.0, %v10340_v8 }
 0xe47   : > { %10341 = vrcp.f32 %v4677_v10 }
 0xe51   : > { %v10342_v11 = vpop.eup %10341 }
 0xe52   : > { %v4680_v12 = vmul.f32 %v10342_v11, %v12718_v6  ;;  %v4681_v13 = vmul.f32 %v10342_v11, %v12716_v5  ;;  %v8259_v5 = vld [vmem:[%s13484_s3 + $0x30] sm:$0xff]  ;;  %v8260_v6 = vld [vmem:[%s13484_s3 + $0x38] sm:$0xff] }
 0xe53   : > { %v9578_v19 = vpack.c.bf16 %v8260_v6, %v8259_v5  ;;  %v5222_v5 = vld [vmem:[%s13487_s1 + $0x20] sm:$0xff]  ;;  %v5223_v6 = vld [vmem:[%s13487_s1 + $0x28] sm:$0xff] }
 0xe54   : > { %v4682_v14 = vadd.f32 %v4680_v12, %v12647_v34  ;;  %v4683_v15 = vadd.f32 %v4681_v13, %v12649_v35  ;;  %v5218_v12 = vld [vmem:[%s13486_s16] sm:$0xff]  ;;  %v5219_v13 = vld [vmem:[%s13487_s1 + $0x8] sm:$0xff]  ;;  %s13488_s16 = sld [smem:[#allocation109_spill]] }
 0xe56   : > { %v4684_v9 = vmax.f32 %v4682_v14, 0.0  ;;  %v4685_v16 = vmax.f32 %v4683_v15, 0.0  ;;  %v9607_v14 = vpack.c.bf16 %v5219_v13, %v5218_v12  ;;  %v5220_v15 = vld [vmem:[%s13487_s1 + $0x10] sm:$0xff] }
 0xe57   : > { %v8276_v12 = vld [vmem:[#allocation20] ss:$0 sm:$0xff] }
 0xe58   : > { %v12749_v17 = vadd.f32 %v4684_v9, %v12647_v34  ;;  %v12752_v18 = vadd.f32 %v4685_v16, %v12649_v35  ;;  %v4801_v34 = vld [vmem:[%s13484_s3 + $0x10] sm:$0xff]  ;;  %v4802_v35 = vld [vmem:[%s13484_s3 + $0x18] sm:$0xff]  ;;  %s13492_s3 = sld [smem:[#allocation116_spill]] }
 0xe59   : > { %v9586_v23 = vpack.c.bf16 %v4802_v35, %v4801_v34  ;;  %v5221_v9 = vld [vmem:[%s13487_s1 + $0x18] sm:$0xff]  ;;  %v5226_v34 = vld [vmem:[%s13487_s1 + $0x40] sm:$0xff]  ;;  %v5227_v35 = vld [vmem:[%s13487_s1 + $0x48] sm:$0xff] }
 0xe5a   : > { %8947 = vmatprep.mubr.msk.f32.mxu1 %vm3228_vm6, %v12749_v17  ;;  %v9610_v16 = vpack.c.bf16 %v5221_v9, %v5220_v15 }
 0xe5b   : > { %8948 = vmatmul.mubr.msk.f32.vlgmr.msra.gmra.mrb[12].mxu1 %vm3228_vm6, %v12752_v18  ;;  %9587 = vmatprep.subr.bf16.mxu0 %v9586_v23 }
 0xe5c   : > { %9577 = vmatpush3.bf16.msra.mxu1 %v9574_v52  ;;  %9589 = vmatpush3.bf16.msra.mxu0 %v9586_v23  ;;  %v5070_v52 = vld [vmem:[%s13485_s2 + $0x8] sm:$0xff]  ;;  %v9619_v23 = vpack.c.bf16 %v5227_v35, %v5226_v34  ;;  %s13491_s2 = sld [smem:[#allocation113_spill]] }
 0xe5d   : > { %9579 = vmatprep.subr.bf16.mxu1 %v9578_v19  ;;  %9591 = vmatprep.subr.bf16.mxu0 %v9590_v26  ;;  %v9598_v54 = vpack.c.bf16 %v5070_v52, %v5069_v50 }
 0xe60   : > { %9581 = vmatpush3.bf16.msra.mxu1 %v9578_v19  ;;  %v9613_v19 = vpack.c.bf16 %v5223_v6, %v5222_v5 }
 0xe61   : > { %9599 = vmatprep.subr.bf16.mxu1 %v9598_v54 }
 0xf2e   : > { %v8949_v30 = vpop.f32.mrb[12].mxu1 }
 0xf2f   : > { %v4781_v31 = vadd.f32 %v8949_v30, %v8254_v29  ;;  %v4775_v33 = vpop.f32.mrb[13].mxu1  ;;  %v5231_v30 = vld [vmem:[%s13487_s1 + $0x68] sm:$0xff] }
 0xf30   : > { %v4776_v36 = vadd.f32 %v8254_v29, %v4775_v33  ;;  %v5230_v29 = vld [vmem:[%s13487_s1 + $0x60] sm:$0xff]  ;;  %v5232_v33 = vld [vmem:[%s13487_s1 + $0x70] sm:$0xff] }
 0xf31   : > { %v4785_v28 = vmax.f32 %v4781_v31, 0.0  ;;  %v9625_v31 = vpack.c.bf16 %v5231_v30, %v5230_v29 }
 0xf32   : > { %v4784_v38 = vmax.f32 %v4776_v36, 0.0  ;;  %v5233_v36 = vld [vmem:[%s13487_s1 + $0x78] sm:$0xff] }
 0xf33   : > { %v4788_v57 = vrot.slane %v4785_v28, 7  ;;  %v4794_v27 = vrot.slane %v4785_v28, 1 }
 0xf34   : > { %v4787_v58 = vrot.slane %v4784_v38, 7  ;;  %v4793_v39 = vrot.slane %v4784_v38, 1  ;;  %8958 = vmatprep.mubr.msk.f32.mxu1 %vm4808_vm13, %v4784_v38  ;;  %v8272_v38 = vld [vmem:[#allocation17] ss:$0 sm:$0xff] }
 0xf35   : > { %8959 = vmatmul.mubr.msk.f32.vlgmr.msra.gmra.mrb[14].mxu1 %vm4808_vm13, %v4785_v28  ;;  %v9628_v28 = vpack.c.bf16 %v5233_v36, %v5232_v33 }
 0xf36   : > { %v4790_v43 = vsel %vm2920_vm1, %v4788_v57, %v4787_v58  ;;  %v4789_v44 = vsel %vm2920_vm1, %v4787_v58, %v4788_v57  ;;  %v4795_v45 = vsel %vm2931_vm4, %v4793_v39, %v4794_v27  ;;  %v4796_v46 = vsel %vm2931_vm4, %v4794_v27, %v4793_v39  ;;  %9601 = vmatpush3.bf16.msra.mxu1 %v9598_v54  ;;  %v5163_v39 = vld [vmem:[%s13488_s16] sm:$0x7]  ;;  %s13489_s16 = sld [smem:[#allocation114_spill]] }
 0xf37   : > { %v4791_v47 = vsel %vm2815_vm3, %v4790_v43, 0.0  ;;  %v4798_v49 = vsel %vm2818_vm5, %v4796_v46, 0.0  ;;  %9603 = vmatprep.subr.bf16.mxu1 %v9602_v60  ;;  %v5187_v46 = vrot.slane %v5163_v39, %v12589_v51 }
 0xf38   : > { %8969 = vmatprep.mubr.msk.f32.mxu0 %vm4808_vm13, %v4791_v47  ;;  %v5181_v47 = vrot.slane %v5163_v39, %v12592_v53 }
 0xf39   : > { %8970 = vmatmul.mubr.msk.f32.vlgmr.msra.gmra.mrb[12].mxu0 %vm4808_vm13, %v4789_v44 }
 0xf3a   : > { %9593 = vmatpush3.bf16.msra.mxu0 %v9590_v26  ;;  %8980 = vmatprep.mubr.msk.f32.mxu0 %vm4808_vm13, %v4795_v45  ;;  %v9622_v26 = vpack.c.bf16 %v5229_v25, %v5228_v24 }
 0xf3b   : > { %9595 = vmatprep.subr.bf16.mxu0 %v9594_v48  ;;  %9605 = vmatpush3.bf16.msra.mxu1 %v9602_v60 }
 0xf3c   : > { %9606 = vmatprep.subr.bf16.mxu1 %v11491_v37  ;;  %s13490_s1 = smov %s13489_s16 }
 0xf3e   : > { %9597 = vmatpush3.bf16.msra.mxu0 %v9594_v48  ;;  %v5195_v48 = vrot.slane %v5163_v39, %v12596_v55  ;;  %v8277_v39 = vld [vmem:[#allocation22] ss:$0 sm:$0xff] }
 0xf3f   : > { %9029 = vmatprep.subr.mxu0 %v11493_v40 }
 0xf41   : > { %8981 = vmatmul.mubr.msk.f32.vlgmr.msra.gmra.mrb[12].mxu0 %vm4808_vm13, %v4798_v49 }
 0xf42   : > { %9031 = vmatprep.mubr.msk.f32.mxu0 %vm11492_vm8, %v11493_v40 }
0x1008   : > { %v8960_v61 = vpop.f32.mrb[14].mxu1 }
0x1009   : > { %v4881_v62 = vpop.f32.mrb[15].mxu1 }
0x1014   : > { %v8982_v0 = vpop.f32.mrb[12].mxu0 }
0x1015   : > { %v9943_v1 = vadd.f32 %v8982_v0, %v8960_v61  ;;  %v5048_v2 = vpop.f32.mrb[13].mxu0 }
0x1016   : > { %v9944_v3 = vadd.f32 %v5048_v2, %v4881_v62 }
0x1017   : > { %v5066_v4 = vadd.f32 %v9943_v1, %v8271_v63 }
0x1018   : > { %v5065_v8 = vadd.f32 %v9944_v3, %v8271_v63 }
0x1019   : > { %v5068_v11 = vmax.f32 %v5066_v4, 0.0  ;;  %v8275_v4 = vld [vmem:[#allocation19] ss:$0 sm:$0xff] }
0x101a   : > { %v5067_v10 = vmax.f32 %v5065_v8, 0.0 }
0x101c   : > { %8991 = vmatprep.mubr.msk.f32.mxu1 %vm4808_vm13, %v5067_v10 }
0x101d   : > { %8992 = vmatmul.mubr.msk.f32.vlgmr.msra.gmra.mrb[16].mxu1 %vm4808_vm13, %v5068_v11 }
0x101e   : > { %9026 = vmatprep.mubr.msk.f32.mxu1 %vm11492_vm8, %v11493_v40  ;;  %9608 = vmatpush3.bf16.msra.mxu1 %v9607_v14 }
0x101f   : > { %9609 = vmatprep.subr.bf16.mxu1 %v11491_v37 }
0x1022   : > { %9611 = vmatpush3.bf16.msra.mxu1 %v9610_v16 }
0x1023   : > { %9612 = vmatprep.subr.bf16.mxu1 %v11491_v37 }
0x1026   : > { %9614 = vmatpush3.bf16.msra.mxu1 %v9613_v19 }
0x1027   : > { %9615 = vmatprep.subr.bf16.mxu1 %v11491_v37 }
0x102a   : > { %9617 = vmatpush3.bf16.msra.mxu1 %v9616_v22 }
0x102b   : > { %9618 = vmatprep.subr.bf16.mxu1 %v11491_v37 }
0x102e   : > { %9620 = vmatpush3.bf16.msra.mxu1 %v9619_v23 }
0x102f   : > { %9621 = vmatprep.subr.bf16.mxu1 %v11491_v37 }
0x1032   : > { %9623 = vmatpush3.bf16.msra.mxu1 %v9622_v26 }
0x1033   : > { %9624 = vmatprep.subr.bf16.mxu1 %v11491_v37 }
0x1036   : > { %9626 = vmatpush3.bf16.msra.mxu1 %v9625_v31 }
0x1037   : > { %9627 = vmatprep.subr.bf16.mxu1 %v11491_v37 }
0x103a   : > { %9629 = vmatpush3.bf16.msra.mxu1 %v9628_v28 }
0x10f0   : > { %v8993_v57 = vpop.f32.mrb[16].mxu1 }
0x10f1   : > { %v5158_v27 = vadd.f32 %v8993_v57, %v8272_v38  ;;  %v5152_v58 = vpop.f32.mrb[17].mxu1  ;;  %v5427_v57 = vld [vmem:[%s13490_s1 + $0x8] sm:$0xff] }
0x10f2   : > { %v5153_v41 = vadd.f32 %v8272_v38, %v5152_v58  ;;  %v5426_v38 = vld [vmem:[%s13489_s16] sm:$0xff]  ;;  %s13494_s16 = sld [smem:[#allocation120_spill]] }
0x10f3   : > { %v5162_v42 = vmax.f32 %v5158_v27, 0.0  ;;  %v5235_v27 = vld [vmem:[%s13491_s2] sm:$0xff]  ;;  %v9630_v58 = vpack.c.bf16 %v5427_v57, %v5426_v38  ;;  %s13493_s2 = sld [smem:[#allocation118_spill]] }
0x10f4   : > { %v5161_v43 = vmax.f32 %v5153_v41, 0.0  ;;  %9030 = vmatpush3.msra.mxu0 %v5235_v27 }
0x10f5   : > { %v5167_v44 = vrot.slane %v5162_v42, 7  ;;  %v5173_v45 = vrot.slane %v5162_v42, 1  ;;  %v5189_v60 = vmul.f32 %v5187_v46, %v5162_v42  ;;  %9631 = vmatprep.subr.bf16.mxu0 %v9630_v58  ;;  %v5428_v42 = vld [vmem:[%s13490_s1 + $0x10] sm:$0xff] }
0x10f6   : > { %v5166_v49 = vrot.slane %v5161_v43, 7  ;;  %v5172_v50 = vrot.slane %v5161_v43, 1  ;;  %v5188_v1 = vmul.f32 %v5187_v46, %v5161_v43  ;;  %v5429_v43 = vld [vmem:[%s13490_s1 + $0x18] sm:$0xff] }
0x10f8   : > { %v5168_v52 = vsel %vm2920_vm1, %v5166_v49, %v5167_v44  ;;  %v5169_v54 = vsel %vm2920_vm1, %v5167_v44, %v5166_v49  ;;  %v5174_v56 = vsel %vm2931_vm4, %v5172_v50, %v5173_v45  ;;  %v5175_v59 = vsel %vm2931_vm4, %v5173_v45, %v5172_v50  ;;  %v5431_v49 = vld [vmem:[%s13490_s1 + $0x28] sm:$0xff] }
0x10f9   : > { %v5170_v61 = vsel %vm2815_vm3, %v5169_v54, 0.0  ;;  %v5177_v62 = vsel %vm2818_vm5, %v5175_v59, 0.0  ;;  %v5183_v63 = vmul.f32 %v5181_v47, %v5168_v52  ;;  %v5196_v10 = vmul.f32 %v5195_v48, %v5174_v56  ;;  %v5432_v52 = vld [vmem:[%s13490_s1 + $0x30] sm:$0xff]  ;;  %v5433_v54 = vld [vmem:[%s13490_s1 + $0x38] sm:$0xff]  ;;  %v5520_v59 = vld [vmem:[%s13492_s3] sm:$0xff] }
0x10fa   : > { %v5182_v0 = vmul.f32 %v5181_v47, %v5170_v61  ;;  %v5197_v2 = vmul.f32 %v5195_v48, %v5177_v62  ;;  %v9634_v47 = vpack.c.bf16 %v5429_v43, %v5428_v42  ;;  %v5430_v48 = vld [vmem:[%s13490_s1 + $0x20] sm:$0xff]  ;;  %v9642_v56 = vpack.c.bf16 %v5433_v54, %v5432_v52  ;;  %v5522_v61 = vld [vmem:[%s13492_s3 + $0x10] sm:$0xff]  ;;  %v5523_v62 = vld [vmem:[%s13492_s3 + $0x18] sm:$0xff]  ;;  %s13495_s1 = smov %s13494_s16 }
0x10fb   : > { %v5191_v3 = vadd.f32 %v5189_v60, %v5183_v63  ;;  %v9638_v50 = vpack.c.bf16 %v5431_v49, %v5430_v48  ;;  %v9650_v63 = vpack.c.bf16 %v5523_v62, %v5522_v61  ;;  %v8281_v42 = vld [vmem:[#allocation25] ss:$0 sm:$0xff] }
0x10fc   : > { %v5190_v8 = vadd.f32 %v5188_v1, %v5182_v0  ;;  %v5524_v0 = vld [vmem:[%s13492_s3 + $0x20] sm:$0xff]  ;;  %v5525_v1 = vld [vmem:[%s13492_s3 + $0x28] sm:$0xff]  ;;  %v8288_v54 = vld [vmem:[%s13493_s2 + $0x38] sm:$0xff] }
0x10fd   : > { %v5199_v11 = vadd.f32 %v5197_v2, %v5191_v3  ;;  %v9654_v2 = vpack.c.bf16 %v5525_v1, %v5524_v0  ;;  %v5527_v3 = vld [vmem:[%s13492_s3 + $0x38] sm:$0xff]  ;;  %v5635_v1 = vld [vmem:[%s13493_s2 + $0x10] sm:$0xff] }
0x10fe   : > { %v5198_v13 = vadd.f32 %v5196_v10, %v5190_v8  ;;  %v5528_v8 = vld [vmem:[%s13492_s3 + $0x40] sm:$0xff]  ;;  %v5529_v10 = vld [vmem:[%s13492_s3 + $0x48] sm:$0xff] }
0x10ff   : > { %v5207_v14 = vmul.f32 %v8275_v4, %v5199_v11  ;;  %v9662_v11 = vpack.c.bf16 %v5529_v10, %v5528_v8 }
0x1100   : > { %v5206_v15 = vmul.f32 %v8275_v4, %v5198_v13  ;;  %v5531_v13 = vld [vmem:[%s13492_s3 + $0x58] sm:$0xff] }
0x1101   : > { %v5215_v9 = vadd.f32 %v8276_v12, %v5207_v14 }
0x1102   : > { %v5214_v16 = vadd.f32 %v8276_v12, %v5206_v15  ;;  %v5530_v12 = vld [vmem:[%s13492_s3 + $0x50] sm:$0xff]  ;;  %v5532_v15 = vld [vmem:[%s13492_s3 + $0x60] sm:$0xff] }
0x1103   : > { %v12837_v5 = vmax.f32 %v5215_v9, 0.0  ;;  %v9666_v14 = vpack.c.bf16 %v5531_v13, %v5530_v12  ;;  %v5533_v9 = vld [vmem:[%s13492_s3 + $0x68] sm:$0xff]  ;;  %v8293_v13 = vld [vmem:[%s13493_s2 + $0x40] sm:$0xff] }
0x1104   : > { %v12839_v6 = vmax.f32 %v5214_v16, 0.0  ;;  %v9670_v16 = vpack.c.bf16 %v5533_v9, %v5532_v15 }
0x1106   : > { %v5237_v19 = vadd.f32 %v12837_v5, %v12839_v6  ;;  %v5245_v20 = vmax.f32 %v12839_v6, %v12837_v5 }
0x1108   : > { %v5238_v21 = vrot.slane %v5237_v19, 4  ;;  %v5246_v22 = vrot.slane %v5245_v20, 4 }
0x110a   : > { %v5239_v34 = vadd.f32 %v5238_v21, %v5237_v19  ;;  %v5247_v35 = vmax.f32 %v5245_v20, %v5246_v22  ;;  %v5534_v19 = vld [vmem:[%s13492_s3 + $0x70] sm:$0xff]  ;;  %v5535_v20 = vld [vmem:[%s13492_s3 + $0x78] sm:$0xff]  ;;  %v8285_v22 = vld [vmem:[%s13493_s2 + $0x20] sm:$0xff] }
0x110b   : > { %v9674_v21 = vpack.c.bf16 %v5535_v20, %v5534_v19 }
0x110c   : > { %v5240_v23 = vrot.slane %v5239_v34, 2  ;;  %v5248_v24 = vrot.slane %v5247_v35, 2 }
0x110e   : > { %v5241_v25 = vadd.f32 %v5240_v23, %v5239_v34  ;;  %v5249_v26 = vmax.f32 %v5247_v35, %v5248_v24  ;;  %v8286_v34 = vld [vmem:[%s13493_s2 + $0x28] sm:$0xff]  ;;  %v8278_v23 = vld [vmem:[#allocation23] ss:$0 sm:$0xff] }
0x110f   : > { %v9678_v35 = vpack.c.bf16 %v8286_v34, %v8285_v22  ;;  %v8295_v22 = vld [vmem:[%s13493_s2 + $0x50] sm:$0xff]  ;;  %v8296_v34 = vld [vmem:[%s13493_s2 + $0x58] sm:$0xff] }
0x1110   : > { %v5242_v29 = vrot.slane %v5241_v25, 1  ;;  %v5250_v30 = vrot.slane %v5249_v26, 1 }
0x1111   : > { %9679 = vmatprep.subr.bf16.mxu1 %v9678_v35 }
0x1112   : > { %v5243_v31 = vadd.f32 %v5242_v29, %v5241_v25  ;;  %v5251_v36 = vmax.f32 %v5249_v26, %v5250_v30 }
0x1114   : > { %v5244_v33 = vmul.f32 0.0625, %v5243_v31 }
0x1116   : > { %v5252_v28 = vsel %vm3767_vm9, %v5244_v33, %v5251_v36 }
0x1117   : > { %9027 = vmatmul.mubr.f32.vlgmr.msra.gmra.mrb[18].mxu1 %v5252_v28 }
0x1118   : > { %9681 = vmatpush3.bf16.msra.mxu1 %v9678_v35  ;;  %v9698_v35 = vpack.c.bf16 %v8296_v34, %v8295_v22 }
0x11ea   : > { %v5325_v41 = vpop.f32.mrb[18].mxu1 }
0x11eb   : > { %v5326_v44 = vadd.f32 %v8277_v39, %v5325_v41  ;;  %v9028_v45 = vpop.f32.mrb[19].mxu1 }
0x11ed   : > { %v5329_v46 = vmax.f32 %v5326_v44, 0.0 }
0x11ef   : > { %9032 = vmatmul.mubr.msk.f32.vlgmr.msra.gmra.mrb[14].mxu0 %vm5336_vm14, %v5329_v46 }
0x11f0   : > { %9633 = vmatpush3.bf16.msra.mxu0 %v9630_v58  ;;  %9050 = vmatprep.mubr.msk.f32.mxu0 %vm3228_vm6, %v12749_v17  ;;  %v5521_v17 = vld [vmem:[%s13492_s3 + $0x8] sm:$0xff] }
0x11f1   : > { %9635 = vmatprep.subr.bf16.mxu0 %v9634_v47  ;;  %v9646_v60 = vpack.c.bf16 %v5521_v17, %v5520_v59  ;;  %v5634_v59 = vld [vmem:[%s13493_s2 + $0x8] sm:$0xff] }
0x11f4   : > { %9637 = vmatpush3.bf16.msra.mxu0 %v9634_v47 }
0x11f5   : > { %9639 = vmatprep.subr.bf16.mxu0 %v9638_v50 }
0x11f8   : > { %9641 = vmatpush3.bf16.msra.mxu0 %v9638_v50 }
0x11f9   : > { %9643 = vmatprep.subr.bf16.mxu0 %v9642_v56 }
0x11fc   : > { %9645 = vmatpush3.bf16.msra.mxu0 %v9642_v56 }
0x11fd   : > { %9647 = vmatprep.subr.bf16.mxu0 %v9646_v60 }
0x11ff   : > { %9051 = vmatmul.mubr.msk.f32.vlgmr.msra.gmra.mrb[16].mxu0 %vm3228_vm6, %v12752_v18  ;;  %v5526_v18 = vld [vmem:[%s13492_s3 + $0x30] sm:$0xff] }
0x1200   : > { %9649 = vmatpush3.bf16.msra.mxu0 %v9646_v60  ;;  %v9658_v4 = vpack.c.bf16 %v5527_v3, %v5526_v18  ;;  %v8284_v60 = vld [vmem:[#allocation26] ss:$0 sm:$0xff] }
0x1201   : > { %9651 = vmatprep.subr.bf16.mxu0 %v9650_v63 }
0x1204   : > { %9653 = vmatpush3.bf16.msra.mxu0 %v9650_v63 }
0x1205   : > { %9655 = vmatprep.subr.bf16.mxu0 %v9654_v2 }
0x1208   : > { %9657 = vmatpush3.bf16.msra.mxu0 %v9654_v2  ;;  %v5636_v2 = vld [vmem:[%s13493_s2 + $0x18] sm:$0xff] }
0x1209   : > { %9659 = vmatprep.subr.bf16.mxu0 %v9658_v4  ;;  %v9690_v10 = vpack.c.bf16 %v5636_v2, %v5635_v1 }
0x120c   : > { %9661 = vmatpush3.bf16.msra.mxu0 %v9658_v4 }
0x120d   : > { %9663 = vmatprep.subr.bf16.mxu0 %v9662_v11 }
0x1210   : > { %9665 = vmatpush3.bf16.msra.mxu0 %v9662_v11 }
0x1211   : > { %9667 = vmatprep.subr.bf16.mxu0 %v9666_v14 }
0x1214   : > { %9669 = vmatpush3.bf16.msra.mxu0 %v9666_v14  ;;  %v8294_v14 = vld [vmem:[%s13493_s2 + $0x48] sm:$0xff] }
0x1215   : > { %9671 = vmatprep.subr.bf16.mxu0 %v9670_v16 }
0x1218   : > { %9673 = vmatpush3.bf16.msra.mxu0 %v9670_v16 }
0x1219   : > { %9675 = vmatprep.subr.bf16.mxu0 %v9674_v21 }
0x121c   : > { %9677 = vmatpush3.bf16.msra.mxu0 %v9674_v21  ;;  %v9694_v21 = vpack.c.bf16 %v8294_v14, %v8293_v13 }
0x121d   : > { %9710 = vmatprep.subr.bf16.mxu0 %v11491_v37 }
0x12c2   : > { %v5406_v24 = vpop.f32.mrb[14].mxu0 }
0x12c3   : > { %v5407_v25 = vadd.f32 %v8278_v23, %v5406_v24  ;;  %v9033_v26 = vpop.f32.mrb[15].mxu0  ;;  %v5902_v23 = vld [vmem:[%s13494_s16] sm:$0xff]  ;;  %v5903_v24 = vld [vmem:[%s13495_s1 + $0x8] sm:$0xff]  ;;  %s13497_s16 = sld [smem:[#allocation121_spill]] }
0x12c5   : > { %v5411_v29 = vsel %vm5410_vm15, %v5407_v25, 0.0  ;;  %v9702_v25 = vpack.c.bf16 %v5903_v24, %v5902_v23 }
0x12c6   : > { %v5412_v30 = vrot.slane %v5411_v29, 4 }
0x12c8   : > { %v5413_v31 = vadd.f32 %v5412_v30, %v5411_v29  ;;  %v5904_v29 = vld [vmem:[%s13495_s1 + $0x10] sm:$0xff]  ;;  %v5905_v30 = vld [vmem:[%s13495_s1 + $0x18] sm:$0xff]  ;;  %s13499_s1 = sld [smem:[#allocation127_spill]] }
0x12ca   : > { %v5414_v33 = vrot.slane %v5413_v31, 2 }
0x12cc   : > { %v5415_v36 = vadd.f32 %v5414_v33, %v5413_v31  ;;  %v9706_v31 = vpack.c.bf16 %v5905_v30, %v5904_v29  ;;  %v8299_v33 = vld [vmem:[#allocation28] ss:$0 sm:$0xff] }
0x12ce   : > { %v5416_v28 = vrot.slane %v5415_v36, 1 }
0x12d0   : > { %v5417_v38 = vadd.f32 %v5416_v28, %v5415_v36 }
0x12d2   : > { %v8280_v57 = vmul.f32 -1.442695, %v5417_v38  ;;  %v9052_v27 = vpop.f32.mrb[16].mxu0 }
0x12d3   : > { %v5507_v58 = vpop.f32.mrb[17].mxu0  ;;  %v5513_v45 = vadd.f32 %v9052_v27, %v8281_v42 }
0x12d4   : > { %10343 = vpow2.f32 %v8280_v57  ;;  %v5508_v47 = vadd.f32 %v8281_v42, %v5507_v58 }
0x12de   : > { %v10344_v39 = vpop.eup %10343 }
0x12df   : > { %v5421_v41 = vadd.f32 1.0, %v10344_v39 }
0x12e1   : > { %10345 = vrcp.f32 %v5421_v41 }
0x12eb   : > { %v10346_v43 = vpop.eup %10345 }
0x12ec   : > { %v5425_v44 = vmul.f32 %v10346_v43, %v12837_v5  ;;  %v5424_v46 = vmul.f32 %v10346_v43, %v12839_v6  ;;  %v8287_v5 = vld [vmem:[%s13493_s2 + $0x30] sm:$0xff]  ;;  %v5633_v6 = vld [vmem:[%s13493_s2] sm:$0xff]  ;;  %s13496_s2 = sld [smem:[#allocation123_spill]] }
0x12ed   : > { %v9682_v56 = vpack.c.bf16 %v8288_v54, %v8287_v5  ;;  %v9686_v17 = vpack.c.bf16 %v5634_v59, %v5633_v6 }
0x12ee   : > { %v5517_v48 = vadd.f32 %v5513_v45, %v5425_v44  ;;  %v5516_v49 = vadd.f32 %v5508_v47, %v5424_v46 }
0x12ef   : > { %9683 = vmatprep.subr.bf16.mxu1 %v9682_v56 }
0x12f0   : > { %v12882_v50 = vmax.f32 %v5517_v48, 0.0  ;;  %v12884_v52 = vmax.f32 %v5516_v49, 0.0  ;;  %9685 = vmatpush3.bf16.msra.mxu1 %v9682_v56 }
0x12f1   : > { %9687 = vmatprep.subr.bf16.mxu1 %v9686_v17 }
0x12f2   : > { %9085 = vmatprep.mubr.f32.mxu0 %v12884_v52  ;;  %v6051_v39 = vld [vmem:[%s13496_s2] sm:$0xff]  ;;  %v6052_v41 = vld [vmem:[%s13496_s2 + $0x8] sm:$0xff]  ;;  %v6053_v43 = vld [vmem:[%s13496_s2 + $0x10] sm:$0xff] }
0x12f3   : > { %9086 = vmatmul.mubr.f32.vlgmr.msra.gmra.mrb[18].mxu0 %v12882_v50  ;;  %v9711_v42 = vpack.c.bf16 %v6052_v41, %v6051_v39  ;;  %v6054_v44 = vld [vmem:[%s13496_s2 + $0x18] sm:$0xff]  ;;  %v6055_v46 = vld [vmem:[%s13496_s2 + $0x20] sm:$0xff]  ;;  %v6056_v47 = vld [vmem:[%s13496_s2 + $0x28] sm:$0xff] }
0x12f4   : > { %9164 = vmatprep.mubr.msk.f32.mxu0 %vm11492_vm8, %v11493_v40  ;;  %v9714_v45 = vpack.c.bf16 %v6054_v44, %v6053_v43  ;;  %v9717_v48 = vpack.c.bf16 %v6056_v47, %v6055_v46  ;;  %v6057_v49 = vld [vmem:[%s13496_s2 + $0x30] sm:$0xff]  ;;  %v6058_v5 = vld [vmem:[%s13496_s2 + $0x38] sm:$0xff]  ;;  %v6059_v56 = vld [vmem:[%s13496_s2 + $0x40] sm:$0xff] }
0x12f5   : > { %9712 = vmatpush3.bf16.msra.mxu0 %v9711_v42  ;;  %v9720_v54 = vpack.c.bf16 %v6058_v5, %v6057_v49  ;;  %v6060_v6 = vld [vmem:[%s13496_s2 + $0x48] sm:$0xff]  ;;  %v6065_v1 = vld [vmem:[%s13496_s2 + $0x70] sm:$0xff]  ;;  %v6066_v2 = vld [vmem:[%s13496_s2 + $0x78] sm:$0xff] }
0x12f6   : > { %9713 = vmatprep.subr.bf16.mxu0 %v11491_v37  ;;  %v9723_v59 = vpack.c.bf16 %v6060_v6, %v6059_v56  ;;  %v8304_v39 = vld [vmem:[#allocation32] ss:$0 sm:$0xff] }
0x12f9   : > { %9715 = vmatpush3.bf16.msra.mxu0 %v9714_v45 }
0x12fa   : > { %9716 = vmatprep.subr.bf16.mxu0 %v11491_v37 }
0x12fd   : > { %9718 = vmatpush3.bf16.msra.mxu0 %v9717_v48 }
0x12fe   : > { %9719 = vmatprep.subr.bf16.mxu0 %v11491_v37 }
0x1301   : > { %9721 = vmatpush3.bf16.msra.mxu0 %v9720_v54 }
0x1302   : > { %9722 = vmatprep.subr.bf16.mxu0 %v11491_v37 }
0x1305   : > { %9724 = vmatpush3.bf16.msra.mxu0 %v9723_v59 }
0x1306   : > { %9725 = vmatprep.subr.bf16.mxu0 %v11491_v37 }
0x13c6   : > { %v9087_v61 = vpop.f32.mrb[18].mxu0 }
0x13c7   : > { %v5615_v62 = vadd.f32 %v9087_v61, %v8284_v60  ;;  %v5609_v63 = vpop.f32.mrb[19].mxu0 }
0x13c8   : > { %v5610_v0 = vadd.f32 %v8284_v60, %v5609_v63  ;;  %v6062_v60 = vld [vmem:[%s13496_s2 + $0x58] sm:$0xff]  ;;  %v6064_v63 = vld [vmem:[%s13496_s2 + $0x68] sm:$0xff] }
0x13c9   : > { %v5619_v18 = vmax.f32 %v5615_v62, 0.0  ;;  %v6063_v62 = vld [vmem:[%s13496_s2 + $0x60] sm:$0xff] }
0x13ca   : > { %v5618_v3 = vmax.f32 %v5610_v0, 0.0  ;;  %v9729_v0 = vpack.c.bf16 %v6064_v63, %v6063_v62 }
0x13cb   : > { %v5622_v4 = vrot.slane %v5619_v18, 7  ;;  %v5628_v8 = vrot.slane %v5619_v18, 1 }
0x13cc   : > { %v5621_v11 = vrot.slane %v5618_v3, 7  ;;  %v5627_v12 = vrot.slane %v5618_v3, 1  ;;  %9096 = vmatprep.mubr.msk.f32.mxu1 %vm4808_vm13, %v5618_v3  ;;  %v8300_v3 = vld [vmem:[#allocation29] ss:$0 sm:$0xff] }
0x13cd   : > { %9097 = vmatmul.mubr.msk.f32.vlgmr.msra.gmra.mrb[20].mxu1 %vm4808_vm13, %v5619_v18  ;;  %v9732_v18 = vpack.c.bf16 %v6066_v2, %v6065_v1 }
0x13ce   : > { %9689 = vmatpush3.bf16.msra.mxu1 %v9686_v17  ;;  %v5624_v15 = vsel %vm2920_vm1, %v5622_v4, %v5621_v11  ;;  %v5623_v9 = vsel %vm2920_vm1, %v5621_v11, %v5622_v4  ;;  %v5629_v16 = vsel %vm2931_vm4, %v5627_v12, %v5628_v8  ;;  %v5630_v19 = vsel %vm2931_vm4, %v5628_v8, %v5627_v12  ;;  %v6061_v17 = vld [vmem:[%s13496_s2 + $0x50] sm:$0xff]  ;;  %v5996_v11 = vld [vmem:[%s13497_s16] sm:$0x7]  ;;  %s13498_s16 = sld [smem:[#allocation125_spill]] }
0x13cf   : > { %v5625_v20 = vsel %vm2815_vm3, %v5624_v15, 0.0  ;;  %9691 = vmatprep.subr.bf16.mxu1 %v9690_v10  ;;  %v5632_v26 = vsel %vm2818_vm5, %v5630_v19, 0.0  ;;  %v9726_v61 = vpack.c.bf16 %v6062_v60, %v6061_v17  ;;  %v6014_v19 = vrot.slane %v5996_v11, %v12592_v53 }
0x13d0   : > { %9107 = vmatprep.mubr.msk.f32.mxu1 %vm4808_vm13, %v5625_v20  ;;  %v6028_v20 = vrot.slane %v5996_v11, %v12596_v55 }
0x13d1   : > { %9727 = vmatpush3.bf16.msra.mxu0 %v9726_v61 }
0x13d2   : > { %9693 = vmatpush3.bf16.msra.mxu1 %v9690_v10  ;;  %9728 = vmatprep.subr.bf16.mxu0 %v11491_v37 }
0x13d3   : > { %9695 = vmatprep.subr.bf16.mxu1 %v9694_v21 }
0x13d5   : > { %9108 = vmatmul.mubr.msk.f32.vlgmr.msra.gmra.mrb[20].mxu1 %vm4808_vm13, %v5623_v9  ;;  %9730 = vmatpush3.bf16.msra.mxu0 %v9729_v0 }
0x13d6   : > { %9697 = vmatpush3.bf16.msra.mxu1 %v9694_v21  ;;  %9118 = vmatprep.mubr.msk.f32.mxu1 %vm4808_vm13, %v5629_v16  ;;  %v6020_v16 = vrot.slane %v5996_v11, %v12589_v51 }
0x13d7   : > { %9699 = vmatprep.subr.bf16.mxu1 %v9698_v35  ;;  %9731 = vmatprep.subr.bf16.mxu0 %v11491_v37 }
0x13d9   : > { %9733 = vmatpush3.bf16.msra.mxu0 %v9732_v18 }
0x13da   : > { %9701 = vmatpush3.bf16.msra.mxu1 %v9698_v35 }
0x13db   : > { %9703 = vmatprep.subr.bf16.mxu1 %v9702_v25 }
0x13dd   : > { %9119 = vmatmul.mubr.msk.f32.vlgmr.msra.gmra.mrb[20].mxu1 %vm4808_vm13, %v5632_v26 }
0x13de   : > { %9705 = vmatpush3.bf16.msra.mxu1 %v9702_v25 }
0x13df   : > { %9707 = vmatprep.subr.bf16.mxu1 %v9706_v31 }
0x13e2   : > { %9709 = vmatpush3.bf16.msra.mxu1 %v9706_v31 }
0x13e3   : > { %9167 = vmatprep.subr.mxu1 %v11493_v40 }
0x14b0   : > { %v9120_v36 = vpop.f32.mrb[20].mxu1 }
0x14b1   : > { %v5899_v28 = vadd.f32 %v9120_v36, %v8299_v33  ;;  %v5881_v38 = vpop.f32.mrb[21].mxu1 }
0x14b2   : > { %v5898_v57 = vadd.f32 %v8299_v33, %v5881_v38  ;;  %v8303_v38 = vld [vmem:[#allocation31] ss:$0 sm:$0xff] }
0x14b3   : > { %v5901_v58 = vmax.f32 %v5899_v28, 0.0 }
0x14b4   : > { %v5900_v27 = vmax.f32 %v5898_v57, 0.0 }
0x14b6   : > { %9129 = vmatprep.mubr.msk.f32.mxu1 %vm4808_vm13, %v5900_v27 }
0x14b7   : > { %9130 = vmatmul.mubr.msk.f32.vlgmr.msra.gmra.mrb[22].mxu1 %vm4808_vm13, %v5901_v58 }
0x14b8   : > { %9169 = vmatprep.mubr.msk.f32.mxu1 %vm11492_vm8, %v11493_v40 }
0x158a   : > { %v9131_v4 = vpop.f32.mrb[22].mxu1 }
0x158b   : > { %v5991_v8 = vadd.f32 %v9131_v4, %v8300_v3  ;;  %v5985_v10 = vpop.f32.mrb[23].mxu1  ;;  %v8305_v4 = vld [vmem:[#allocation34] ss:$0 sm:$0xff] }
0x158c   : > { %v5986_v12 = vadd.f32 %v8300_v3, %v5985_v10  ;;  %v6068_v3 = vld [vmem:[%s13498_s16] sm:$0xff]  ;;  %s13500_s16 = sld [smem:[#allocation129_spill]] }
0x158d   : > { %v5995_v13 = vmax.f32 %v5991_v8, 0.0  ;;  %9168 = vmatpush3.msra.mxu1 %v6068_v3 }
0x158e   : > { %v5994_v14 = vmax.f32 %v5986_v12, 0.0 }
0x158f   : > { %v6000_v15 = vrot.slane %v5995_v13, 7  ;;  %v6006_v9 = vrot.slane %v5995_v13, 1  ;;  %v6022_v25 = vmul.f32 %v6020_v16, %v5995_v13  ;;  %v6263_v13 = vld [vmem:[%s13499_s1] sm:$0xff] }
0x1590   : > { %v5999_v21 = vrot.slane %v5994_v14, 7  ;;  %v6005_v22 = vrot.slane %v5994_v14, 1  ;;  %v6021_v33 = vmul.f32 %v6020_v16, %v5994_v14  ;;  %v6264_v14 = vld [vmem:[%s13499_s1 + $0x8] sm:$0xff]  ;;  %v6266_v16 = vld [vmem:[%s13499_s1 + $0x18] sm:$0xff] }
0x1592   : > { %v6001_v34 = vsel %vm2920_vm1, %v5999_v21, %v6000_v15  ;;  %v6002_v35 = vsel %vm2920_vm1, %v6000_v15, %v5999_v21  ;;  %v6007_v23 = vsel %vm2931_vm4, %v6005_v22, %v6006_v9  ;;  %v6008_v24 = vsel %vm2931_vm4, %v6006_v9, %v6005_v22  ;;  %v6265_v9 = vld [vmem:[%s13499_s1 + $0x10] sm:$0xff]  ;;  %v6268_v21 = vld [vmem:[%s13499_s1 + $0x28] sm:$0xff]  ;;  %s13501_s2 = smov %s13500_s16 }
0x1593   : > { %v6003_v26 = vsel %vm2815_vm3, %v6002_v35, 0.0  ;;  %v6010_v29 = vsel %vm2818_vm5, %v6008_v24, 0.0  ;;  %v6016_v30 = vmul.f32 %v6014_v19, %v6001_v34  ;;  %v6029_v27 = vmul.f32 %v6028_v20, %v6007_v23  ;;  %v6269_v34 = vld [vmem:[%s13499_s1 + $0x30] sm:$0xff]  ;;  %v6270_v35 = vld [vmem:[%s13499_s1 + $0x38] sm:$0xff]  ;;  %v6271_v24 = vld [vmem:[%s13499_s1 + $0x40] sm:$0xff] }
0x1594   : > { %v6015_v31 = vmul.f32 %v6014_v19, %v6003_v26  ;;  %v6030_v36 = vmul.f32 %v6028_v20, %v6010_v29  ;;  %v9734_v15 = vpack.c.bf16 %v6264_v14, %v6263_v13  ;;  %v9738_v19 = vpack.c.bf16 %v6266_v16, %v6265_v9  ;;  %v6267_v20 = vld [vmem:[%s13499_s1 + $0x20] sm:$0xff]  ;;  %v6273_v26 = vld [vmem:[%s13499_s1 + $0x50] sm:$0xff] }
0x1595   : > { %v6024_v28 = vadd.f32 %v6022_v25, %v6016_v30  ;;  %v9742_v22 = vpack.c.bf16 %v6268_v21, %v6267_v20  ;;  %v9746_v23 = vpack.c.bf16 %v6270_v35, %v6269_v34  ;;  %v6272_v25 = vld [vmem:[%s13499_s1 + $0x48] sm:$0xff]  ;;  %v6274_v30 = vld [vmem:[%s13499_s1 + $0x58] sm:$0xff]  ;;  %v6378_v21 = vld [vmem:[%s13501_s2 + $0x10] sm:$0xff] }
0x1596   : > { %v6023_v57 = vadd.f32 %v6021_v33, %v6015_v31  ;;  %9735 = vmatprep.subr.bf16.mxu1 %v9734_v15  ;;  %v9750_v29 = vpack.c.bf16 %v6272_v25, %v6271_v24  ;;  %v9754_v31 = vpack.c.bf16 %v6274_v30, %v6273_v26  ;;  %v6275_v33 = vld [vmem:[%s13499_s1 + $0x60] sm:$0xff] }
0x1597   : > { %v6032_v58 = vadd.f32 %v6030_v36, %v6024_v28  ;;  %v6276_v36 = vld [vmem:[%s13499_s1 + $0x68] sm:$0xff]  ;;  %v8318_v30 = vld [vmem:[%s13501_s2 + $0x40] sm:$0xff] }
0x1598   : > { %v6031_v41 = vadd.f32 %v6029_v27, %v6023_v57  ;;  %v9758_v28 = vpack.c.bf16 %v6276_v36, %v6275_v33  ;;  %v6278_v57 = vld [vmem:[%s13499_s1 + $0x78] sm:$0xff] }
0x1599   : > { %v6040_v42 = vmul.f32 %v8303_v38, %v6032_v58  ;;  %v8310_v58 = vld [vmem:[%s13500_s16 + $0x20] sm:$0xff]  ;;  %s13502_s16 = sld [smem:[#allocation131_spill]] }
0x159a   : > { %v6039_v43 = vmul.f32 %v8303_v38, %v6031_v41  ;;  %v6277_v38 = vld [vmem:[%s13499_s1 + $0x70] sm:$0xff] }
0x159b   : > { %v6048_v44 = vadd.f32 %v8304_v39, %v6040_v42  ;;  %v9762_v27 = vpack.c.bf16 %v6278_v57, %v6277_v38  ;;  %v8306_v42 = vld [vmem:[#allocation35] ss:$0 sm:$0xff] }
0x159c   : > { %v6047_v45 = vadd.f32 %v8304_v39, %v6039_v43  ;;  %v8311_v39 = vld [vmem:[%s13501_s2 + $0x28] sm:$0xff] }
0x159d   : > { %v12966_v46 = vmax.f32 %v6048_v44, 0.0  ;;  %v9766_v41 = vpack.c.bf16 %v8311_v39, %v8310_v58  ;;  %v8320_v58 = vld [vmem:[%s13501_s2 + $0x50] sm:$0xff]  ;;  %v8321_v39 = vld [vmem:[%s13501_s2 + $0x58] sm:$0xff] }
0x159e   : > { %v12968_v47 = vmax.f32 %v6047_v45, 0.0 }
0x159f   : > { %9767 = vmatprep.subr.bf16.mxu0 %v9766_v41  ;;  %s13503_s1 = smov %s13502_s16 }
0x15a0   : > { %v6070_v48 = vadd.f32 %v12966_v46, %v12968_v47  ;;  %v6078_v49 = vmax.f32 %v12968_v47, %v12966_v46  ;;  %v6646_v14 = vld [vmem:[%s13503_s1 + $0x8] sm:$0xff] }
0x15a2   : > { %v6071_v5 = vrot.slane %v6070_v48, 4  ;;  %v6079_v54 = vrot.slane %v6078_v49, 4 }
0x15a4   : > { %v6072_v56 = vadd.f32 %v6071_v5, %v6070_v48  ;;  %v6080_v6 = vmax.f32 %v6078_v49, %v6079_v54 }
0x15a6   : > { %v6073_v59 = vrot.slane %v6072_v56, 2  ;;  %v6081_v17 = vrot.slane %v6080_v6, 2 }
0x15a8   : > { %v6074_v60 = vadd.f32 %v6073_v59, %v6072_v56  ;;  %v6082_v61 = vmax.f32 %v6080_v6, %v6081_v17 }
0x15aa   : > { %v6075_v62 = vrot.slane %v6074_v60, 1  ;;  %v6083_v63 = vrot.slane %v6082_v61, 1 }
0x15ac   : > { %v6076_v0 = vadd.f32 %v6075_v62, %v6074_v60  ;;  %v6084_v2 = vmax.f32 %v6082_v61, %v6083_v63 }
0x15ae   : > { %v6077_v1 = vmul.f32 0.0625, %v6076_v0 }
0x15b0   : > { %v6085_v18 = vsel %vm3767_vm9, %v6077_v1, %v6084_v2 }
0x15b1   : > { %9165 = vmatmul.mubr.f32.vlgmr.msra.gmra.mrb[20].mxu0 %v6085_v18 }
0x15b2   : > { %9769 = vmatpush3.bf16.msra.mxu0 %v9766_v41  ;;  %v9786_v41 = vpack.c.bf16 %v8321_v39, %v8320_v58 }
0x1684   : > { %v6158_v8 = vpop.f32.mrb[20].mxu0 }
0x1685   : > { %v6159_v10 = vadd.f32 %v8305_v4, %v6158_v8  ;;  %v9166_v11 = vpop.f32.mrb[21].mxu0 }
0x1686   : > { %v6376_v11 = vld [vmem:[%s13501_s2] sm:$0xff] }
0x1687   : > { %v6162_v12 = vmax.f32 %v6159_v10, 0.0 }
0x1689   : > { %9170 = vmatmul.mubr.msk.f32.vlgmr.msra.gmra.mrb[24].mxu1 %vm5336_vm14, %v6162_v12  ;;  %v6377_v12 = vld [vmem:[%s13501_s2 + $0x8] sm:$0xff] }
0x168a   : > { %9737 = vmatpush3.bf16.msra.mxu1 %v9734_v15  ;;  %v9774_v13 = vpack.c.bf16 %v6377_v12, %v6376_v11 }
0x168b   : > { %9739 = vmatprep.subr.bf16.mxu1 %v9738_v19 }
0x168e   : > { %9741 = vmatpush3.bf16.msra.mxu1 %v9738_v19 }
0x168f   : > { %9743 = vmatprep.subr.bf16.mxu1 %v9742_v22 }
0x1692   : > { %9745 = vmatpush3.bf16.msra.mxu1 %v9742_v22  ;;  %v6379_v22 = vld [vmem:[%s13501_s2 + $0x18] sm:$0xff] }
0x1693   : > { %9747 = vmatprep.subr.bf16.mxu1 %v9746_v23  ;;  %v9778_v25 = vpack.c.bf16 %v6379_v22, %v6378_v21  ;;  %v8325_v21 = vld [vmem:[#allocation40] ss:$0 sm:$0xff] }
0x1696   : > { %9749 = vmatpush3.bf16.msra.mxu1 %v9746_v23 }
0x1697   : > { %9751 = vmatprep.subr.bf16.mxu1 %v9750_v29 }
0x169a   : > { %9753 = vmatpush3.bf16.msra.mxu1 %v9750_v29 }
0x169b   : > { %9755 = vmatprep.subr.bf16.mxu1 %v9754_v31 }
0x169e   : > { %9757 = vmatpush3.bf16.msra.mxu1 %v9754_v31  ;;  %v8319_v31 = vld [vmem:[%s13501_s2 + $0x48] sm:$0xff] }
0x169f   : > { %9759 = vmatprep.subr.bf16.mxu1 %v9758_v28 }
0x16a2   : > { %9761 = vmatpush3.bf16.msra.mxu1 %v9758_v28 }
0x16a3   : > { %9763 = vmatprep.subr.bf16.mxu1 %v9762_v27 }
0x16a6   : > { %9765 = vmatpush3.bf16.msra.mxu1 %v9762_v27  ;;  %v9782_v27 = vpack.c.bf16 %v8319_v31, %v8318_v30 }
0x175c   : > { %v6238_v43 = vpop.f32.mrb[24].mxu1 }
0x175d   : > { %v6239_v44 = vadd.f32 %v8306_v42, %v6238_v43  ;;  %v9171_v45 = vpop.f32.mrb[25].mxu1  ;;  %v6647_v43 = vld [vmem:[%s13503_s1 + $0x10] sm:$0xff] }
0x175f   : > { %v6242_v48 = vsel %vm5410_vm15, %v6239_v44, 0.0  ;;  %v6648_v44 = vld [vmem:[%s13503_s1 + $0x18] sm:$0xff]  ;;  %s13508_s1 = sld [smem:[#allocation139_spill]] }
0x1760   : > { %v6243_v49 = vrot.slane %v6242_v48, 4  ;;  %v9794_v45 = vpack.c.bf16 %v6648_v44, %v6647_v43 }
0x1762   : > { %v6244_v5 = vadd.f32 %v6243_v49, %v6242_v48  ;;  %v8324_v48 = vld [vmem:[#allocation38] ss:$0 sm:$0xff] }
0x1764   : > { %v6245_v54 = vrot.slane %v6244_v5, 2 }
0x1766   : > { %v6246_v56 = vadd.f32 %v6245_v54, %v6244_v5 }
0x1768   : > { %v6247_v6 = vrot.slane %v6246_v56, 1 }
0x176a   : > { %v6248_v59 = vadd.f32 %v6247_v6, %v6246_v56 }
0x176c   : > { %v8308_v17 = vmul.f32 -1.442695, %v6248_v59 }
0x176e   : > { %10347 = vpow2.f32 %v8308_v17 }
0x1778   : > { %v10348_v60 = vpop.eup %10347 }
0x1779   : > { %v6252_v61 = vadd.f32 1.0, %v10348_v60 }
0x177b   : > { %10349 = vrcp.f32 %v6252_v61 }
0x1785   : > { %v10350_v62 = vpop.eup %10349 }
0x1786   : > { %v6255_v63 = vmul.f32 %v10350_v62, %v12968_v47  ;;  %v6256_v0 = vmul.f32 %v10350_v62, %v12966_v46  ;;  %v8312_v47 = vld [vmem:[%s13501_s2 + $0x30] sm:$0xff]  ;;  %v8313_v46 = vld [vmem:[%s13501_s2 + $0x38] sm:$0xff] }
0x1787   : > { %v9770_v10 = vpack.c.bf16 %v8313_v46, %v8312_v47 }
0x1788   : > { %v6257_v1 = vadd.f32 %v6255_v63, %v12884_v52  ;;  %v6258_v2 = vadd.f32 %v6256_v0, %v12882_v50 }
0x1789   : > { %9771 = vmatprep.subr.bf16.mxu0 %v9770_v10 }
0x178a   : > { %v6259_v18 = vmax.f32 %v6257_v1, 0.0  ;;  %v6260_v3 = vmax.f32 %v6258_v2, 0.0  ;;  %9773 = vmatpush3.bf16.msra.mxu0 %v9770_v10 }
0x178b   : > { %9775 = vmatprep.subr.bf16.mxu0 %v9774_v13 }
0x178c   : > { %v13001_v4 = vadd.f32 %v6259_v18, %v12884_v52  ;;  %v13004_v8 = vadd.f32 %v6260_v3, %v12882_v50  ;;  %v6645_v52 = vld [vmem:[%s13502_s16] sm:$0xff]  ;;  %v8309_v50 = vld [vmem:[#allocation37] ss:$0 sm:$0xff]  ;;  %s13504_s16 = sld [smem:[#allocation135_spill]] }
0x178d   : > { %v9790_v15 = vpack.c.bf16 %v6646_v14, %v6645_v52 }
0x178e   : > { %9204 = vmatprep.mubr.f32.mxu1 %v13001_v4 }
0x178f   : > { %9205 = vmatmul.mubr.f32.vlgmr.msra.gmra.mrb[26].mxu1 %v13004_v8  ;;  %9791 = vmatprep.subr.bf16.mxu1 %v9790_v15 }
0x1790   : > { %9793 = vmatpush3.bf16.msra.mxu1 %v9790_v15 }
0x1791   : > { %9795 = vmatprep.subr.bf16.mxu1 %v9794_v45 }
0x1792   : > { %s13505_s2 = smov %s13504_s16  ;;  %v6794_v17 = vld [vmem:[%s13504_s16] sm:$0xff]  ;;  %s13506_s16 = sld [smem:[#allocation133_spill]] }
0x1793   : > { %v6795_v60 = vld [vmem:[%s13505_s2 + $0x8] sm:$0xff]  ;;  %v6796_v62 = vld [vmem:[%s13505_s2 + $0x10] sm:$0xff]  ;;  %v6797_v63 = vld [vmem:[%s13505_s2 + $0x18] sm:$0xff] }
0x1794   : > { %9797 = vmatpush3.bf16.msra.mxu1 %v9794_v45  ;;  %v9799_v61 = vpack.c.bf16 %v6795_v60, %v6794_v17  ;;  %v9802_v0 = vpack.c.bf16 %v6797_v63, %v6796_v62  ;;  %v6798_v1 = vld [vmem:[%s13505_s2 + $0x20] sm:$0xff]  ;;  %v6799_v2 = vld [vmem:[%s13505_s2 + $0x28] sm:$0xff]  ;;  %v6800_v3 = vld [vmem:[%s13505_s2 + $0x30] sm:$0xff] }
0x1795   : > { %9798 = vmatprep.subr.bf16.mxu1 %v11491_v37  ;;  %v9805_v18 = vpack.c.bf16 %v6799_v2, %v6798_v1  ;;  %v6801_v47 = vld [vmem:[%s13505_s2 + $0x38] sm:$0xff]  ;;  %v6802_v10 = vld [vmem:[%s13505_s2 + $0x40] sm:$0xff]  ;;  %v6803_v11 = vld [vmem:[%s13505_s2 + $0x48] sm:$0xff] }
0x1796   : > { %v9808_v46 = vpack.c.bf16 %v6801_v47, %v6800_v3  ;;  %v9811_v12 = vpack.c.bf16 %v6803_v11, %v6802_v10  ;;  %v6805_v52 = vld [vmem:[%s13505_s2 + $0x58] sm:$0xff]  ;;  %v6806_v15 = vld [vmem:[%s13505_s2 + $0x60] sm:$0xff] }
0x1862   : > { %v9206_v9 = vpop.f32.mrb[26].mxu1 }
0x1863   : > { %v6358_v16 = vadd.f32 %v9206_v9, %v8309_v50  ;;  %v6352_v19 = vpop.f32.mrb[27].mxu1 }
0x1864   : > { %v6353_v20 = vadd.f32 %v8309_v50, %v6352_v19  ;;  %v6807_v50 = vld [vmem:[%s13505_s2 + $0x68] sm:$0xff]  ;;  %v6809_v19 = vld [vmem:[%s13505_s2 + $0x78] sm:$0xff] }
0x1865   : > { %v6362_v34 = vmax.f32 %v6358_v16, 0.0  ;;  %v9817_v9 = vpack.c.bf16 %v6807_v50, %v6806_v15  ;;  %v6808_v16 = vld [vmem:[%s13505_s2 + $0x70] sm:$0xff] }
0x1866   : > { %v6361_v35 = vmax.f32 %v6353_v20, 0.0  ;;  %v9820_v20 = vpack.c.bf16 %v6809_v19, %v6808_v16  ;;  %v8330_v19 = vld [vmem:[#allocation44] ss:$0 sm:$0xff] }
0x1867   : > { %v6365_v23 = vrot.slane %v6362_v34, 7  ;;  %v6371_v24 = vrot.slane %v6362_v34, 1 }
0x1868   : > { %v6364_v26 = vrot.slane %v6361_v35, 7  ;;  %v6370_v29 = vrot.slane %v6361_v35, 1  ;;  %9215 = vmatprep.mubr.msk.f32.mxu0 %vm4808_vm13, %v6361_v35 }
0x1869   : > { %9216 = vmatmul.mubr.msk.f32.vlgmr.msra.gmra.mrb[22].mxu0 %vm4808_vm13, %v6362_v34 }
0x186a   : > { %9777 = vmatpush3.bf16.msra.mxu0 %v9774_v13  ;;  %v6367_v33 = vsel %vm2920_vm1, %v6365_v23, %v6364_v26  ;;  %v6366_v36 = vsel %vm2920_vm1, %v6364_v26, %v6365_v23  ;;  %v6372_v28 = vsel %vm2931_vm4, %v6370_v29, %v6371_v24  ;;  %v6373_v38 = vsel %vm2931_vm4, %v6371_v24, %v6370_v29  ;;  %v6804_v13 = vld [vmem:[%s13505_s2 + $0x50] sm:$0xff]  ;;  %v6739_v23 = vld [vmem:[%s13506_s16] sm:$0x7]  ;;  %s13507_s16 = sld [smem:[#allocation137_spill]] }
0x186b   : > { %v6368_v57 = vsel %vm2815_vm3, %v6367_v33, 0.0  ;;  %9779 = vmatprep.subr.bf16.mxu0 %v9778_v25  ;;  %v6375_v42 = vsel %vm2818_vm5, %v6373_v38, 0.0  ;;  %v9814_v14 = vpack.c.bf16 %v6805_v52, %v6804_v13  ;;  %v6763_v31 = vrot.slane %v6739_v23, %v12589_v51 }
0x186c   : > { %9226 = vmatprep.mubr.msk.f32.mxu0 %vm4808_vm13, %v6368_v57  ;;  %v6757_v33 = vrot.slane %v6739_v23, %v12592_v53 }
0x186e   : > { %9781 = vmatpush3.bf16.msra.mxu0 %v9778_v25 }
0x186f   : > { %9783 = vmatprep.subr.bf16.mxu0 %v9782_v27 }
0x1870   : > { %v6811_v16 = vld [vmem:[%s13507_s16] sm:$0xff]  ;;  %s13509_s16 = sld [smem:[#allocation141_spill]] }
0x1871   : > { %9227 = vmatmul.mubr.msk.f32.vlgmr.msra.gmra.mrb[22].mxu0 %vm4808_vm13, %v6366_v36  ;;  %v6771_v36 = vrot.slane %v6739_v23, %v12596_v55  ;;  %v8335_v23 = vld [vmem:[%s13508_s1 + $0x88] sm:$0xff] }
0x1872   : > { %9785 = vmatpush3.bf16.msra.mxu0 %v9782_v27  ;;  %9237 = vmatprep.mubr.msk.f32.mxu0 %vm4808_vm13, %v6372_v28 }
0x1873   : > { %9787 = vmatprep.subr.bf16.mxu0 %v9786_v41 }
0x1876   : > { %9789 = vmatpush3.bf16.msra.mxu0 %v9786_v41  ;;  %s13510_s2 = smov %s13509_s16 }
0x1877   : > { %9286 = vmatprep.subr.mxu0 %v11493_v40  ;;  %v7318_v7 = vld [vmem:[%s13510_s2 + $0x20] sm:$0xff]  ;;  %v7320_v32 = vld [vmem:[%s13510_s2 + $0x30] sm:$0xff] }
0x1879   : > { %9238 = vmatmul.mubr.msk.f32.vlgmr.msra.gmra.mrb[22].mxu0 %vm4808_vm13, %v6375_v42 }
0x187a   : > { %9288 = vmatprep.mubr.msk.f32.mxu0 %vm11492_vm8, %v11493_v40  ;;  %9287 = vmatpush3.msra.mxu0 %v6811_v16 }
0x194c   : > { %v9239_v49 = vpop.f32.mrb[22].mxu0 }
0x194d   : > { %v6642_v5 = vadd.f32 %v9239_v49, %v8324_v48  ;;  %v6624_v54 = vpop.f32.mrb[23].mxu0 }
0x194e   : > { %v6641_v56 = vadd.f32 %v8324_v48, %v6624_v54  ;;  %v8328_v48 = vld [vmem:[#allocation41] ss:$0 sm:$0xff] }
0x194f   : > { %v6644_v59 = vmax.f32 %v6642_v5, 0.0 }
0x1950   : > { %v6643_v6 = vmax.f32 %v6641_v56, 0.0  ;;  %v8329_v56 = vld [vmem:[#allocation43] ss:$0 sm:$0xff] }
0x1952   : > { %9248 = vmatprep.mubr.msk.f32.mxu1 %vm4808_vm13, %v6643_v6 }
0x1953   : > { %9249 = vmatmul.mubr.msk.f32.vlgmr.msra.gmra.mrb[28].mxu1 %vm4808_vm13, %v6644_v59 }
0x1954   : > { %9283 = vmatprep.mubr.msk.f32.mxu1 %vm11492_vm8, %v11493_v40  ;;  %9800 = vmatpush3.bf16.msra.mxu1 %v9799_v61 }
0x1955   : > { %9801 = vmatprep.subr.bf16.mxu1 %v11491_v37 }
0x1958   : > { %9803 = vmatpush3.bf16.msra.mxu1 %v9802_v0 }
0x1959   : > { %9804 = vmatprep.subr.bf16.mxu1 %v11491_v37 }
0x195c   : > { %9806 = vmatpush3.bf16.msra.mxu1 %v9805_v18 }
0x195d   : > { %9807 = vmatprep.subr.bf16.mxu1 %v11491_v37 }
0x1960   : > { %9809 = vmatpush3.bf16.msra.mxu1 %v9808_v46 }
0x1961   : > { %9810 = vmatprep.subr.bf16.mxu1 %v11491_v37 }
0x1964   : > { %9812 = vmatpush3.bf16.msra.mxu1 %v9811_v12 }
0x1965   : > { %9813 = vmatprep.subr.bf16.mxu1 %v11491_v37 }
0x1968   : > { %9815 = vmatpush3.bf16.msra.mxu1 %v9814_v14 }
0x1969   : > { %9816 = vmatprep.subr.bf16.mxu1 %v11491_v37 }
0x196c   : > { %9818 = vmatpush3.bf16.msra.mxu1 %v9817_v9 }
0x196d   : > { %9819 = vmatprep.subr.bf16.mxu1 %v11491_v37 }
0x1970   : > { %9821 = vmatpush3.bf16.msra.mxu1 %v9820_v20 }
0x1971   : > { %9918 = vmatprep.subr.bf16.mxu1 %v11491_v37 }
0x1a26   : > { %v9250_v22 = vpop.f32.mrb[28].mxu1 }
0x1a27   : > { %v6734_v34 = vadd.f32 %v9250_v22, %v8325_v21  ;;  %v6728_v35 = vpop.f32.mrb[29].mxu1 }
0x1a28   : > { %v6729_v24 = vadd.f32 %v8325_v21, %v6728_v35  ;;  %v8334_v35 = vld [vmem:[%s13508_s1 + $0x80] sm:$0xff] }
0x1a29   : > { %v6738_v25 = vmax.f32 %v6734_v34, 0.0 }
0x1a2a   : > { %v6737_v26 = vmax.f32 %v6729_v24, 0.0  ;;  %v9822_v24 = vpack.c.bf16 %v8335_v23, %v8334_v35  ;;  %v7025_v35 = vld [vmem:[%s13508_s1 + $0x40] sm:$0xff]  ;;  %v7026_v23 = vld [vmem:[%s13508_s1 + $0x48] sm:$0xff] }
0x1a2b   : > { %v6743_v29 = vrot.slane %v6738_v25, 7  ;;  %v6749_v30 = vrot.slane %v6738_v25, 1  ;;  %v6765_v41 = vmul.f32 %v6763_v31, %v6738_v25  ;;  %v8336_v25 = vld [vmem:[%s13508_s1 + $0x90] sm:$0xff] }
0x1a2c   : > { %v6742_v28 = vrot.slane %v6737_v26, 7  ;;  %v6748_v38 = vrot.slane %v6737_v26, 1  ;;  %v6764_v43 = vmul.f32 %v6763_v31, %v6737_v26  ;;  %9823 = vmatprep.subr.bf16.mxu0 %v9822_v24  ;;  %v8337_v26 = vld [vmem:[%s13508_s1 + $0x98] sm:$0xff]  ;;  %v8339_v31 = vld [vmem:[%s13508_s1 + $0xa8] sm:$0xff] }
0x1a2e   : > { %v6744_v57 = vsel %vm2920_vm1, %v6742_v28, %v6743_v29  ;;  %v6745_v27 = vsel %vm2920_vm1, %v6743_v29, %v6742_v28  ;;  %v6750_v58 = vsel %vm2931_vm4, %v6748_v38, %v6749_v30  ;;  %v6751_v39 = vsel %vm2931_vm4, %v6749_v30, %v6748_v38  ;;  %v8338_v30 = vld [vmem:[%s13508_s1 + $0xa0] sm:$0xff]  ;;  %v8341_v28 = vld [vmem:[%s13508_s1 + $0xb8] sm:$0xff] }
0x1a2f   : > { %v6746_v51 = vsel %vm2815_vm3, %v6745_v27, 0.0  ;;  %v6753_v53 = vsel %vm2818_vm5, %v6751_v39, 0.0  ;;  %v6759_v55 = vmul.f32 %v6757_v33, %v6744_v57  ;;  %v6772_v5 = vmul.f32 %v6771_v36, %v6750_v58  ;;  %v8342_v57 = vld [vmem:[%s13508_s1 + $0xc0] sm:$0xff]  ;;  %v8343_v27 = vld [vmem:[%s13508_s1 + $0xc8] sm:$0xff]  ;;  %v8344_v39 = vld [vmem:[%s13508_s1 + $0xd0] sm:$0xff] }
0x1a30   : > { %v6758_v42 = vmul.f32 %v6757_v33, %v6746_v51  ;;  %v6773_v44 = vmul.f32 %v6771_v36, %v6753_v53  ;;  %v9826_v29 = vpack.c.bf16 %v8337_v26, %v8336_v25  ;;  %v9830_v33 = vpack.c.bf16 %v8339_v31, %v8338_v30  ;;  %v8340_v36 = vld [vmem:[%s13508_s1 + $0xb0] sm:$0xff]  ;;  %v8346_v53 = vld [vmem:[%s13508_s1 + $0xe0] sm:$0xff]  ;;  %v7028_v26 = vld [vmem:[%s13508_s1 + $0x58] sm:$0xff] }
0x1a31   : > { %v6767_v45 = vadd.f32 %v6765_v41, %v6759_v55  ;;  %v9834_v38 = vpack.c.bf16 %v8341_v28, %v8340_v36  ;;  %v9838_v58 = vpack.c.bf16 %v8343_v27, %v8342_v57  ;;  %v8345_v41 = vld [vmem:[%s13508_s1 + $0xd8] sm:$0xff]  ;;  %v8347_v55 = vld [vmem:[%s13508_s1 + $0xe8] sm:$0xff]  ;;  %v7027_v25 = vld [vmem:[%s13508_s1 + $0x50] sm:$0xff] }
0x1a32   : > { %v6766_v49 = vadd.f32 %v6764_v43, %v6758_v42  ;;  %v9842_v51 = vpack.c.bf16 %v8345_v41, %v8344_v39  ;;  %v9846_v42 = vpack.c.bf16 %v8347_v55, %v8346_v53  ;;  %v8348_v43 = vld [vmem:[%s13508_s1 + $0xf0] sm:$0xff]  ;;  %v7029_v30 = vld [vmem:[%s13508_s1 + $0x60] sm:$0xff]  ;;  %v7030_v31 = vld [vmem:[%s13508_s1 + $0x68] sm:$0xff] }
0x1a33   : > { %v6775_v54 = vadd.f32 %v6773_v44, %v6767_v45  ;;  %v8349_v44 = vld [vmem:[%s13508_s1 + $0xf8] sm:$0xff]  ;;  %v7031_v36 = vld [vmem:[%s13508_s1 + $0x70] sm:$0xff]  ;;  %v8351_v57 = vld [vmem:[%s13508_s1 + $0x100] sm:$0xff] }
0x1a34   : > { %v6774_v6 = vadd.f32 %v6772_v5, %v6766_v49  ;;  %v9850_v45 = vpack.c.bf16 %v8349_v44, %v8348_v43  ;;  %v7018_v49 = vld [vmem:[%s13508_s1 + $0x8] sm:$0xff]  ;;  %v7032_v28 = vld [vmem:[%s13508_s1 + $0x78] sm:$0xff]  ;;  %v8353_v39 = vld [vmem:[%s13508_s1 + $0x110] sm:$0xff] }
0x1a35   : > { %v6783_v59 = vmul.f32 %v8328_v48, %v6775_v54  ;;  %v8331_v54 = vld [vmem:[#allocation46] ss:$0 sm:$0xff]  ;;  %v8352_v27 = vld [vmem:[%s13508_s1 + $0x108] sm:$0xff]  ;;  %v8355_v43 = vld [vmem:[%s13508_s1 + $0x120] sm:$0xff] }
0x1a36   : > { %v6782_v17 = vmul.f32 %v8328_v48, %v6774_v6  ;;  %v7017_v48 = vld [vmem:[%s13508_s1] sm:$0xff]  ;;  %v8354_v41 = vld [vmem:[%s13508_s1 + $0x118] sm:$0xff]  ;;  %v8356_v44 = vld [vmem:[%s13508_s1 + $0x128] sm:$0xff] }
0x1a37   : > { %v6791_v60 = vadd.f32 %v8329_v56, %v6783_v59  ;;  %v9854_v5 = vpack.c.bf16 %v7018_v49, %v7017_v48  ;;  %v9890_v55 = vpack.c.bf16 %v8354_v41, %v8353_v39  ;;  %v9894_v48 = vpack.c.bf16 %v8356_v44, %v8355_v43  ;;  %v8357_v49 = vld [vmem:[%s13508_s1 + $0x130] sm:$0xff]  ;;  %v7401_v44 = vld [vmem:[#allocation50] sm:$0x1] }
0x1a38   : > { %v6790_v61 = vadd.f32 %v8329_v56, %v6782_v17 }
0x1a39   : > { %v13088_v62 = vmax.f32 %v6791_v60, 0.0 }
0x1a3a   : > { %v13090_v63 = vmax.f32 %v6790_v61, 0.0 }
0x1a3c   : > { %v6813_v0 = vadd.f32 %v13088_v62, %v13090_v63  ;;  %v6821_v1 = vmax.f32 %v13090_v63, %v13088_v62 }
0x1a3e   : > { %v6814_v2 = vrot.slane %v6813_v0, 4  ;;  %v6822_v18 = vrot.slane %v6821_v1, 4 }
0x1a40   : > { %v6815_v3 = vadd.f32 %v6814_v2, %v6813_v0  ;;  %v6823_v47 = vmax.f32 %v6821_v1, %v6822_v18 }
0x1a42   : > { %v6816_v46 = vrot.slane %v6815_v3, 2  ;;  %v6824_v10 = vrot.slane %v6823_v47, 2 }
0x1a44   : > { %v6817_v11 = vadd.f32 %v6816_v46, %v6815_v3  ;;  %v6825_v12 = vmax.f32 %v6823_v47, %v6824_v10 }
0x1a46   : > { %v6818_v13 = vrot.slane %v6817_v11, 1  ;;  %v6826_v52 = vrot.slane %v6825_v12, 1 }
0x1a48   : > { %v6819_v14 = vadd.f32 %v6818_v13, %v6817_v11  ;;  %v6827_v50 = vmax.f32 %v6825_v12, %v6826_v52 }
0x1a4a   : > { %v6820_v15 = vmul.f32 0.0625, %v6819_v14  ;;  %v7019_v14 = vld [vmem:[%s13508_s1 + $0x10] sm:$0xff] }
0x1a4c   : > { %v6828_v9 = vsel %vm3767_vm9, %v6820_v15, %v6827_v50  ;;  %v7020_v15 = vld [vmem:[%s13508_s1 + $0x18] sm:$0xff] }
0x1a4d   : > { %9284 = vmatmul.mubr.f32.vlgmr.msra.gmra.mrb[30].mxu1 %v6828_v9  ;;  %v9858_v16 = vpack.c.bf16 %v7020_v15, %v7019_v14  ;;  %v7319_v15 = vld [vmem:[%s13510_s2 + $0x28] sm:$0xff] }
0x1a4e   : > { %9412 = vmatprep.mubr.msk.f32.mxu1 %vm11492_vm8, %v11493_v40 }
0x1b20   : > { %v6901_v20 = vpop.f32.mrb[30].mxu1 }
0x1b21   : > { %v6902_v21 = vadd.f32 %v8330_v19, %v6901_v20  ;;  %v9285_v22 = vpop.f32.mrb[31].mxu1  ;;  %v7022_v19 = vld [vmem:[%s13508_s1 + $0x28] sm:$0xff] }
0x1b22   : > { %v7024_v22 = vld [vmem:[%s13508_s1 + $0x38] sm:$0xff] }
0x1b23   : > { %v6905_v34 = vmax.f32 %v6902_v21, 0.0  ;;  %v7023_v21 = vld [vmem:[%s13508_s1 + $0x30] sm:$0xff] }
0x1b25   : > { %9289 = vmatmul.mubr.msk.f32.vlgmr.msra.gmra.mrb[24].mxu0 %vm5336_vm14, %v6905_v34  ;;  %v9866_v34 = vpack.c.bf16 %v7024_v22, %v7023_v21 }
0x1b26   : > { %9825 = vmatpush3.bf16.msra.mxu0 %v9822_v24  ;;  %v9870_v24 = vpack.c.bf16 %v7026_v23, %v7025_v35 }
0x1b27   : > { %9827 = vmatprep.subr.bf16.mxu0 %v9826_v29 }
0x1b2a   : > { %9829 = vmatpush3.bf16.msra.mxu0 %v9826_v29  ;;  %v9874_v29 = vpack.c.bf16 %v7028_v26, %v7027_v25 }
0x1b2b   : > { %9831 = vmatprep.subr.bf16.mxu0 %v9830_v33 }
0x1b2e   : > { %9833 = vmatpush3.bf16.msra.mxu0 %v9830_v33  ;;  %v9878_v33 = vpack.c.bf16 %v7030_v31, %v7029_v30 }
0x1b2f   : > { %9835 = vmatprep.subr.bf16.mxu0 %v9834_v38 }
0x1b32   : > { %9837 = vmatpush3.bf16.msra.mxu0 %v9834_v38  ;;  %v9882_v38 = vpack.c.bf16 %v7032_v28, %v7031_v36 }
0x1b33   : > { %9839 = vmatprep.subr.bf16.mxu0 %v9838_v58 }
0x1b36   : > { %9841 = vmatpush3.bf16.msra.mxu0 %v9838_v58  ;;  %v9886_v58 = vpack.c.bf16 %v8352_v27, %v8351_v57 }
0x1b37   : > { %9843 = vmatprep.subr.bf16.mxu0 %v9842_v51 }
0x1b3a   : > { %9845 = vmatpush3.bf16.msra.mxu0 %v9842_v51 }
0x1b3b   : > { %9847 = vmatprep.subr.bf16.mxu0 %v9846_v42 }
0x1b3e   : > { %9849 = vmatpush3.bf16.msra.mxu0 %v9846_v42 }
0x1b3f   : > { %9851 = vmatprep.subr.bf16.mxu0 %v9850_v45 }
0x1b42   : > { %9853 = vmatpush3.bf16.msra.mxu0 %v9850_v45 }
0x1b43   : > { %9855 = vmatprep.subr.bf16.mxu0 %v9854_v5 }
0x1bf8   : > { %v6981_v56 = vpop.f32.mrb[24].mxu0 }
0x1bf9   : > { %v6982_v6 = vadd.f32 %v8331_v54, %v6981_v56  ;;  %v9290_v59 = vpop.f32.mrb[25].mxu0  ;;  %v8359_v56 = vld [vmem:[%s13508_s1 + $0x140] sm:$0xff] }
0x1bfb   : > { %v6985_v17 = vsel %vm5410_vm15, %v6982_v6, 0.0  ;;  %v8360_v6 = vld [vmem:[%s13508_s1 + $0x148] sm:$0xff] }
0x1bfc   : > { %v6986_v60 = vrot.slane %v6985_v17, 4  ;;  %v9902_v59 = vpack.c.bf16 %v8360_v6, %v8359_v56 }
0x1bfe   : > { %v6987_v61 = vadd.f32 %v6986_v60, %v6985_v17  ;;  %v8361_v17 = vld [vmem:[%s13508_s1 + $0x150] sm:$0xff]  ;;  %v8362_v60 = vld [vmem:[%s13508_s1 + $0x158] sm:$0xff] }
0x1c00   : > { %v6988_v0 = vrot.slane %v6987_v61, 2 }
0x1c02   : > { %v6989_v1 = vadd.f32 %v6988_v0, %v6987_v61  ;;  %v9906_v61 = vpack.c.bf16 %v8362_v60, %v8361_v17  ;;  %v8363_v0 = vld [vmem:[%s13508_s1 + $0x160] sm:$0xff] }
0x1c03   : > { %v7554_v60 = vld [vmem:[#allocation53] sm:$0x1] }
0x1c04   : > { %v6990_v2 = vrot.slane %v6989_v1, 1 }
0x1c06   : > { %v6991_v18 = vadd.f32 %v6990_v2, %v6989_v1  ;;  %v8364_v1 = vld [vmem:[%s13508_s1 + $0x168] sm:$0xff] }
0x1c07   : > { %v9910_v2 = vpack.c.bf16 %v8364_v1, %v8363_v0 }
0x1c08   : > { %v8333_v3 = vmul.f32 -1.442695, %v6991_v18  ;;  %v8365_v18 = vld [vmem:[%s13508_s1 + $0x170] sm:$0xff] }
0x1c0a   : > { %10351 = vpow2.f32 %v8333_v3  ;;  %v8366_v3 = vld [vmem:[%s13508_s1 + $0x178] sm:$0xff] }
0x1c14   : > { %v10352_v47 = vpop.eup %10351 }
0x1c15   : > { %v6995_v46 = vadd.f32 1.0, %v10352_v47  ;;  %v9914_v47 = vpack.c.bf16 %v8366_v3, %v8365_v18 }
0x1c17   : > { %10353 = vrcp.f32 %v6995_v46 }
0x1c21   : > { %v10354_v10 = vpop.eup %10353 }
0x1c22   : > { %v6998_v11 = vmul.f32 %v10354_v10, %v13090_v63  ;;  %v6999_v12 = vmul.f32 %v10354_v10, %v13088_v62  ;;  %v7314_v10 = vld [vmem:[%s13509_s16] sm:$0xff]  ;;  %s13512_s16 = sld [smem:[#allocation143_spill]] }
0x1c24   : > { %v7000_v13 = vadd.f32 %v6998_v11, %v13001_v4  ;;  %v7001_v52 = vadd.f32 %v6999_v12, %v13004_v8  ;;  %v7021_v4 = vld [vmem:[%s13508_s1 + $0x20] sm:$0xff]  ;;  %v7315_v11 = vld [vmem:[%s13510_s2 + $0x8] sm:$0xff] }
0x1c25   : > { %v9862_v20 = vpack.c.bf16 %v7022_v19, %v7021_v4  ;;  %v9919_v12 = vpack.c.bf16 %v7315_v11, %v7314_v10 }
0x1c26   : > { %v13126_v50 = vmax.f32 %v7000_v13, 0.0  ;;  %v13128_v9 = vmax.f32 %v7001_v52, 0.0  ;;  %v7316_v13 = vld [vmem:[%s13510_s2 + $0x10] sm:$0xff]  ;;  %v7317_v52 = vld [vmem:[%s13510_s2 + $0x18] sm:$0xff] }
0x1c27   : > { %9920 = vmatpush3.bf16.msra.mxu1 %v9919_v12  ;;  %v9922_v14 = vpack.c.bf16 %v7317_v52, %v7316_v13 }
0x1c28   : > { %9323 = vmatprep.mubr.f32.mxu0 %v13126_v50  ;;  %v7005_v63 = vrot.slane %v13126_v50, 7  ;;  %v7006_v62 = vrot.slane %v13128_v9, 7  ;;  %v7011_v51 = vrot.slane %v13126_v50, 1  ;;  %v7012_v53 = vrot.slane %v13128_v9, 1  ;;  %9921 = vmatprep.subr.bf16.mxu1 %v11491_v37  ;;  %s13513_s3 = smov %s13512_s16  ;;  %v7397_v30 = vld [vmem:[%s13512_s16] sm:$0xff]  ;;  %s2803_s16 = sand.u32 1, %s11365_s15  }
0x1c29   : > { %9324 = vmatmul.mubr.f32.vlgmr.msra.gmra.mrb[0].mxu0 %v13128_v9  ;;  %v9925_v50 = vpack.c.bf16 %v7319_v15, %v7318_v7  ;;  %v7321_v9 = vld [vmem:[%s13510_s2 + $0x38] sm:$0xff]  ;;  %v7398_v31 = vld [vmem:[%s13513_s3 + $0x8] sm:$0xff]  ;;  %s2804_s2 = scalar_lea.vmem [#allocation55], %s2803_s16  ;;  %s7631_s5 = scalar_lea.sflag [#allocation4], %s2803_s16 }
0x1c2a   : > { %9857 = vmatpush3.bf16.msra.mxu0 %v9854_v5  ;;  %v7008_v8 = vsel %vm2920_vm1, %v7006_v62, %v7005_v63  ;;  %v7007_v42 = vsel %vm2920_vm1, %v7005_v63, %v7006_v62  ;;  %v7013_v45 = vsel %vm2931_vm4, %v7011_v51, %v7012_v53  ;;  %v8358_v5 = vld [vmem:[%s13508_s1 + $0x138] sm:$0xff]  ;;  %v7014_v46 = vsel %vm2931_vm4, %v7012_v53, %v7011_v51  ;;  %s13511_s1 = sld [smem:[#allocation79_spill]] }
0x1c2b   : > { %9358 = vmatprep.mubr.msk.f32.mxu0 %vm2815_vm3, %v7008_v8  ;;  %9859 = vmatprep.subr.bf16.mxu0 %v9858_v16  ;;  %v9898_v54 = vpack.c.bf16 %v8358_v5, %v8357_v49  ;;  %v8368_v62 = vld [vmem:[#allocation47] ss:$0 sm:$0xff]  ;;  %v9931_v36 = vpack.c.bf16 %v7398_v31, %v7397_v30  ;;  %v7553_v5 = vld [vmem:[%s11903_s13] sm:$0xff] }
0x1c2c   : > { %9923 = vmatpush3.bf16.msra.mxu1 %v9922_v14  ;;  %v7400_v57 = vld [vmem:[%s13513_s3 + $0x18] sm:$0xff] }
0x1c2d   : > { %9924 = vmatprep.subr.bf16.mxu1 %v11491_v37 }
0x1c2e   : > { %9861 = vmatpush3.bf16.msra.mxu0 %v9858_v16  ;;  %v9928_v16 = vpack.c.bf16 %v7321_v9, %v7320_v32 }
0x1c2f   : > { %9863 = vmatprep.subr.bf16.mxu0 %v9862_v20 }
0x1c30   : > { %9926 = vmatpush3.bf16.msra.mxu1 %v9925_v50  ;;  %v8180_v63 = vld [vmem:[%s13511_s1] ss:$0 sm:$0xff]  ;;  %s13514_s1 = sld [smem:[#allocation145_spill]] }
0x1c31   : > { %9927 = vmatprep.subr.bf16.mxu1 %v11491_v37  ;;  %v9941_v4 = vadd.f32 %v8368_v62, %v8180_v63 }
0x1c32   : > { %9865 = vmatpush3.bf16.msra.mxu0 %v9862_v20 }
0x1c33   : > { %9867 = vmatprep.subr.bf16.mxu0 %v9866_v34 }
0x1c34   : > { %9929 = vmatpush3.bf16.msra.mxu1 %v9928_v16 }
0x1c35   : > { %9930 = vmatprep.subr.bf16.mxu1 %v11491_v37 }
0x1c36   : > { %9869 = vmatpush3.bf16.msra.mxu0 %v9866_v34 }
0x1c37   : > { %9871 = vmatprep.subr.bf16.mxu0 %v9870_v24 }
0x1c3a   : > { %9873 = vmatpush3.bf16.msra.mxu0 %v9870_v24 }
0x1c3b   : > { %9875 = vmatprep.subr.bf16.mxu0 %v9874_v29 }
0x1c3e   : > { %9877 = vmatpush3.bf16.msra.mxu0 %v9874_v29 }
0x1c3f   : > { %9879 = vmatprep.subr.bf16.mxu0 %v9878_v33 }
0x1c42   : > { %9881 = vmatpush3.bf16.msra.mxu0 %v9878_v33 }
0x1c43   : > { %9883 = vmatprep.subr.bf16.mxu0 %v9882_v38 }
0x1c46   : > { %9885 = vmatpush3.bf16.msra.mxu0 %v9882_v38  ;;  %v7399_v38 = vld [vmem:[%s13513_s3 + $0x10] sm:$0xff]  ;;  %s7643_s3 = sshll.u32 %s2804_s2, 4  ;;  %s13216_s3 = int_to_ptr.vmem [resolvable:$true] %s7643_s3 }
0x1c47   : > { %9887 = vmatprep.subr.bf16.mxu0 %v9886_v58  ;;  %v9934_v27 = vpack.c.bf16 %v7400_v57, %v7399_v38  ;;  %s11239_s8 = scalar_lea.vmem %s13216_s3, 16 }
0x1c48   : > { %p11240_p10 = scmp.ne.s32.totalorder %s13216_s3, %s11239_s8 }
0x1c49   : > { %9359 = vmatmul.mubr.f32.vlgmr.msra.gmra.mrb[0].mxu0 %v7007_v42  ;;  %v7477_v42 = vld [vmem:[%s13514_s1 + $0x8] sm:$0xff] }
0x1c4a   : > { %9889 = vmatpush3.bf16.msra.mxu0 %v9886_v58  ;;  %9393 = vmatprep.mubr.f32.mxu0 %v7013_v45  ;;  %v7322_v58 = vld [vmem:[#allocation49] sm:$0x1]  ;;  %p11241_p13 = pnand %p11240_p10, %p13515_p12 }
0x1c4b   : > { %9891 = vmatprep.subr.bf16.mxu0 %v9890_v55 }
0x1c4c   : > { %p11242_p0 = pneg %p11241_p13 }
0x1c4e   : > { %9893 = vmatpush3.bf16.msra.mxu0 %v9890_v55  ;;  %v7476_v55 = vld [vmem:[%s13514_s1] sm:$0xff]  ;;  %s8373_s1 = sshll.u32 %s11936_s22, 4  ;;  %s11494_s22 = smov [#allocation55]  }
0x1c4f   : > { %9895 = vmatprep.subr.bf16.mxu0 %v9894_v48  ;;  %v9937_v43 = vpack.c.bf16 %v7477_v42, %v7476_v55  ;;  %s13214_s4 = scalar_lea.hbm %s11913_s6, %s8373_s1  ;;  %s11243_s9 = sshll.u32 %s11494_s22, 4  ;;  %s11244_s9 = int_to_ptr.vmem [resolvable:$false] %s11243_s9 }
0x1c50   : > { %s11245_s10 = scalar_lea.vmem %s11244_s9, 32  ;;  %p11246_p1 = scmp.lt.s32.totalorder %s13216_s3, %s11244_s9 }
0x1c51   : > { %p11247_p5 = scmp.lt.s32.totalorder %s11245_s10, %s11239_s8 }
0x1c52   : > { %9897 = vmatpush3.bf16.msra.mxu0 %v9894_v48 }
0x1c53   : > { %9899 = vmatprep.subr.bf16.mxu0 %v9898_v54  ;;  %p11248_p6 = por %p11247_p5, %p11246_p1 }
0x1c55   : > { %p11249_p2 = pnand %p11248_p6, %p11242_p0 }
0x1c56   : > { %9901 = vmatpush3.bf16.msra.mxu0 %v9898_v54  ;;  %v7478_v54 = vld [vmem:[#allocation52] sm:$0x1] }
0x1c57   : > { %9903 = vmatprep.subr.bf16.mxu0 %v9902_v59 }
0x1c5a   : > { %9905 = vmatpush3.bf16.msra.mxu0 %v9902_v59 }
0x1c5b   : > { %9907 = vmatprep.subr.bf16.mxu0 %v9906_v61 }
0x1c5e   : > { %9909 = vmatpush3.bf16.msra.mxu0 %v9906_v61 }
0x1c5f   : > { %9911 = vmatprep.subr.bf16.mxu0 %v9910_v2 }
0x1c62   : > { %9913 = vmatpush3.bf16.msra.mxu0 %v9910_v2 }
0x1c63   : > { %9915 = vmatprep.subr.bf16.mxu0 %v9914_v47 }
0x1c66   : > { %9917 = vmatpush3.bf16.msra.mxu0 %v9914_v47 }
0x1c69   : > { %9394 = vmatmul.mubr.msk.f32.vlgmr.msra.gmra.mrb[0].mxu0 %vm2818_vm5, %v7014_v46 }
0x1d3c   : > { %v9395_v19 = vpop.f32.mrb[0].mxu0 }
0x1d3d   : > { %v9940_v8 = vadd.f32 %v9941_v4, %v9395_v19  ;;  %v7283_v20 = vpop.f32.mrb[1].mxu0 }
0x1d3e   : > { %v9942_v21 = vadd.f32 %v9941_v4, %v7283_v20 }
0x1d3f   : > { %v7305_v22 = vsel %vm3228_vm6, %v9940_v8, 0.0 }
0x1d40   : > { %v7304_v34 = vsel %vm3228_vm6, %v9942_v21, 0.0 }
0x1d41   : > { %v7306_v35 = vadd.f32 %v7305_v22, %v7304_v34 }
0x1d43   : > { %v7307_v23 = vrot.slane %v7306_v35, 4 }
0x1d45   : > { %v7308_v24 = vadd.f32 %v7307_v23, %v7306_v35 }
0x1d47   : > { %v7309_v25 = vrot.slane %v7308_v24, 2 }
0x1d49   : > { %v7310_v26 = vadd.f32 %v7309_v25, %v7308_v24 }
0x1d4b   : > { %v7311_v29 = vrot.slane %v7310_v26, 1 }
0x1d4d   : > { %v7312_v33 = vadd.f32 %v7311_v29, %v7310_v26 }
0x1d4f   : > { %v7313_v28 = vmul.f32 0.0625, %v7312_v33 }
0x1d51   : > { %9413 = vmatmul.mubr.msk.f32.vlgmr.msra.gmra.mrb[32].mxu1 %vm3228_vm6, %v7313_v28 }
0x1d52   : > { %9932 = vmatpush3.bf16.msra.mxu1 %v9931_v36  ;;  %9423 = vmatprep.mubr.msk.f32.mxu1 %vm11492_vm8, %v11493_v40 }
0x1d53   : > { %9933 = vmatprep.subr.bf16.mxu1 %v11491_v37 }
0x1d56   : > { %9935 = vmatpush3.bf16.msra.mxu1 %v9934_v27 }
0x1d57   : > { %9936 = vmatprep.subr.bf16.mxu1 %v11491_v37 }
0x1e24   : > { %v7392_v39 = vpop.f32.mrb[32].mxu1 }
0x1e25   : > { %v7393_v41 = vadd.f32 %v7392_v39, %v7322_v58  ;;  %v9414_v51 = vpop.f32.mrb[33].mxu1 }
0x1e27   : > { %v7396_v53 = vmax.f32 %v7393_v41, 0.0 }
0x1e29   : > { %9424 = vmatmul.mubr.msk.f32.vlgmr.msra.gmra.mrb[34].mxu1 %vm4808_vm13, %v7396_v53 }
0x1e2a   : > { %9430 = vmatprep.mubr.msk.f32.mxu1 %vm11492_vm8, %v11493_v40  ;;  %9938 = vmatpush3.bf16.msra.mxu1 %v9937_v43 }
0x1e2b   : > { %9433 = vmatprep.subr.mxu1 %v11493_v40 }
0x1efc   : > { %v7471_v37 = vpop.f32.mrb[34].mxu1 }
0x1efd   : > { %v7472_v45 = vadd.f32 %v7471_v37, %v7401_v44  ;;  %v9425_v48 = vpop.f32.mrb[35].mxu1 }
0x1eff   : > { %v7475_v49 = vmax.f32 %v7472_v45, 0.0 }
0x1f01   : > { %9431 = vmatmul.mubr.msk.f32.vlgmr.msra.gmra.mrb[36].mxu1 %vm3330_vm7, %v7475_v49 }
0x1f02   : > { %9435 = vmatprep.mubr.msk.f32.mxu1 %vm11492_vm8, %v11493_v40  ;;  %9434 = vmatpush3.msra.mxu1 %v7553_v5 }
0x1fd4   : > { %v7548_v56 = vpop.f32.mrb[36].mxu1 }
0x1fd5   : > { %v7549_v6 = vadd.f32 %v7548_v56, %v7478_v54  ;;  %v9432_v59 = vpop.f32.mrb[37].mxu1 }
0x1fd7   : > { %v7552_v17 = vmax.f32 %v7549_v6, 0.0 }
0x1fd9   : > { %9436 = vmatmul.mubr.msk.f32.vlgmr.msra.gmra.mrb[38].mxu1 %vm5336_vm14, %v7552_v17 }
0x20ac   : > { %v7624_v61 = vpop.f32.mrb[38].mxu1 }
0x20ad   : > { %v7625_v0 = vadd.f32 %v7624_v61, %v7554_v60  ;;  %v9437_v40 = vpop.f32.mrb[39].mxu1 }
0x20af   : > { %7629 = vst.msk [vmem:[%s2804_s2] sm:$0x1] %vm7628_vm0, %v7625_v0 }
0x20b0   : > { %11252 = shalt.err (!%p11249_p2)
}
0x20b1   : > { %s11253_s2 = scalar_lea.hbm %s13214_s4, 16  ;;  %s11257_s1 = scalar_lea.hbm %s11913_s6, 32 }
0x20b2   : > { %p11254_p3 = scmp.ne.s32.totalorder %s13214_s4, %s11253_s2  ;;  %p11258_p8 = scmp.lt.u32.totalorder %s13214_s4, %s11913_s6 }
0x20b3   : > { %p11259_p11 = scmp.lt.u32.totalorder %s11257_s1, %s11253_s2  ;;  %p11261_p10 = scmp.lt.u32.totalorder %s11253_s2, %s13214_s4 }
0x20b4   : > { %p11255_p4 = pnand %p11254_p3, %p13515_p12 }
0x20b5   : > { %p11260_p9 = por %p11259_p11, %p11258_p8 }
0x20b6   : > { %p11256_p7 = pneg %p11255_p4 }
0x20b7   : > { %p11262_p13 = por %p11261_p10, %p11260_p9 }
0x20b9   : > { %p11263_p0 = pnand %p11262_p13, %p11256_p7 }
0x20bb   : > { %11266 = shalt.err (!%p11263_p0)
}
0x20bc   : > { %10109 = dma.vmem_to_hbm [thread:$0]  (%p13515_p12), %s13216_s3, 16, %s13214_s4, %s7631_s5  }
0x20bd PF: > { %s13516_s10 = sld [smem:[#allocation150_spill]]  ;;  %p10183_p1 = scmp.ge.s32.totalorder %s11373_s18, 2 }
0x20be   : > { %s7655_s8 = sand.u32 1, %s11361_s0  }
0x20bf   : > { %s7656_s9 = scalar_lea.sflag [#allocation4], %s7655_s8 }
0x20c3   : > { %p13517_p5 = scmp.ne.s32.totalorder %s13516_s10, 0 }
0x20c5   : > { %p10112_p6 = pnand %p10183_p1, %p13517_p5 }
0x20c7   : > { %11356 = dma.done.wait (!%p10112_p6), %s7656_s9, 16  }
0x20c8   : > { %11358 = vsyncadd (!%p10112_p6), %s7656_s9, 4294967280  ;;  %s13518_s18 = sld [smem:[#allocation148_spill]]  ;;  %s13519_s16 = sld [smem:[#allocation147_spill]] }
0x20c9   : > { %s13520_s22 = sld [smem:[#allocation149_spill]]  ;;  %s13521_s0 = smov %s11365_s15 }
0x20ce   : > { %p193_p2 = scmp.ge.s32.totalorder %s13518_s18, 4   ;;  %s13522_s15 = smov %s13519_s16 }
0x20cf   : > { %s13523_s16 = smov %s13520_s22 }
0x20d0   :  { %195 = sbr.rel (!%p193_p2) target bundleno = 180 (0xb4), region = 616 }
0x20d7   :  { %7660 = vsyncpa [#allocation3], 1 }
0x20d8   :  { %7662 = vsyncpa [#allocation3 + $0x1], 1 }
0x20d9   :  { %7663 = vsyncpa [#allocation6], 1 }
0x20da   :  { %7664 = vsyncpa [#allocation9], 1 }
0x20db   :  { %7665 = vsyncpa [#allocation12], 1 }
0x20dc   :  { %7666 = vsyncpa [#allocation15], 1 }
0x20dd   :  { %7667 = vsyncpa [#allocation18], 1 }
0x20de   :  { %7668 = vsyncpa [#allocation21], 1 }
0x20df   :  { %7669 = vsyncpa [#allocation24], 1 }
0x20e0   :  { %7670 = vsyncpa [#allocation27], 1 }
0x20e1   :  { %7671 = vsyncpa [#allocation30], 1 }
0x20e2   :  { %7672 = vsyncpa [#allocation33], 1 }
0x20e3   :  { %7673 = vsyncpa [#allocation36], 1 }
0x20e4   :  { %7674 = vsyncpa [#allocation39], 1 }
0x20e5   :  { %7675 = vsyncpa [#allocation42], 1 }
0x20e6   :  { %7676 = vsyncpa [#allocation45], 1 }
0x20e7   :  { %7677 = vsyncpa [#allocation48], 1 }
0x20e8   :  { %7678 = vsyncpa [#allocation51], 1 }
0x20e9   :  { %7679 = vsyncpa [#allocation54], 1 }
0x20ea   :  { %7680 = vsyncpa [#allocation4], 1 }
0x20eb   :  { %7682 = vsyncpa [#allocation4 + $0x1], 1 }

</bundles_post_ra>
